<compile_context>
chip_gen: v7x
topology: tpu7x:2x2x1
jax: 0.10.0
libtpu: 0.0.40
codegen_flags: <defaults>
</compile_context>

<pallas_src>
import functools

import jax
import jax.numpy as jnp
from jax import lax
from jax.experimental import pallas as pl
from jax.experimental.pallas import tpu as pltpu


def _round_up(x, m):
    return ((x + m - 1) // m) * m


def _trconv_tile_kernel(x_ref, w_ref, b_ref, o_ref, *, K, dil, TOH, OW_pad):
    """One TOH x OW_pad output slab of the equivalent stride-1 convolution.

    x_ref: (HALO, WPP, Cin)        bf16 halo slab (TOH + dil*(K-1) input rows)
    w_ref: (K*K*Cin, Cout_pad)     bf16 flipped, spectral-normalized weight
    b_ref: (1, Cout_pad)           f32 bias (zero-padded lanes)
    o_ref: (TOH*OW_pad, Cout_pad)  f32 output slab, rows flattened as (r, ow)
    """
    Cin = x_ref.shape[-1]
    M = TOH * OW_pad

    # im2col: concatenate the K*K shifted windows along the lane axis so the whole
    # tap loop collapses into ONE MXU matmul with contraction K*K*Cin (instead of
    # K*K matmuls each padded from Cin up to the MXU's native contraction width).
    taps = []
    for kh in range(K):
        rows = x_ref[kh * dil:kh * dil + TOH, :, :]                 # (TOH, WPP, Cin)
        for kw in range(K):
            # sublane-shifted window; shift work lands on XLU, not the VALU
            taps.append(rows[:, kw * dil:kw * dil + OW_pad, :])     # (TOH, OW_pad, Cin)
    patch = jnp.concatenate(taps, axis=-1)                          # (TOH, OW_pad, K*K*Cin)
    # OW_pad % 16 == 0 -> merging (TOH, OW_pad) into sublanes is layout-free (bf16)
    patch = patch.reshape(M, K * K * Cin)

    # bias folded into the single f32-accumulated matmul epilogue; lane-dense store
    o_ref[...] = (jnp.dot(patch, w_ref[...], preferred_element_type=jnp.float32)
                  + b_ref[...])


def _spectral_normalize(weight, u, eps=1e-12):
    """One power-iteration step (torch.nn.utils.spectral_norm, dim=0).
    TODO(synk): updated `u` vector is not emitted (training-mode state update)."""
    cin = weight.shape[0]
    w_mat = weight.reshape(cin, -1)
    v = w_mat.T @ u
    v = v / jnp.maximum(jnp.linalg.norm(v), eps)
    u_new = w_mat @ v
    u_new = u_new / jnp.maximum(jnp.linalg.norm(u_new), eps)
    sigma = u_new @ (w_mat @ v)
    return weight / sigma


def _pick_vmem_limit(need_bytes):
    """Per-generation VMEM limit: enough for the blocks, capped below physical."""
    try:
        phys = pltpu.get_tpu_info().vmem_capacity_bytes
    except Exception:
        phys = 64 << 20                      # v7x worst case (64 MiB per TC)
    cap = max((phys * 3) // 4, 32 << 20)     # ~48 MiB on v7x, ~96 MiB on v5e/v6e
    return int(min(max(need_bytes, 32 << 20), cap))


def tr_conv2d_block(x_nchw, weight, bias, u, *, stride=1, padding=0, dilation=1,
                    compute_dtype=jnp.bfloat16, target_m=1024):
    """Forward of TrConv2dBlock with default norm_layer=None, nl_layer=None
    (both identities).  weight: (Cin, Cout, K, K) as in nn.ConvTranspose2d."""
    Cin, Cout, K, _ = weight.shape
    N, _, H, W = x_nchw.shape

    # --- parameter setup glue (plain JAX) ----------------------------------
    w_sn = _spectral_normalize(weight.astype(jnp.float32), u.astype(jnp.float32))
    # spatially flipped weight, (kh, kw, cin) flattened into the contraction dim
    wf = jnp.transpose(w_sn[:, :, ::-1, ::-1], (2, 3, 0, 1))        # (K,K,Cin,Cout)
    wf = wf.reshape(K * K * Cin, Cout)
    Cout_pad = _round_up(Cout, 128)          # lane-dense output / MXU-native N dim
    wf = jnp.pad(wf, ((0, 0), (0, Cout_pad - Cout))).astype(compute_dtype)
    b2 = jnp.pad(bias.astype(jnp.float32), (0, Cout_pad - Cout)).reshape(1, Cout_pad)

    # bf16 input: halves HBM->VMEM DMA bytes and removes per-tap casts in-kernel
    x = jnp.transpose(x_nchw, (0, 2, 3, 1)).astype(compute_dtype)   # NHWC
    # transposed conv == stride-1 conv over stride-dilated, zero-padded input
    if stride > 1:
        # TODO(synk): polyphase/sub-pixel decomposition would avoid the ~stride^2
        # blowup of the zero-dilated input materialized in HBM.
        Hd, Wd = (H - 1) * stride + 1, (W - 1) * stride + 1
        xd = jnp.zeros((N, Hd, Wd, Cin), x.dtype).at[:, ::stride, ::stride, :].set(x)
    else:
        Hd, Wd = H, W
        xd = x

    pad = dilation * (K - 1) - padding
    # TODO(synk): padding > dilation*(K-1) and output_padding != 0 not supported
    assert pad >= 0
    OH = (H - 1) * stride - 2 * padding + dilation * (K - 1) + 1
    OW = (W - 1) * stride - 2 * padding + dilation * (K - 1) + 1

    # --- tiling -------------------------------------------------------------
    # OW padded to a bf16 sublane tile (layout-free (TOH,OW_pad)->M merge);
    # TOH sized so M = TOH*OW_pad ~ target_m rows per grid step.
    OW_pad = _round_up(OW, 16)
    toh_cap = _round_up(OH, 8)
    toh_want = max(8, (max(target_m // OW_pad, 1) // 8) * 8)
    TOH = min(toh_cap, toh_want)
    n_tiles = pl.cdiv(OH, TOH)
    OH_pad = n_tiles * TOH
    M = TOH * OW_pad
    halo = dilation * (K - 1)
    HALO = TOH + halo
    # TODO(synk): very wide images (OW_pad*Cout_pad slabs > VMEM budget) would also
    # need a W tile axis; not needed for the shapes this module is used with.

    HPP = OH_pad + halo
    WPP = OW_pad + halo
    xp = jnp.pad(xd, ((0, 0),
                      (pad, HPP - Hd - pad),
                      (pad, WPP - Wd - pad),
                      (0, 0)))
    # Halo row-slabs: overlapping (HALO, WPP, Cin) windows materialized wrapper-side
    # so each grid step's input block is only a halo slab (caps per-step VMEM, v7x
    # friendly) while keeping a plain Blocked BlockSpec (no manual DMA).
    row_idx = jnp.arange(n_tiles)[:, None] * TOH + jnp.arange(HALO)[None, :]
    xp_tiles = xp[:, row_idx]                                   # (N, n_tiles, HALO, WPP, Cin)

    # VMEM budget: double-buffered input/weight/bias/output blocks + matmul scratch
    bytes_in = HALO * WPP * Cin * 2
    bytes_w = K * K * Cin * Cout_pad * 2
    bytes_b = Cout_pad * 4
    bytes_out = M * Cout_pad * 4
    need = 2 * (bytes_in + bytes_w + bytes_b + bytes_out) + 2 * bytes_out + (4 << 20)
    vmem_limit = _pick_vmem_limit(need)

    # --- Pallas hot path -----------------------------------------------------
    kernel = functools.partial(_trconv_tile_kernel, K=K, dil=dilation,
                               TOH=TOH, OW_pad=OW_pad)
    out = pl.pallas_call(
        kernel,
        out_shape=jax.ShapeDtypeStruct((N, n_tiles, M, Cout_pad), jnp.float32),
        grid=(N, n_tiles),
        in_specs=[
            pl.BlockSpec((None, None, HALO, WPP, Cin), lambda n, t: (n, t, 0, 0, 0)),
            pl.BlockSpec((K * K * Cin, Cout_pad), lambda n, t: (0, 0)),
            pl.BlockSpec((1, Cout_pad), lambda n, t: (0, 0)),
        ],
        out_specs=pl.BlockSpec((None, None, M, Cout_pad), lambda n, t: (n, t, 0, 0)),
        compiler_params=pltpu.CompilerParams(
            # no reduction axis; halo slabs make either split cheap on v7x megacore
            dimension_semantics=("parallel", "parallel"),
            vmem_limit_bytes=vmem_limit),
    )(xp_tiles, wf, b2)

    # un-tile, crop alignment padding (rows/cols/lanes), back to NCHW
    out = out.reshape(N, OH_pad, OW_pad, Cout_pad)[:, :OH, :OW, :Cout]
    # norm = identity, activation = identity (module defaults)
    # TODO(synk): drop this transpose if the consumer accepts NHWC (saves an XLA pass)
    return jnp.transpose(out, (0, 3, 1, 2))


def _reference(x_nchw, weight, bias, u, *, stride=1, padding=0, dilation=1,
               compute_dtype=jnp.bfloat16):
    """Pure-JAX reference with the same bf16 operand rounding as the kernel."""
    Cin, Cout, K, _ = weight.shape
    w_sn = _spectral_normalize(weight.astype(jnp.float32), u.astype(jnp.float32))
    wf = jnp.transpose(w_sn[:, :, ::-1, ::-1], (2, 3, 0, 1))
    wf = wf.astype(compute_dtype).astype(jnp.float32)
    x = jnp.transpose(x_nchw, (0, 2, 3, 1)).astype(compute_dtype).astype(jnp.float32)
    pad = dilation * (K - 1) - padding
    out = lax.conv_general_dilated(
        x, wf, window_strides=(1, 1),
        padding=[(pad, pad), (pad, pad)],
        lhs_dilation=(stride, stride), rhs_dilation=(dilation, dilation),
        dimension_numbers=("NHWC", "HWIO", "NHWC"),
        precision=lax.Precision.HIGHEST)
    out = out + bias.astype(jnp.float32).reshape(1, 1, 1, Cout)
    return jnp.transpose(out, (0, 3, 1, 2))


if __name__ == "__main__":
    key = jax.random.PRNGKey(0)
    k1, k2, k3, k4 = jax.random.split(key, 4)

    N, Cin, H, W = 2, 4, 16, 16
    Cout, K = 8, 3

    x = jax.random.normal(k1, (N, Cin, H, W), jnp.float32)
    weight = 0.1 * jax.random.normal(k2, (Cin, Cout, K, K), jnp.float32)
    bias = 0.1 * jax.random.normal(k3, (Cout,), jnp.float32)
    u0 = jax.random.normal(k4, (Cin,), jnp.float32)
    u0 = u0 / jnp.linalg.norm(u0)

    out = jax.block_until_ready(tr_conv2d_block(x, weight, bias, u0))
    ref = jax.block_until_ready(_reference(x, weight, bias, u0))

    assert out.shape == (N, Cout, H + 2, W + 2), out.shape
    max_err = float(jnp.max(jnp.abs(out - ref)))
    assert jnp.allclose(out, ref, atol=1e-3, rtol=1e-3), max_err

    print("KERNEL_OK")
</pallas_src>

<mosaic_0001>
module attributes {stable_mosaic.version = 11 : i64} {
  func.func @_trconv_tile_kernel(%arg0: i32, %arg1: i32, %arg2: memref<1x1x26x34x4xbf16, #tpu.memory_space<vmem>>, %arg3: memref<36x128xbf16, #tpu.memory_space<vmem>>, %arg4: memref<1x128xf32, #tpu.memory_space<vmem>>, %arg5: memref<1x1x768x128xf32, #tpu.memory_space<vmem>>) attributes {dimension_semantics = [#tpu.dimension_semantics<parallel>, #tpu.dimension_semantics<parallel>], iteration_bounds = array<i64: 2, 1>, scalar_prefetch = 0 : i64, scratch_operands = 0 : i64, tpu.core_type = #tpu.core_type<tc>, window_params = [{transform_indices = @transform_0, window_bounds = array<i64: 1, 1, 26, 34, 4>}, {pipeline_mode = #tpu.pipeline_mode<synchronous>, transform_indices = @transform_1, window_bounds = array<i64: 36, 128>}, {pipeline_mode = #tpu.pipeline_mode<synchronous>, transform_indices = @transform_2, window_bounds = array<i64: 1, 128>}, {transform_indices = @transform_3, window_bounds = array<i64: 1, 1, 768, 128>}]} {
    %c0 = arith.constant 0 : index
    %c0_0 = arith.constant 0 : index
    %c0_1 = arith.constant 0 : index
    %c0_2 = arith.constant 0 : index
    %c0_3 = arith.constant 0 : index
    %0 = vector.load %arg2[%c0, %c0_0, %c0_1, %c0_2, %c0_3] : memref<1x1x26x34x4xbf16, #tpu.memory_space<vmem>>, vector<1x1x24x34x4xbf16>
    %1 = vector.shape_cast %0 : vector<1x1x24x34x4xbf16> to vector<24x34x4xbf16>
    %2 = vector.extract_strided_slice %1 {offsets = [0, 0, 0], sizes = [24, 32, 4], strides = [1, 1, 1]} : vector<24x34x4xbf16> to vector<24x32x4xbf16>
    %3 = vector.extract_strided_slice %1 {offsets = [0, 1, 0], sizes = [24, 32, 4], strides = [1, 1, 1]} : vector<24x34x4xbf16> to vector<24x32x4xbf16>
    %4 = vector.extract_strided_slice %1 {offsets = [0, 2, 0], sizes = [24, 32, 4], strides = [1, 1, 1]} : vector<24x34x4xbf16> to vector<24x32x4xbf16>
    %c0_4 = arith.constant 0 : index
    %c0_5 = arith.constant 0 : index
    %c1 = arith.constant 1 : index
    %c0_6 = arith.constant 0 : index
    %c0_7 = arith.constant 0 : index
    %5 = vector.load %arg2[%c0_4, %c0_5, %c1, %c0_6, %c0_7] : memref<1x1x26x34x4xbf16, #tpu.memory_space<vmem>>, vector<1x1x24x34x4xbf16>
    %6 = vector.shape_cast %5 : vector<1x1x24x34x4xbf16> to vector<24x34x4xbf16>
    %7 = vector.extract_strided_slice %6 {offsets = [0, 0, 0], sizes = [24, 32, 4], strides = [1, 1, 1]} : vector<24x34x4xbf16> to vector<24x32x4xbf16>
    %8 = vector.extract_strided_slice %6 {offsets = [0, 1, 0], sizes = [24, 32, 4], strides = [1, 1, 1]} : vector<24x34x4xbf16> to vector<24x32x4xbf16>
    %9 = vector.extract_strided_slice %6 {offsets = [0, 2, 0], sizes = [24, 32, 4], strides = [1, 1, 1]} : vector<24x34x4xbf16> to vector<24x32x4xbf16>
    %c0_8 = arith.constant 0 : index
    %c0_9 = arith.constant 0 : index
    %c2 = arith.constant 2 : index
    %c0_10 = arith.constant 0 : index
    %c0_11 = arith.constant 0 : index
    %10 = vector.load %arg2[%c0_8, %c0_9, %c2, %c0_10, %c0_11] : memref<1x1x26x34x4xbf16, #tpu.memory_space<vmem>>, vector<1x1x24x34x4xbf16>
    %11 = vector.shape_cast %10 : vector<1x1x24x34x4xbf16> to vector<24x34x4xbf16>
    %12 = vector.extract_strided_slice %11 {offsets = [0, 0, 0], sizes = [24, 32, 4], strides = [1, 1, 1]} : vector<24x34x4xbf16> to vector<24x32x4xbf16>
    %13 = vector.extract_strided_slice %11 {offsets = [0, 1, 0], sizes = [24, 32, 4], strides = [1, 1, 1]} : vector<24x34x4xbf16> to vector<24x32x4xbf16>
    %14 = vector.extract_strided_slice %11 {offsets = [0, 2, 0], sizes = [24, 32, 4], strides = [1, 1, 1]} : vector<24x34x4xbf16> to vector<24x32x4xbf16>
    %15 = tpu.concatenate %2, %3, %4, %7, %8, %9, %12, %13, %14 in 2 : vector<24x32x4xbf16>, vector<24x32x4xbf16>, vector<24x32x4xbf16>, vector<24x32x4xbf16>, vector<24x32x4xbf16>, vector<24x32x4xbf16>, vector<24x32x4xbf16>, vector<24x32x4xbf16>, vector<24x32x4xbf16> -> vector<24x32x36xbf16>
    %16 = vector.shape_cast %15 : vector<24x32x36xbf16> to vector<768x36xbf16>
    %c0_12 = arith.constant 0 : index
    %c0_13 = arith.constant 0 : index
    %17 = vector.load %arg3[%c0_12, %c0_13] : memref<36x128xbf16, #tpu.memory_space<vmem>>, vector<36x128xbf16>
    %cst = arith.constant dense<0.000000e+00> : vector<768x128xf32>
    %18 = tpu.matmul %16, %17, %cst {dimension_numbers = #tpu.dot_dimension_numbers<[1], [0], [0], [1], [0, 0, 1, 1], [], []>} : vector<768x36xbf16>, vector<36x128xbf16>, vector<768x128xf32> -> vector<768x128xf32>
    %c0_14 = arith.constant 0 : index
    %c0_15 = arith.constant 0 : index
    %19 = vector.load %arg4[%c0_14, %c0_15] : memref<1x128xf32, #tpu.memory_space<vmem>>, vector<1x128xf32>
    %20 = vector.broadcast %19 : vector<1x128xf32> to vector<768x128xf32>
    %21 = arith.addf %18, %20 : vector<768x128xf32>
    %c0_16 = arith.constant 0 : index
    %c0_17 = arith.constant 0 : index
    %c0_18 = arith.constant 0 : index
    %c0_19 = arith.constant 0 : index
    %22 = vector.load %arg5[%c0_16, %c0_17, %c0_18, %c0_19] : memref<1x1x768x128xf32, #tpu.memory_space<vmem>>, vector<1x1x768x128xf32>
    %23 = vector.shape_cast %22 : vector<1x1x768x128xf32> to vector<768x128xf32>
    %24 = vector.shape_cast %21 : vector<768x128xf32> to vector<1x1x768x128xf32>
    tpu.vector_store %arg5[%c0_16, %c0_17, %c0_18, %c0_19], %24 {strides = array<i32>} : memref<1x1x768x128xf32, #tpu.memory_space<vmem>>, vector<1x1x768x128xf32>,
    return
  }
  func.func @transform_0(%arg0: i32, %arg1: i32) -> (i32, i32, i32, i32, i32) {
    %c0_i32 = arith.constant 0 : i32
    %c0_i32_0 = arith.constant 0 : i32
    %c0_i32_1 = arith.constant 0 : i32
    %c0_i32_2 = arith.constant 0 : i32
    return %arg0, %arg1, %c0_i32, %c0_i32_0, %c0_i32_1 : i32, i32, i32, i32, i32
  }
  func.func @transform_1(%arg0: i32, %arg1: i32) -> (i32, i32) {
    %c0_i32 = arith.constant 0 : i32
    %c0_i32_0 = arith.constant 0 : i32
    %c0_i32_1 = arith.constant 0 : i32
    return %c0_i32, %c0_i32_0 : i32, i32
  }
  func.func @transform_2(%arg0: i32, %arg1: i32) -> (i32, i32) {
    %c0_i32 = arith.constant 0 : i32
    %c0_i32_0 = arith.constant 0 : i32
    %c0_i32_1 = arith.constant 0 : i32
    return %c0_i32, %c0_i32_0 : i32, i32
  }
  func.func @transform_3(%arg0: i32, %arg1: i32) -> (i32, i32, i32, i32) {
    %c0_i32 = arith.constant 0 : i32
    %c0_i32_0 = arith.constant 0 : i32
    %c0_i32_1 = arith.constant 0 : i32
    return %arg0, %arg1, %c0_i32, %c0_i32_0 : i32, i32, i32, i32
  }
}

</mosaic_0001>

<bundles_post_ra>
// kernel: tpu_custom_call.1
= control target key start
LH: loop header
LB: loop body
LE: loop exit
PB: predicated region body
PF: predicated region fallthrough
CT: control target
= control target key end

     0   :  { %8 = vsyncpa [#allocation3], 0  ;;  %s10251_s0 = inlined_call_operand.vmem [shape: bf16[2,1,26,34,4], index: 0, kind: input, shape index: {}]   ;;  %s10252_s1 = inlined_call_operand.vmem [shape: bf16[36,128], index: 1, kind: input, shape index: {}]   ;;  %s10253_s2 = inlined_call_operand.vmem [shape: f32[1,128], index: 2, kind: input, shape index: {}]   ;;  %s10254_s3 = inlined_call_operand.hbm [shape: f32[2,1,768,128], index: 3, kind: output, shape index: {}]  }
   0x1   :  { %10 = vsyncpa [#allocation3 + $0x1], 0  ;;  %s6779_s12 = smov 0   ;;  %s6781_s13 = smov 0  }
   0x2   :  { %s6783_s14 = smov 0   ;;  %s6785_s15 = smov 0  }
   0x3   :  { %s6787_s16 = smov 0   ;;  %s6789_s17 = smov 0  }
   0x4 LB: > { %s5581_s18 = sadd.s32 4294967295, %s6747_s17   ;;  %s5582_s19 = sadd.s32 4294967294, %s6747_s17   ;;  %s6747_s17 = sphi %s6789_s17, %s16_s17   ;;  %s6743_s16 = sphi %s6787_s16, %s10687_s16   ;;  %s6739_s15 = sphi %s6785_s15, %s10686_s15   ;;  %s6735_s14 = sphi %s6783_s14, %s10685_s14   ;;  %s6731_s13 = sphi %s6781_s13, %s10684_s13   ;;  %s6727_s12 = sphi %s6779_s12, %s10683_s12  }
   0x5   : > { %s28_s20 = sadd.s32 1, %s6743_s16  ;;  %s107_s21 = sadd.s32 1, %s6735_s14 }
   0x6   : > { %p30_p0 = scmp.ge.s32.totalorder %s28_s20, 2  ;;  %p117_p1 = scmp.ne.s32.totalorder %s6735_s14, %s6731_s13 }
   0x7   : > { %p118_p2 = scmp.eq.s32.totalorder %s5581_s18, 1  ;;  %p123_p3 = scmp.ne.s32.totalorder %s6731_s13, %s6727_s12 }
   0x8   : > { %s10689_s20 = smov (%p30_p0, %s28_s20), 0  ;;  %p124_p5 = scmp.eq.s32.totalorder %s5582_s19, 1 }
   0x9   : > { %p6819_p4 = por %p118_p2, %p117_p1  ;;  %s102_s23 = ssub.s32 %s6743_s16, %s10689_s20 }
   0xa   : > { %p5585_p6 = scmp.ge.s32.totalorder %s6747_s17, 1  ;;  %p105_p7 = scmp.eq.s32.totalorder %s102_s23, 0 }
   0xb   : > { %p6826_p8 = por %p124_p5, %p123_p3  ;;  %p160_p9 = scmp.lt.s32.totalorder %s6747_s17, 3 }
   0xc   : > { %s6832_s25 = scalar_select %p105_p7, %s6735_s14, %s107_s21  }
   0xd   : > { %p161_p10 = pnand %p5585_p6, %p160_p9 }
   0xf   : > { %164 = sbr.rel (%p161_p10) target bundleno = 1151 (0x47f), region = 32 }
  0x16   : > { %p188_p11 = scmp.lt.s32.totalorder %s6739_s15, 1  ;;  %vm872_vm0 = vsmask.f32 7424  ;;  %s6749_s4 = smov 4   ;;  %vm1449_vm1 = vcmask 1046528   ;;  %vm4966_vm2 = vcmask 1041408  }
  0x17   : > { %s6750_s5 = smov 8   ;;  %s6751_s6 = smov 12   ;;  %vm4066_vm3 = vcmask 31744   ;;  %vm4163_vm4 = vcmask 64512   ;;  %vm4260_vm5 = vcmask 97280   ;;  %vm4357_vm6 = vcmask 130048  }
  0x18   : > { %s189_s26 = scalar_select %p188_p11, %s6739_s15, 1  ;;  %vm4454_vm7 = vcmask 162816   ;;  %vm4551_vm8 = vcmask 195584   ;;  %vm4648_vm9 = vcmask 228352   ;;  %vm4745_vm10 = vcmask 261120  }
  0x19   : > { %s6752_s7 = smov 16   ;;  %s6753_s8 = smov 20   ;;  %vm4869_vm11 = vcmask 293888  }
  0x1a   : > { %s6260_s27 = smul.u32 520, %s189_s26  ;;  %s6754_s11 = smov 24  }
  0x1b   : > { %s6755_s26 = smov 28   ;;  %s185_s28 = sand.u32 1, %s6731_s13  }
  0x1c   : > { %s6839_s30 = scalar_lea.vmem %s10251_s0, %s6260_s27  ;;  %s6756_s27 = smov 32  }
  0x1d   : > { %v6326_v0 = vld [vmem:[%s6839_s30 + $0x14] sm:$0xff]   ;;  %v6327_v1 = vld [vmem:[%s6839_s30 + $0x1c] sm:$0xff]   ;;  %v6329_v6 = vld [vmem:[%s6839_s30 + $0x8] sm:$0xff]   ;;  %s9705_s29 = smul.u32 768, %s185_s28  ;;  %s10204_s19 = scalar_lea.sflag [#allocation3], %s185_s28 }
  0x1e   : > { %v894_v2 = vshrl.u32 %v6326_v0, 16  ;;  %v896_v3 = vshll.u32 %v6326_v0, 16  ;;  %v901_v4 = vshll.u32 %v6327_v1, 16  ;;  %v6328_v5 = vld [vmem:[%s6839_s30] sm:$0xff]   ;;  %v881_v12 = vshll.u32 %v6329_v6, 16  ;;  %v6332_v23 = vld [vmem:[%s6839_s30 + $0x30] sm:$0xff]  }
  0x1f   : > { %v6330_v7 = vld [vmem:[%s6839_s30 + $0x24] ss:$0 sps:$4 sm:$0x11]   ;;  %v874_v10 = vshrl.u32 %v6328_v5, 16  ;;  %v876_v11 = vshll.u32 %v6328_v5, 16  ;;  %v905_v13 = vshrl.u32 %v6327_v1, 16 }
  0x20   : > { %v898_v8 = vrot.slane %v896_v3, 1  ;;  %v903_v9 = vrot.slane %v901_v4, 1  ;;  %v909_v14 = vshll.u32 %v6330_v7, 16  ;;  %v6847_v15 = vld [vmem:[%s6839_s30 + $0x10] ss:$0 sps:$4 sm:$0x11]  }
  0x21   : > { %v878_v17 = vrot.slane %v876_v11, 1  ;;  %v885_v18 = vshrl.u32 %v6329_v6, 16  ;;  %v883_v19 = vrot.slane %v881_v12, 1  ;;  %v889_v22 = vshll.u32 %v6847_v15, 16  ;;  %v6334_v27 = vld [vmem:[%s6839_s30 + $0x28] sm:$0xff]   ;;  %v6337_v46 = vld [vmem:[%s6839_s30 + $0x3c] sm:$0xff]  }
  0x22   : > { %v899_v16 = vor.u32 %v898_v8, %v894_v2  ;;  %v907_v20 = vor.u32 %v905_v13, %v903_v9  ;;  %v911_v21 = vrot.slane %v909_v14, 1  ;;  %v6333_v26 = vld [vmem:[%s6839_s30 + $0x38] ss:$0 sps:$4 sm:$0x11]   ;;  %v921_v31 = vshll.u32 %v6332_v23, 16  ;;  %v6335_v36 = vld [vmem:[%s6839_s30 + $0x44] sm:$0xff]  }
  0x23   : > { %v879_v25 = vor.u32 %v878_v17, %v874_v10  ;;  %v887_v29 = vor.u32 %v885_v18, %v883_v19  ;;  %v891_v30 = vrot.slane %v889_v22, 1  ;;  %v925_v33 = vshrl.u32 %v6332_v23, 16  ;;  %v6336_v41 = vld [vmem:[%s6839_s30 + $0x4c] ss:$0 sps:$4 sm:$0x11]   ;;  %v6866_v53 = vld [vmem:[%s6839_s30 + $0x58] sm:$0xff]  }
  0x24   : > { %v904_v24 = vsel %vm872_vm0, %v899_v16, %v903_v9  ;;  %v912_v28 = vsel %vm872_vm0, %v907_v20, %v911_v21  ;;  %v929_v34 = vshll.u32 %v6333_v26, 16  ;;  %v914_v35 = vshrl.u32 %v6334_v27, 16  ;;  %v6869_v54 = vld [vmem:[%s6839_s30 + $0x60] ss:$0 sps:$4 sm:$0x11]   ;;  %v6872_v57 = vld [vmem:[%s6839_s30 + $0x50] sm:$0xff]  }
  0x25   : > { %1357 = vrot.lane.b32.xlu1 %v904_v24, %s6749_s4  ;;  %v884_v32 = vsel %vm872_vm0, %v879_v25, %v883_v19  ;;  %v923_v37 = vrot.slane %v921_v31, 1  ;;  %v916_v38 = vshll.u32 %v6334_v27, 16  ;;  %v892_v39 = vsel %vm872_vm0, %v887_v29, %v891_v30  ;;  %v6879_v62 = vld [vmem:[%s6839_s30 + $0x6c] sm:$0xff]   ;;  %v6886_v3 = vld [vmem:[%s6839_s30 + $0x64] sm:$0xff]   ;;  %v6908_v23 = vld [vmem:[%s6839_s30 + $0x78] sm:$0xff]   ;;  %s6757_s23 = smov [#allocation2]  }
  0x26   : > { %1353 = vrot.lane.b32.xlu0 %v884_v32, %s6749_s4  ;;  %v931_v40 = vrot.slane %v929_v34, 1  ;;  %v941_v42 = vshll.u32 %v6335_v36, 16  ;;  %v945_v43 = vshrl.u32 %v6335_v36, 16  ;;  %v949_v48 = vshll.u32 %v6336_v41, 16  ;;  %v6902_v21 = vld [vmem:[%s6839_s30 + $0x80] sm:$0xff]   ;;  %v6912_v27 = vld [vmem:[%s6839_s30 + $0x94] sm:$0xff]  }
  0x27   : > { %v927_v44 = vor.u32 %v925_v33, %v923_v37  ;;  %v918_v45 = vrot.slane %v916_v38, 1  ;;  %v934_v51 = vshrl.u32 %v6337_v46, 16  ;;  %v936_v52 = vshll.u32 %v6337_v46, 16  ;;  %v6890_v6 = vld [vmem:[%s6839_s30 + $0x74] ss:$0 sps:$4 sm:$0x11]  }
  0x28   : > { %v943_v47 = vrot.slane %v941_v42, 1  ;;  %v951_v56 = vrot.slane %v949_v48, 1  ;;  %v961_v60 = vshll.u32 %v6866_v53, 16  ;;  %v965_v61 = vshrl.u32 %v6866_v53, 16  ;;  %v6934_v48 = vld [vmem:[%s6839_s30 + $0xa8] sm:$0xff]  }
  0x29   : > { %1359 = vrot.lane.b32.xlu1 %v912_v28, %s6749_s4  ;;  %v932_v49 = vsel %vm872_vm0, %v927_v44, %v931_v40  ;;  %v919_v50 = vor.u32 %v918_v45, %v914_v35  ;;  %v938_v59 = vrot.slane %v936_v52, 1  ;;  %v969_v0 = vshll.u32 %v6869_v54, 16  ;;  %v6905_v22 = vld [vmem:[%s6839_s30 + $0x88] ss:$0 sps:$4 sm:$0x11]   ;;  %v6931_v45 = vld [vmem:[%s6839_s30 + $0x8c] sm:$0xff]  }
  0x2a   : > { %1355 = vrot.lane.b32.xlu0 %v892_v39, %s6749_s4  ;;  %v947_v55 = vor.u32 %v945_v43, %v943_v47  ;;  %v954_v1 = vshrl.u32 %v6872_v57, 16  ;;  %v956_v2 = vshll.u32 %v6872_v57, 16  ;;  %v963_v5 = vrot.slane %v961_v60, 1  ;;  %v6924_v38 = vld [vmem:[%s6839_s30 + $0x9c] ss:$0 sps:$4 sm:$0x11]  }
  0x2b   : > { %v924_v58 = vsel %vm872_vm0, %v919_v50, %v923_v37  ;;  %v939_v4 = vor.u32 %v938_v59, %v934_v51  ;;  %v971_v7 = vrot.slane %v969_v0, 1  ;;  %v981_v9 = vshll.u32 %v6879_v62, 16 }
  0x2c   : > { %v952_v63 = vsel %vm872_vm0, %v947_v55, %v951_v56  ;;  %v958_v8 = vrot.slane %v956_v2, 1  ;;  %v985_v10 = vshrl.u32 %v6879_v62, 16  ;;  %v967_v12 = vor.u32 %v965_v61, %v963_v5  ;;  %v6944_v56 = vld [vmem:[%s6839_s30 + $0xa0] sm:$0xff]  }
  0x2d   : > { %1363 = vrot.lane.b32.xlu1 %v932_v49, %s6749_s4  ;;  %v944_v11 = vsel %vm872_vm0, %v939_v4, %v943_v47  ;;  %v989_v13 = vshll.u32 %v6890_v6, 16  ;;  %v974_v14 = vshrl.u32 %v6886_v3, 16  ;;  %v983_v17 = vrot.slane %v981_v9, 1  ;;  %v6937_v49 = vld [vmem:[%s6839_s30 + $0xb0] ss:$0 sps:$4 sm:$0x11]  }
  0x2e   : > { %1361 = vrot.lane.b32.xlu0 %v924_v58, %s6749_s4  ;;  %v959_v16 = vor.u32 %v958_v8, %v954_v1  ;;  %v976_v18 = vshll.u32 %v6886_v3, 16  ;;  %v972_v19 = vsel %vm872_vm0, %v967_v12, %v971_v7  ;;  %v1001_v28 = vshll.u32 %v6902_v21, 16  ;;  %v6957_v4 = vld [vmem:[%s6839_s30 + $0xb4] sm:$0xff]  }
  0x2f   : > { %v991_v20 = vrot.slane %v989_v13, 1  ;;  %v987_v25 = vor.u32 %v985_v10, %v983_v17  ;;  %v1005_v29 = vshrl.u32 %v6902_v21, 16  ;;  %v1009_v30 = vshll.u32 %v6905_v22, 16 }
  0x30   : > { %v964_v24 = vsel %vm872_vm0, %v959_v16, %v963_v5  ;;  %v978_v26 = vrot.slane %v976_v18, 1  ;;  %v994_v31 = vshrl.u32 %v6908_v23, 16  ;;  %v996_v34 = vshll.u32 %v6908_v23, 16 }
  0x31   : > { %1367 = vrot.lane.b32.xlu1 %v952_v63, %s6749_s4  ;;  %v992_v32 = vsel %vm872_vm0, %v987_v25, %v991_v20  ;;  %v1021_v35 = vshll.u32 %v6912_v27, 16  ;;  %v1003_v36 = vrot.slane %v1001_v28, 1  ;;  %v1011_v37 = vrot.slane %v1009_v30, 1  ;;  %v6951_v63 = vld [vmem:[%s6839_s30 + $0xbc] sm:$0xff]   ;;  %v6973_v28 = vld [vmem:[%s6839_s30 + $0xd0] sm:$0xff]  }
  0x32   : > { %1365 = vrot.lane.b32.xlu0 %v944_v11, %s6749_s4  ;;  %v979_v33 = vor.u32 %v978_v26, %v974_v14  ;;  %v1025_v39 = vshrl.u32 %v6912_v27, 16  ;;  %v998_v41 = vrot.slane %v996_v34, 1  ;;  %v1029_v44 = vshll.u32 %v6924_v38, 16  ;;  %v6962_v11 = vld [vmem:[%s6839_s30 + $0xc4] ss:$0 sps:$4 sm:$0x11]  }
  0x33   : > { %v1023_v42 = vrot.slane %v1021_v35, 1  ;;  %v1007_v43 = vor.u32 %v1005_v29, %v1003_v36  ;;  %v1014_v52 = vshrl.u32 %v6931_v45, 16  ;;  %v1016_v55 = vshll.u32 %v6931_v45, 16 }
  0x34   : > { %v984_v40 = vsel %vm872_vm0, %v979_v33, %v983_v17  ;;  %v999_v46 = vor.u32 %v998_v41, %v994_v31  ;;  %v1031_v51 = vrot.slane %v1029_v44, 1  ;;  %v1041_v59 = vshll.u32 %v6934_v48, 16  ;;  %v6977_v31 = vld [vmem:[%s6839_s30 + $0xd8] ss:$0 sps:$4 sm:$0x11]   ;;  %v6992_v41 = vld [vmem:[%s6839_s30 + $0xdc] sm:$0xff]  }
  0x35   : > { %1371 = vrot.lane.b32.xlu1 %v972_v19, %s6749_s4  ;;  %v1027_v47 = vor.u32 %v1025_v39, %v1023_v42  ;;  %v1012_v50 = vsel %vm872_vm0, %v1007_v43, %v1011_v37  ;;  %v1045_v60 = vshrl.u32 %v6934_v48, 16  ;;  %v1049_v61 = vshll.u32 %v6937_v49, 16  ;;  %v6986_v37 = vld [vmem:[%s6839_s30 + $0xe4] sm:$0xff]  }
  0x36   : > { %1369 = vrot.lane.b32.xlu0 %v964_v24, %s6749_s4  ;;  %v1004_v58 = vsel %vm872_vm0, %v999_v46, %v1003_v36  ;;  %v1018_v0 = vrot.slane %v1016_v55, 1  ;;  %v1034_v1 = vshrl.u32 %v6944_v56, 16  ;;  %v1036_v2 = vshll.u32 %v6944_v56, 16  ;;  %v6983_v36 = vld [vmem:[%s6839_s30 + $0xc8] sm:$0xff]  }
  0x37   : > { %v1032_v5 = vsel %vm872_vm0, %v1027_v47, %v1031_v51  ;;  %v1043_v7 = vrot.slane %v1041_v59, 1  ;;  %v1051_v8 = vrot.slane %v1049_v61, 1  ;;  %v1061_v12 = vshll.u32 %v6951_v63, 16  ;;  %v6998_v47 = vld [vmem:[%s6839_s30 + $0xec] ss:$0 sps:$4 sm:$0x11]  }
  0x38   : > { %v1019_v9 = vor.u32 %v1018_v0, %v1014_v52  ;;  %v1038_v10 = vrot.slane %v1036_v2, 1  ;;  %v1065_v13 = vshrl.u32 %v6951_v63, 16  ;;  %v1054_v16 = vshrl.u32 %v6957_v4, 16  ;;  %v7007_v0 = vld [vmem:[%s6839_s30 + $0xf8] sm:$0xff]   ;;  %v7011_v2 = vld [vmem:[%s6839_s30 + $0xf0] sm:$0xff]  }
  0x39   : > { %1375 = vrot.lane.b32.xlu1 %v992_v32, %s6749_s4  ;;  %v1047_v14 = vor.u32 %v1045_v60, %v1043_v7  ;;  %v1056_v17 = vshll.u32 %v6957_v4, 16  ;;  %v1063_v20 = vrot.slane %v1061_v12, 1  ;;  %v1069_v24 = vshll.u32 %v6962_v11, 16  ;;  %v7016_v12 = vld [vmem:[%s6839_s30 + $0x100] ss:$0 sps:$4 sm:$0x11]  }
  0x3a   : > { %1373 = vrot.lane.b32.xlu0 %v984_v40, %s6749_s4  ;;  %v1024_v18 = vsel %vm872_vm0, %v1019_v9, %v1023_v42  ;;  %v1039_v19 = vor.u32 %v1038_v10, %v1034_v1  ;;  %v1081_v34 = vshll.u32 %v6973_v28, 16  ;;  %v1085_v35 = vshrl.u32 %v6973_v28, 16 }
  0x3b   : > { %v1052_v25 = vsel %vm872_vm0, %v1047_v14, %v1051_v8  ;;  %v1058_v26 = vrot.slane %v1056_v17, 1  ;;  %v1067_v29 = vor.u32 %v1065_v13, %v1063_v20  ;;  %v1071_v30 = vrot.slane %v1069_v24, 1 }
  0x3c   : > { %v1044_v32 = vsel %vm872_vm0, %v1039_v19, %v1043_v7  ;;  %v1089_v40 = vshll.u32 %v6977_v31, 16  ;;  %v1083_v43 = vrot.slane %v1081_v34, 1  ;;  %v1074_v44 = vshrl.u32 %v6983_v36, 16 }
  0x3d   : > { %1379 = vrot.lane.b32.xlu1 %v1012_v50, %s6749_s4  ;;  %v1059_v33 = vor.u32 %v1058_v26, %v1054_v16  ;;  %v1072_v39 = vsel %vm872_vm0, %v1067_v29, %v1071_v30  ;;  %v1076_v46 = vshll.u32 %v6983_v36, 16  ;;  %v1101_v51 = vshll.u32 %v6986_v37, 16  ;;  %v7030_v30 = vld [vmem:[%s6839_s30 + $0x114] ss:$0 sps:$4 sm:$0x11]  }
  0x3e   : > { %1377 = vrot.lane.b32.xlu0 %v1004_v58, %s6749_s4  ;;  %v1091_v50 = vrot.slane %v1089_v40, 1  ;;  %v1105_v52 = vshrl.u32 %v6986_v37, 16  ;;  %v1094_v55 = vshrl.u32 %v6992_v41, 16  ;;  %v1087_v58 = vor.u32 %v1085_v35, %v1083_v43 }
  0x3f   : > { %v1064_v42 = vsel %vm872_vm0, %v1059_v33, %v1063_v20  ;;  %v1078_v59 = vrot.slane %v1076_v46, 1  ;;  %v1109_v60 = vshll.u32 %v6998_v47, 16  ;;  %v1096_v61 = vshll.u32 %v6992_v41, 16  ;;  %v7024_v20 = vld [vmem:[%s6839_s30 + $0x10c] sm:$0xff]  }
  0x40   : > { %v1103_v1 = vrot.slane %v1101_v51, 1  ;;  %v1121_v13 = vshll.u32 %v7007_v0, 16  ;;  %v1125_v14 = vshrl.u32 %v7007_v0, 16  ;;  %v1114_v16 = vshrl.u32 %v7011_v2, 16  ;;  %v7044_v51 = vld [vmem:[%s6839_s30 + $0x120] sm:$0xff]  }
  0x41   : > { %1383 = vrot.lane.b32.xlu1 %v1032_v5, %s6749_s4  ;;  %v1092_v5 = vsel %vm872_vm0, %v1087_v58, %v1091_v50  ;;  %v1079_v7 = vor.u32 %v1078_v59, %v1074_v44  ;;  %v1111_v8 = vrot.slane %v1109_v60, 1  ;;  %v1098_v9 = vrot.slane %v1096_v61, 1  ;;  %v7051_v60 = vld [vmem:[%s6839_s30 + $0x128] ss:$0 sps:$4 sm:$0x11]  }
  0x42   : > { %1381 = vrot.lane.b32.xlu0 %v1024_v18, %s6749_s4  ;;  %v1107_v10 = vor.u32 %v1105_v52, %v1103_v1  ;;  %v1116_v19 = vshll.u32 %v7011_v2, 16  ;;  %v1123_v24 = vrot.slane %v1121_v13, 1  ;;  %v1145_v33 = vshrl.u32 %v7024_v20, 16  ;;  %v7047_v52 = vld [vmem:[%s6839_s30 + $0x118] sm:$0xff]  }
  0x43   : > { %v1084_v17 = vsel %vm872_vm0, %v1079_v7, %v1083_v43  ;;  %v1099_v18 = vor.u32 %v1098_v9, %v1094_v55  ;;  %v1149_v44 = vshll.u32 %v7030_v30, 16  ;;  %v1154_v7 = vshrl.u32 %v7047_v52, 16 }
  0x44   : > { %v1112_v26 = vsel %vm872_vm0, %v1107_v10, %v1111_v8  ;;  %v1118_v29 = vrot.slane %v1116_v19, 1  ;;  %v1127_v34 = vor.u32 %v1125_v14, %v1123_v24  ;;  %v1169_v9 = vshll.u32 %v7051_v60, 16 }
  0x45   : > { %1387 = vrot.lane.b32.xlu1 %v1052_v25, %s6749_s4  ;;  %v1129_v25 = vshll.u32 %v7016_v12, 16  ;;  %v1104_v40 = vsel %vm872_vm0, %v1099_v18, %v1103_v1  ;;  %v1151_v59 = vrot.slane %v1149_v44, 1  ;;  %v1161_v1 = vshll.u32 %v7044_v51, 16  ;;  %v7079_v44 = vld [vmem:[%s6839_s30 + $0x148] sm:$0xff]  }
  0x46   : > { %1385 = vrot.lane.b32.xlu0 %v1044_v32, %s6749_s4  ;;  %v1141_v32 = vshll.u32 %v7024_v20, 16  ;;  %v1156_v10 = vshll.u32 %v7047_v52, 16  ;;  %v1171_v18 = vrot.slane %v1169_v9, 1 }
  0x47   : > { %v1131_v35 = vrot.slane %v1129_v25, 1  ;;  %v1163_v14 = vrot.slane %v1161_v1, 1  ;;  %v7066_v25 = vld [vmem:[%s6839_s30 + $0x13c] ss:$0 sps:$4 sm:$0x11]  }
  0x48   : > { %v1143_v43 = vrot.slane %v1141_v32, 1  ;;  %v1158_v19 = vrot.slane %v1156_v10, 1 }
  0x49   : > { %1391 = vrot.lane.b32.xlu1 %v1072_v39, %s6749_s4  ;;  %v7036_v39 = vld [vmem:[%s6839_s30 + $0x104] sm:$0xff]   ;;  %v1132_v55 = vsel %vm872_vm0, %v1127_v34, %v1131_v35  ;;  %v1189_v35 = vshll.u32 %v7066_v25, 16 }
  0x4a   : > { %1389 = vrot.lane.b32.xlu0 %v1064_v42, %s6749_s4  ;;  %v1119_v42 = vor.u32 %v1118_v29, %v1114_v16  ;;  %v1134_v46 = vshrl.u32 %v7036_v39, 16  ;;  %v1136_v50 = vshll.u32 %v7036_v39, 16  ;;  %v1147_v58 = vor.u32 %v1145_v33, %v1143_v43  ;;  %v7062_v16 = vld [vmem:[%s6839_s30 + $0x134] sm:$0xff]  }
  0x4b   : > { %v1181_v32 = vshll.u32 %v7062_v16, 16  ;;  %v1185_v33 = vshrl.u32 %v7062_v16, 16  ;;  %v1159_v34 = vor.u32 %v1158_v19, %v1154_v7  ;;  %v1205_v7 = vshrl.u32 %v7079_v44, 16 }
  0x4c   : > { %v1138_v61 = vrot.slane %v1136_v50, 1  ;;  %v1124_v8 = vsel %vm872_vm0, %v1119_v42, %v1123_v24 }
  0x4d   : > { %1395 = vrot.lane.b32.xlu1 %v1092_v5, %s6749_s4  ;;  %v1165_v5 = vshrl.u32 %v7044_v51, 16  ;;  %v1164_v1 = vsel %vm872_vm0, %v1159_v34, %v1163_v14 }
  0x4e   : > { %1393 = vrot.lane.b32.xlu0 %v1084_v17, %s6749_s4  ;;  %v1139_v13 = vor.u32 %v1138_v61, %v1134_v46  ;;  %v1152_v17 = vsel %vm872_vm0, %v1147_v58, %v1151_v59  ;;  %v1183_v46 = vrot.slane %v1181_v32, 1  ;;  %v1201_v59 = vshll.u32 %v7079_v44, 16  ;;  %v7088_v61 = vld [vmem:[%s6839_s30 + $0x140] sm:$0xff]  }
  0x4f   : > { %v1167_v29 = vor.u32 %v1165_v5, %v1163_v14  ;;  %10288 = vst [vmem:[#allocation6_spill] sm:$0xff] %v7088_v61  ;;  %v7101_v14 = vld [vmem:[%s6839_s30 + $0x164] ss:$0 sps:$4 sm:$0x11]  }
  0x50   : > { %v1144_v24 = vsel %vm872_vm0, %v1139_v13, %v1143_v43  ;;  %v7083_v43 = vld [vmem:[%s6839_s30 + $0x150] ss:$0 sps:$4 sm:$0x11]   ;;  %v1187_v5 = vor.u32 %v1185_v33, %v1183_v46  ;;  %v1203_v10 = vrot.slane %v1201_v59, 1  ;;  %v1194_v13 = vshrl.u32 %v7088_v61, 16  ;;  %10290 = vst [vmem:[#allocation8_spill] sm:$0xff] %v7101_v14 }
  0x51   : > { %1399 = vrot.lane.b32.xlu1 %v1112_v26, %s6749_s4  ;;  %v7069_v26 = vld [vmem:[%s6839_s30 + $0x12c] sm:$0xff]   ;;  %10287 = vst [vmem:[#allocation5_spill] sm:$0xff] %v7083_v43  ;;  %v1172_v50 = vsel %vm872_vm0, %v1167_v29, %v1171_v18  ;;  %v7097_v18 = vld [vmem:[%s6839_s30 + $0x15c] sm:$0xff]  }
  0x52   : > { %1397 = vrot.lane.b32.xlu0 %v1104_v40, %s6749_s4  ;;  %v1174_v40 = vshrl.u32 %v7069_v26, 16  ;;  %v1176_v42 = vshll.u32 %v7069_v26, 16  ;;  %10289 = vst [vmem:[#allocation7_spill] sm:$0xff] %v7097_v18  ;;  %v1207_v29 = vor.u32 %v1205_v7, %v1203_v10  ;;  %v1221_v33 = vshll.u32 %v7097_v18, 16 }
  0x53   : > { %v1225_v34 = vshrl.u32 %v7097_v18, 16 }
  0x54   : > { %v1178_v58 = vrot.slane %v1176_v42, 1  ;;  %v7112_v42 = vld [vmem:[%s6839_s30 + $0x170] sm:$0xff]   ;;  %v1223_v59 = vrot.slane %v1221_v33, 1 }
  0x55   : > { %1403 = vrot.lane.b32.xlu1 %v1132_v55, %s6749_s4  ;;  %v1191_v55 = vrot.slane %v1189_v35, 1  ;;  %v1229_v35 = vshll.u32 %v7101_v14, 16  ;;  %10292 = vst [vmem:[#allocation10_spill] sm:$0xff] %v7112_v42 }
  0x56   : > { %1401 = vrot.lane.b32.xlu0 %v1124_v8, %s6749_s4  ;;  %v1209_v8 = vshll.u32 %v7083_v43, 16  ;;  %v1179_v9 = vor.u32 %v1178_v58, %v1174_v40  ;;  %v7109_v40 = vld [vmem:[%s6839_s30 + $0x154] sm:$0xff]   ;;  %v1227_v14 = vor.u32 %v1225_v34, %v1223_v59 }
  0x57   : > { %10291 = vst [vmem:[#allocation9_spill] sm:$0xff] %v7109_v40  ;;  %v1216_v7 = vshll.u32 %v7109_v40, 16 }
  0x58   : > { %v1211_v19 = vrot.slane %v1209_v8, 1  ;;  %v7122_v8 = vld [vmem:[%s6839_s30 + $0x178] ss:$0 sps:$4 sm:$0x11]  }
  0x59   : > { %1407 = vrot.lane.b32.xlu1 %v1152_v17, %s6749_s4  ;;  %v1196_v17 = vshll.u32 %v7088_v61, 16  ;;  %10294 = vst [vmem:[#allocation12_spill] sm:$0xff] %v7122_v8 }
  0x5a   : > { %1405 = vrot.lane.b32.xlu0 %v1144_v24, %s6749_s4  ;;  %v1192_v24 = vsel %vm872_vm0, %v1187_v5, %v1191_v55  ;;  %v7116_v55 = vld [vmem:[%s6839_s30 + $0x168] sm:$0xff]   ;;  %v1231_v5 = vrot.slane %v1229_v35, 1 }
  0x5b   : > { %v1198_v32 = vrot.slane %v1196_v17, 1  ;;  %10293 = vst [vmem:[#allocation11_spill] sm:$0xff] %v7116_v55  ;;  %v1212_v17 = vsel %vm872_vm0, %v1207_v29, %v1211_v19  ;;  %v1236_v33 = vshll.u32 %v7116_v55, 16  ;;  %v7133_v19 = vld [vmem:[%s6839_s30 + $0x184] sm:$0xff]  }
  0x5c   : > { %10295 = vst [vmem:[#allocation13_spill] sm:$0xff] %v7133_v19 }
  0x5d   : > { %1411 = vrot.lane.b32.xlu1 %v1172_v50, %s6749_s4  ;;  %v1184_v50 = vsel %vm872_vm0, %v1179_v9, %v1183_v46  ;;  %v1199_v58 = vor.u32 %v1198_v32, %v1194_v13  ;;  %v1241_v46 = vshll.u32 %v7112_v42, 16  ;;  %v1245_v9 = vshrl.u32 %v7112_v42, 16 }
  0x5e   : > { %1409 = vrot.lane.b32.xlu0 %v1164_v1, %s6749_s4  ;;  %v1214_v1 = vshrl.u32 %v7109_v40, 16  ;;  %v1218_v13 = vrot.slane %v1216_v7, 1  ;;  %v1234_v32 = vshrl.u32 %v7116_v55, 16  ;;  %v1238_v42 = vrot.slane %v1236_v33, 1  ;;  %v7140_v7 = vld [vmem:[%s6839_s30 + $0x17c] sm:$0xff]  }
  0x5f   : > { %v1204_v35 = vsel %vm872_vm0, %v1199_v58, %v1203_v10  ;;  %v1243_v40 = vrot.slane %v1241_v46, 1  ;;  %10297 = vst [vmem:[#allocation15_spill] sm:$0xff] %v7140_v7  ;;  %v1261_v10 = vshll.u32 %v7133_v19, 16  ;;  %v1265_v58 = vshrl.u32 %v7133_v19, 16 }
  0x60   : > { %v1219_v29 = vor.u32 %v1218_v13, %v1214_v1  ;;  %v1239_v13 = vor.u32 %v1238_v42, %v1234_v32  ;;  %v1256_v33 = vshll.u32 %v7140_v7, 16  ;;  %v7164_v32 = vld [vmem:[%s6839_s30 + $0x1ac] sm:$0xff]  }
  0x61   : > { %1415 = vrot.lane.b32.xlu1 %v1192_v24, %s6749_s4  ;;  %v1249_v24 = vshll.u32 %v7122_v8, 16  ;;  %v1232_v8 = vsel %vm872_vm0, %v1227_v14, %v1231_v5  ;;  %v1247_v55 = vor.u32 %v1245_v9, %v1243_v40  ;;  %v7151_v14 = vld [vmem:[%s6839_s30 + $0x198] sm:$0xff]   ;;  %v7154_v5 = vld [vmem:[%s6839_s30 + $0x190] sm:$0xff]  }
  0x62   : > { %1413 = vrot.lane.b32.xlu0 %v1184_v50, %s6749_s4  ;;  %v7137_v50 = vld [vmem:[%s6839_s30 + $0x18c] ss:$0 sps:$4 sm:$0x11]   ;;  %v1224_v46 = vsel %vm872_vm0, %v1219_v29, %v1223_v59  ;;  %10298 = vst [vmem:[#allocation16_spill] sm:$0xff] %v7151_v14  ;;  %10299 = vst [vmem:[#allocation17_spill] sm:$0xff] %v7154_v5  ;;  %v1258_v18 = vrot.slane %v1256_v33, 1 }
  0x63   : > { %v1251_v34 = vrot.slane %v1249_v24, 1  ;;  %10296 = vst [vmem:[#allocation14_spill] sm:$0xff] %v7137_v50  ;;  %v1269_v1 = vshll.u32 %v7137_v50, 16  ;;  %v1263_v24 = vrot.slane %v1261_v10, 1  ;;  %v1281_v42 = vshll.u32 %v7151_v14, 16 }
  0x64   : > { %v7159_v50 = vld [vmem:[%s6839_s30 + $0x1a0] ss:$0 sps:$4 sm:$0x11]   ;;  %v1285_v59 = vshrl.u32 %v7151_v14, 16  ;;  %v1244_v10 = vsel %vm872_vm0, %v1239_v13, %v1243_v40  ;;  %v1301_v33 = vshll.u32 %v7164_v32, 16 }
  0x65   : > { %1419 = vrot.lane.b32.xlu1 %v1212_v17, %s6749_s4  ;;  %v1254_v17 = vshrl.u32 %v7140_v7, 16  ;;  %v1252_v9 = vsel %vm872_vm0, %v1247_v55, %v1251_v34  ;;  %10300 = vst [vmem:[#allocation18_spill] sm:$0xff] %v7159_v50  ;;  %v1267_v19 = vor.u32 %v1265_v58, %v1263_v24  ;;  %v1289_v29 = vshll.u32 %v7159_v50, 16  ;;  %v7171_v34 = vld [vmem:[%s6839_s30 + $0x1a4] sm:$0xff]  }
  0x66   : > { %1417 = vrot.lane.b32.xlu0 %v1204_v35, %s6749_s4  ;;  %v1271_v35 = vrot.slane %v1269_v1, 1  ;;  %v1276_v55 = vshll.u32 %v7154_v5, 16  ;;  %v1283_v1 = vrot.slane %v1281_v42, 1  ;;  %v7177_v7 = vld [vmem:[%s6839_s30 + $0x1b4] ss:$0 sps:$4 sm:$0x11]  }
  0x67   : > { %v1259_v58 = vor.u32 %v1258_v18, %v1254_v17  ;;  %v1291_v14 = vrot.slane %v1289_v29, 1  ;;  %v1305_v50 = vshrl.u32 %v7164_v32, 16  ;;  %v1303_v43 = vrot.slane %v1301_v33, 1  ;;  %v7187_v42 = vld [vmem:[%s6839_s30 + $0x1c0] sm:$0xff]  }
  0x68   : > { %v1287_v61 = vor.u32 %v1285_v59, %v1283_v1  ;;  %v1294_v40 = vshrl.u32 %v7171_v34, 16  ;;  %v1309_v17 = vshll.u32 %v7177_v7, 16  ;;  %v1296_v13 = vshll.u32 %v7171_v34, 16  ;;  %10301 = vst [vmem:[#allocation19_spill] sm:$0xff] %v7187_v42 }
  0x69   : > { %1423 = vrot.lane.b32.xlu1 %v1232_v8, %s6749_s4  ;;  %v1274_v8 = vshrl.u32 %v7154_v5, 16  ;;  %v1272_v5 = vsel %vm872_vm0, %v1267_v19, %v1271_v35  ;;  %v7190_v29 = vld [vmem:[%s6839_s30 + $0x1c8] ss:$0 sps:$4 sm:$0x11]   ;;  %v1307_v19 = vor.u32 %v1305_v50, %v1303_v43 }
  0x6a   : > { %1421 = vrot.lane.b32.xlu0 %v1224_v46, %s6749_s4  ;;  %v1278_v46 = vrot.slane %v1276_v55, 1  ;;  %10302 = vst [vmem:[#allocation20_spill] sm:$0xff] %v7190_v29  ;;  %v1311_v35 = vrot.slane %v1309_v17, 1  ;;  %v1298_v59 = vrot.slane %v1296_v13, 1  ;;  %v1292_v55 = vsel %vm872_vm0, %v1287_v61, %v1291_v14 }
  0x6b   : > { %v1329_v33 = vshll.u32 %v7190_v29, 16  ;;  %v7210_v13 = vld [vmem:[%s6839_s30 + $0x1dc] ss:$0 sps:$4 sm:$0x11]  }
  0x6c   : > { %v1279_v18 = vor.u32 %v1278_v46, %v1274_v8  ;;  %v1321_v8 = vshll.u32 %v7187_v42, 16  ;;  %v1299_v50 = vor.u32 %v1298_v59, %v1294_v40  ;;  %v1312_v14 = vsel %vm872_vm0, %v1307_v19, %v1311_v35 }
  0x6d   : > { %1427 = vrot.lane.b32.xlu1 %v1252_v9, %s6749_s4  ;;  %v1264_v9 = vsel %vm872_vm0, %v1259_v58, %v1263_v24  ;;  %v7198_v24 = vld [vmem:[%s6839_s30 + $0x1b8] sm:$0xff]  }
  0x6e   : > { %1425 = vrot.lane.b32.xlu0 %v1244_v10, %s6749_s4  ;;  %v1325_v10 = vshrl.u32 %v7187_v42, 16  ;;  %10303 = vst [vmem:[#allocation21_spill] sm:$0xff] %v7198_v24  ;;  %v1284_v58 = vsel %vm872_vm0, %v1279_v18, %v1283_v1  ;;  %v1323_v46 = vrot.slane %v1321_v8, 1  ;;  %v1314_v17 = vshrl.u32 %v7198_v24, 16  ;;  %v7214_v42 = vld [vmem:[%s6839_s30 + $0x1cc] sm:$0xff]  }
  0x6f   : > { %v1316_v61 = vshll.u32 %v7198_v24, 16  ;;  %v1331_v1 = vrot.slane %v1329_v33, 1  ;;  %v1349_v8 = vshll.u32 %v7210_v13, 16  ;;  %v1304_v19 = vsel %vm872_vm0, %v1299_v50, %v1303_v43  ;;  %v6545_v50 = vld [vmem:[%s6839_s30 + $0x8] sm:$0xff]  }
  0x70   : > { %v1334_v24 = vshrl.u32 %v7214_v42, 16 }
  0x71   : > { %1431 = vrot.lane.b32.xlu1 %v1272_v5, %s6749_s4  ;;  %v7203_v5 = vld [vmem:[%s6839_s30 + $0x1d4] sm:$0xff]   ;;  %v1318_v18 = vrot.slane %v1316_v61, 1 }
  0x72   : > { %1429 = vrot.lane.b32.xlu0 %v1264_v9, %s6749_s4  ;;  %10304 = vst [vmem:[#allocation22_spill] sm:$0xff] %v7203_v5  ;;  %v1341_v29 = vshll.u32 %v7203_v5, 16  ;;  %v1327_v9 = vor.u32 %v1325_v10, %v1323_v46  ;;  %v1345_v40 = vshrl.u32 %v7203_v5, 16  ;;  %v1351_v5 = vrot.slane %v1349_v8, 1 }
  0x73   : > { %v1319_v35 = vor.u32 %v1318_v18, %v1314_v17  ;;  %v1451_v17 = vrot.slane %v6545_v50, 1 }
  0x74   : > { %v1343_v59 = vrot.slane %v1341_v29, 1  ;;  %v1332_v33 = vsel %vm872_vm0, %v1327_v9, %v1331_v1  ;;  %v6546_v1 = vld [vmem:[%s6839_s30] sm:$0xff]  }
  0x75   : > { %1435 = vrot.lane.b32.xlu1 %v1292_v55, %s6749_s4  ;;  %v1336_v55 = vshll.u32 %v7214_v42, 16  ;;  %v1324_v29 = vsel %vm872_vm0, %v1319_v35, %v1323_v46  ;;  %v1450_v18 = vrot.slane %v6546_v1, 1  ;;  %v6547_v46 = vld [vmem:[%s6839_s30 + $0x1c] sm:$0xff]   ;;  %v6550_v35 = vld [vmem:[%s6839_s30 + $0x30] sm:$0xff]  }
  0x76   : > { %1433 = vrot.lane.b32.xlu0 %v1284_v58, %s6749_s4  ;;  %v1347_v61 = vor.u32 %v1345_v40, %v1343_v59  ;;  %v6548_v40 = vld [vmem:[%s6839_s30 + $0x24] ss:$0 sps:$4 sm:$0x11]  }
  0x77   : > { %v1338_v10 = vrot.slane %v1336_v55, 1  ;;  %v1458_v8 = vrot.slane %v6548_v40, 1  ;;  %v6549_v55 = vld [vmem:[%s6839_s30 + $0x14] sm:$0xff]   ;;  %v1471_v40 = vrot.slane %v6866_v53, 1 }
  0x78   : > { %v1352_v43 = vsel %vm872_vm0, %v1347_v61, %v1351_v5  ;;  %v1456_v5 = vrot.slane %v6547_v46, 1 }
  0x79   : > { %1439 = vrot.lane.b32.xlu1 %v1312_v14, %s6749_s4  ;;  %v1339_v58 = vor.u32 %v1338_v10, %v1334_v24  ;;  %v1453_v14 = vrot.slane %v6847_v15, 1  ;;  %v1452_v15 = vsel %vm1449_vm1, %v1450_v18, %v1451_v17  ;;  %v1461_v10 = vrot.slane %v6550_v35, 1 }
  0x7a   : > { %1437 = vrot.lane.b32.xlu0 %v1304_v19, %s6749_s4  ;;  %v1459_v19 = vsel %vm1449_vm1, %v1456_v5, %v1458_v8  ;;  %v1473_v8 = vrot.slane %v6869_v54, 1  ;;  %v1478_v35 = vrot.slane %v6890_v6, 1  ;;  %v1475_v54 = vrot.slane %v6886_v3, 1 }
  0x7b   : > { %v1344_v9 = vsel %vm872_vm0, %v1339_v58, %v1343_v59  ;;  %v1454_v24 = vsel %vm1449_vm1, %v1451_v17, %v1453_v14  ;;  %v1455_v59 = vrot.slane %v6549_v55, 1  ;;  %v6552_v58 = vld [vmem:[%s6839_s30 + $0x28] sm:$0xff]   ;;  %v1470_v55 = vrot.slane %v6872_v57, 1 }
  0x7c   : > { %v6553_v17 = vld [vmem:[%s6839_s30 + $0x44] sm:$0xff]   ;;  %v1481_v57 = vrot.slane %v6902_v21, 1  ;;  %v1480_v6 = vrot.slane %v6908_v23, 1  ;;  %v1488_v21 = vrot.slane %v6924_v38, 1  ;;  %v1491_v23 = vrot.slane %v6934_v48, 1 }
  0x7d   : > { %1443 = vrot.lane.b32.xlu1 %v1332_v33, %s6749_s4  ;;  %v6551_v33 = vld [vmem:[%s6839_s30 + $0x38] ss:$0 sps:$4 sm:$0x11]   ;;  %v1466_v14 = vrot.slane %v6553_v17, 1  ;;  %v1472_v53 = vsel %vm1449_vm1, %v1470_v55, %v1471_v40  ;;  %v1498_v48 = vrot.slane %v6962_v11, 1  ;;  %v1500_v11 = vrot.slane %v6983_v36, 1 }
  0x7e   : > { %1441 = vrot.lane.b32.xlu0 %v1324_v29, %s6749_s4  ;;  %v1463_v61 = vrot.slane %v6551_v33, 1  ;;  %v1457_v29 = vsel %vm1449_vm1, %v1455_v59, %v1456_v5  ;;  %v1474_v59 = vsel %vm1449_vm1, %v1471_v40, %v1473_v8  ;;  %v1483_v33 = vrot.slane %v6905_v22, 1 }
  0x7f   : > { %v1501_v40 = vrot.slane %v6973_v28, 1  ;;  %v1508_v28 = vrot.slane %v6998_v47, 1  ;;  %v1510_v47 = vrot.slane %v7011_v2, 1 }
  0x80   : > { %v1464_v50 = vsel %vm1449_vm1, %v1461_v10, %v1463_v61  ;;  %v1484_v3 = vsel %vm1449_vm1, %v1481_v57, %v1483_v33 }
  0x81   : > { %1447 = vrot.lane.b32.xlu1 %v1352_v43, %s6749_s4  ;;  %v1460_v43 = vrot.slane %v6552_v58, 1  ;;  %v1486_v58 = vrot.slane %v6912_v27, 1  ;;  %v1490_v27 = vrot.slane %v6944_v56, 1 }
  0x82   : > { %1445 = vrot.lane.b32.xlu0 %v1344_v9, %s6749_s4  ;;  %v6554_v9 = vld [vmem:[%s6839_s30 + $0x4c] ss:$0 sps:$4 sm:$0x11]  }
  0x83   : > { %v1468_v1 = vrot.slane %v6554_v9, 1  ;;  %v1462_v18 = vsel %vm1449_vm1, %v1460_v43, %v1461_v10  ;;  %v1485_v43 = vrot.slane %v6931_v45, 1  ;;  %v1489_v38 = vsel %vm1449_vm1, %v1486_v58, %v1488_v21 }
  0x84   : > { %v1521_v21 = vrot.slane %v7044_v51, 1  ;;  %v1528_v51 = vrot.slane %v7066_v25, 1 }
  0x85   : > { %1572 = vrot.lane.b32.xlu1 %v1454_v24, %s6750_s5  ;;  %v6555_v24 = vld [vmem:[%s6839_s30 + $0x3c] sm:$0xff]   ;;  %v1469_v5 = vsel %vm1449_vm1, %v1466_v14, %v1468_v1  ;;  %v1487_v45 = vsel %vm1449_vm1, %v1485_v43, %v1486_v58 }
  0x86   : > { %1570 = vrot.lane.b32.xlu0 %v1452_v15, %s6750_s5  ;;  %v1465_v46 = vrot.slane %v6555_v24, 1 }
  0x88   : > { %v1467_v15 = vsel %vm1449_vm1, %v1465_v46, %v1466_v14  ;;  %v1493_v14 = vrot.slane %v6937_v49, 1  ;;  %v1495_v49 = vrot.slane %v6957_v4, 1  ;;  %v1492_v46 = vsel %vm1449_vm1, %v1490_v27, %v1491_v23 }
  0x89   : > { %1576 = vrot.lane.b32.xlu1 %v1459_v19, %s6750_s5  ;;  %v1476_v19 = vrot.slane %v6879_v62, 1 }
  0x8a   : > { %1574 = vrot.lane.b32.xlu0 %v1457_v29, %s6750_s5  ;;  %v1494_v56 = vsel %vm1449_vm1, %v1491_v23, %v1493_v14  ;;  %v1526_v14 = vrot.slane %v7062_v16, 1 }
  0x8b   : > { %v1479_v10 = vsel %vm1449_vm1, %v1476_v19, %v1478_v35  ;;  %v1477_v62 = vsel %vm1449_vm1, %v1475_v54, %v1476_v19  ;;  %v1502_v35 = vsel %vm1449_vm1, %v1500_v11, %v1501_v40  ;;  %v1511_v54 = vrot.slane %v7007_v0, 1  ;;  %v10329_v11 = vld [vmem:[#allocation7_spill] sm:$0xff] }
  0x8c   : > { %v1518_v0 = vrot.slane %v7030_v30, 1  ;;  %v1520_v30 = vrot.slane %v7047_v52, 1  ;;  %v1529_v25 = vsel %vm1449_vm1, %v1526_v14, %v1528_v51 }
  0x8d   : > { %1580 = vrot.lane.b32.xlu1 %v1464_v50, %s6750_s5  ;;  %v1482_v50 = vsel %vm1449_vm1, %v1480_v6, %v1481_v57 }
  0x8e   : > { %1578 = vrot.lane.b32.xlu0 %v1462_v18, %s6750_s5  ;;  %v1496_v18 = vrot.slane %v6951_v63, 1  ;;  %v1503_v63 = vrot.slane %v6977_v31, 1  ;;  %v1505_v31 = vrot.slane %v6992_v41, 1 }
  0x90   : > { %v1499_v4 = vsel %vm1449_vm1, %v1496_v18, %v1498_v48  ;;  %v1504_v36 = vsel %vm1449_vm1, %v1501_v40, %v1503_v63  ;;  %v10325_v48 = vld [vmem:[#allocation5_spill] sm:$0xff] }
  0x91   : > { %1584 = vrot.lane.b32.xlu1 %v1469_v5, %s6750_s5  ;;  %v1533_v16 = vrot.slane %v10325_v48, 1  ;;  %v10344_v48 = vld [vmem:[#allocation16_spill] sm:$0xff] }
  0x92   : > { %1582 = vrot.lane.b32.xlu0 %v1467_v15, %s6750_s5  ;;  %v1497_v15 = vsel %vm1449_vm1, %v1495_v49, %v1496_v18  ;;  %v1531_v18 = vrot.slane %v7079_v44, 1  ;;  %v1536_v44 = vrot.slane %v10329_v11, 1 }
  0x94   : > { %v1534_v63 = vsel %vm1449_vm1, %v1531_v18, %v1533_v16  ;;  %v1551_v16 = vrot.slane %v10344_v48, 1 }
  0x95   : > { %1588 = vrot.lane.b32.xlu1 %v1474_v59, %s6750_s5  ;;  %v1506_v59 = vrot.slane %v6986_v37, 1  ;;  %v1513_v37 = vrot.slane %v7016_v12, 1  ;;  %v1515_v12 = vrot.slane %v7036_v39, 1 }
  0x96   : > { %1586 = vrot.lane.b32.xlu0 %v1472_v53, %s6750_s5 }
  0x97   : > { %v7273_v61 = vpop.permute.xlu1 %1357  ;;  %v1509_v41 = vsel %vm1449_vm1, %v1506_v59, %v1508_v28  ;;  %v1507_v57 = vsel %vm1449_vm1, %v1505_v31, %v1506_v59  ;;  %v1514_v2 = vsel %vm1449_vm1, %v1511_v54, %v1513_v37  ;;  %v10332_v31 = vld [vmem:[#allocation9_spill] sm:$0xff]  ;;  %v10334_v37 = vld [vmem:[#allocation10_spill] sm:$0xff] }
  0x98   : > { %10305 = vst [vmem:[#allocation23_spill] sm:$0xff] %v7273_v61  ;;  %v7277_v29 = vpop.permute.xlu0 %1353  ;;  %v7801_v61 = vld [vmem:[%s6839_s30 + $0x1cc] sm:$0xff]  }
  0x99   : > { %10306 = vst [vmem:[#allocation24_spill] sm:$0xff] %v7277_v29  ;;  %1592 = vrot.lane.b32.xlu1 %v1479_v10, %s6750_s5  ;;  %10410 = vst [vmem:[#allocation92_spill] sm:$0xff] %v7801_v61  ;;  %v7815_v29 = vld [vmem:[%s6839_s30 + $0x4c] ss:$0 sps:$4 sm:$0x11]  }
  0x9a   : > { %1590 = vrot.lane.b32.xlu0 %v1477_v62, %s6750_s5  ;;  %v1516_v62 = vrot.slane %v7024_v20, 1  ;;  %v1523_v20 = vrot.slane %v7051_v60, 1  ;;  %v1525_v60 = vrot.slane %v7069_v26, 1  ;;  %10412 = vst [vmem:[#allocation94_spill] sm:$0xff] %v7815_v29 }
  0x9b   : > { %v7284_v22 = vpop.permute.xlu1 %1359 }
  0x9c   : > { %10307 = vst [vmem:[#allocation25_spill] sm:$0xff] %v7284_v22  ;;  %v7288_v17 = vpop.permute.xlu0 %1355  ;;  %v1519_v39 = vsel %vm1449_vm1, %v1516_v62, %v1518_v0  ;;  %v1524_v52 = vsel %vm1449_vm1, %v1521_v21, %v1523_v20  ;;  %v1527_v49 = vsel %vm1449_vm1, %v1525_v60, %v1526_v14  ;;  %v10339_v20 = vld [vmem:[#allocation13_spill] sm:$0xff]  ;;  %v10342_v60 = vld [vmem:[#allocation15_spill] sm:$0xff] }
  0x9d   : > { %10308 = vst [vmem:[#allocation26_spill] sm:$0xff] %v7288_v17  ;;  %1596 = vrot.lane.b32.xlu1 %v1484_v3, %s6750_s5  ;;  %v1512_v3 = vsel %vm1449_vm1, %v1510_v47, %v1511_v54  ;;  %v1541_v47 = vrot.slane %v10334_v37, 1 }
  0x9e   : > { %1594 = vrot.lane.b32.xlu0 %v1482_v50, %s6750_s5  ;;  %v1517_v50 = vsel %vm1449_vm1, %v1515_v12, %v1516_v62  ;;  %v10337_v12 = vld [vmem:[#allocation11_spill] sm:$0xff] }
  0x9f   : > { %v7296_v9 = vpop.permute.xlu1 %1363 }
  0xa0   : > { %10309 = vst [vmem:[#allocation27_spill] sm:$0xff] %v7296_v9  ;;  %v7299_v1 = vpop.permute.xlu0 %1361 }
  0xa1   : > { %10310 = vst [vmem:[#allocation28_spill] sm:$0xff] %v7299_v1  ;;  %1600 = vrot.lane.b32.xlu1 %v1489_v38, %s6750_s5  ;;  %v1522_v38 = vsel %vm1449_vm1, %v1520_v30, %v1521_v21  ;;  %v1546_v30 = vrot.slane %v10339_v20, 1 }
  0xa2   : > { %1598 = vrot.lane.b32.xlu0 %v1487_v45, %s6750_s5 }
  0xa3   : > { %v7307_v24 = vpop.permute.xlu1 %1367 }
  0xa4   : > { %10311 = vst [vmem:[#allocation29_spill] sm:$0xff] %v7307_v24  ;;  %v7310_v5 = vpop.permute.xlu0 %1365 }
  0xa5   : > { %10312 = vst [vmem:[#allocation30_spill] sm:$0xff] %v7310_v5  ;;  %1604 = vrot.lane.b32.xlu1 %v1494_v56, %s6750_s5  ;;  %v10327_v56 = vld [vmem:[#allocation6_spill] sm:$0xff]  ;;  %v7748_v5 = vld [vmem:[%s6839_s30 + $0x190] sm:$0xff]  }
  0xa6   : > { %1602 = vrot.lane.b32.xlu0 %v1492_v46, %s6750_s5  ;;  %v1530_v46 = vrot.slane %v10327_v56, 1 }
  0xa7   : > { %v7318_v8 = vpop.permute.xlu1 %1371 }
  0xa8   : > { %10313 = vst [vmem:[#allocation31_spill] sm:$0xff] %v7318_v8  ;;  %v7321_v55 = vpop.permute.xlu0 %1369  ;;  %v1532_v28 = vsel %vm1449_vm1, %v1530_v46, %v1531_v18 }
  0xa9   : > { %10314 = vst [vmem:[#allocation32_spill] sm:$0xff] %v7321_v55  ;;  %1608 = vrot.lane.b32.xlu1 %v1499_v4, %s6750_s5  ;;  %v10330_v4 = vld [vmem:[#allocation8_spill] sm:$0xff] }
  0xaa   : > { %1606 = vrot.lane.b32.xlu0 %v1497_v15, %s6750_s5  ;;  %v1538_v15 = vrot.slane %v10330_v4, 1  ;;  %v7720_v55 = vld [vmem:[%s6839_s30 + $0x168] sm:$0xff]  }
  0xab   : > { %v7329_v19 = vpop.permute.xlu1 %1375 }
  0xac   : > { %10315 = vst [vmem:[#allocation33_spill] sm:$0xff] %v7329_v19  ;;  %v7332_v53 = vpop.permute.xlu0 %1373  ;;  %v1539_v54 = vsel %vm1449_vm1, %v1536_v44, %v1538_v15  ;;  %v1556_v15 = vrot.slane %v7164_v32, 1 }
  0xad   : > { %10316 = vst [vmem:[#allocation34_spill] sm:$0xff] %v7332_v53  ;;  %1612 = vrot.lane.b32.xlu1 %v1504_v36, %s6750_s5  ;;  %v1535_v36 = vrot.slane %v10332_v31, 1  ;;  %v7678_v53 = vld [vmem:[%s6839_s30 + $0x12c] sm:$0xff]  }
  0xae   : > { %1610 = vrot.lane.b32.xlu0 %v1502_v35, %s6750_s5 }
  0xaf   : > { %v7340_v10 = vpop.permute.xlu1 %1379  ;;  %v1537_v0 = vsel %vm1449_vm1, %v1535_v36, %v1536_v44 }
  0xb0   : > { %10317 = vst [vmem:[#allocation35_spill] sm:$0xff] %v7340_v10  ;;  %v7343_v33 = vpop.permute.xlu0 %1377 }
  0xb1   : > { %10318 = vst [vmem:[#allocation36_spill] sm:$0xff] %v7343_v33  ;;  %1616 = vrot.lane.b32.xlu1 %v1509_v41, %s6750_s5  ;;  %v10335_v41 = vld [vmem:[#allocation12_spill] sm:$0xff] }
  0xb2   : > { %1614 = vrot.lane.b32.xlu0 %v1507_v57, %s6750_s5  ;;  %v1543_v57 = vrot.slane %v10335_v41, 1  ;;  %v10351_v41 = vld [vmem:[#allocation19_spill] sm:$0xff]  ;;  %v7643_v33 = vld [vmem:[%s6839_s30 + $0x10c] sm:$0xff]  }
  0xb3   : > { %v7351_v6 = vpop.permute.xlu1 %1383 }
  0xb4   : > { %10319 = vst [vmem:[#allocation37_spill] sm:$0xff] %v7351_v6  ;;  %v7354_v58 = vpop.permute.xlu0 %1381  ;;  %v1544_v21 = vsel %vm1449_vm1, %v1541_v47, %v1543_v57  ;;  %v1561_v57 = vrot.slane %v10351_v41, 1 }
  0xb5   : > { %10320 = vst [vmem:[#allocation38_spill] sm:$0xff] %v7354_v58  ;;  %1620 = vrot.lane.b32.xlu1 %v1514_v2, %s6750_s5  ;;  %v1540_v2 = vrot.slane %v10337_v12, 1  ;;  %v7629_v58 = vld [vmem:[%s6839_s30 + $0xf8] sm:$0xff]  }
  0xb6   : > { %1618 = vrot.lane.b32.xlu0 %v1512_v3, %s6750_s5 }
  0xb7   : > { %v7362_v43 = vpop.permute.xlu1 %1387  ;;  %v1542_v51 = vsel %vm1449_vm1, %v1540_v2, %v1541_v47  ;;  %v10354_v2 = vld [vmem:[#allocation21_spill] sm:$0xff] }
  0xb8   : > { %10321 = vst [vmem:[#allocation39_spill] sm:$0xff] %v7362_v43  ;;  %v7365_v23 = vpop.permute.xlu0 %1385  ;;  %v7608_v43 = vld [vmem:[%s6839_s30 + $0xc8] sm:$0xff]  }
  0xb9   : > { %10322 = vst [vmem:[#allocation40_spill] sm:$0xff] %v7365_v23  ;;  %1624 = vrot.lane.b32.xlu1 %v1519_v39, %s6750_s5  ;;  %v10340_v39 = vld [vmem:[#allocation14_spill] sm:$0xff]  ;;  %v7615_v23 = vld [vmem:[%s6839_s30 + $0xe4] sm:$0xff]  }
  0xba   : > { %1622 = vrot.lane.b32.xlu0 %v1517_v50, %s6750_s5  ;;  %v1548_v50 = vrot.slane %v10340_v39, 1 }
  0xbb   : > { %v7373_v27 = vpop.permute.xlu1 %1391 }
  0xbc   : > { %10323 = vst [vmem:[#allocation41_spill] sm:$0xff] %v7373_v27  ;;  %v7376_v45 = vpop.permute.xlu0 %1389  ;;  %v1549_v18 = vsel %vm1449_vm1, %v1546_v30, %v1548_v50  ;;  %v1568_v50 = vrot.slane %v7210_v13, 1  ;;  %v7601_v27 = vld [vmem:[%s6839_s30 + $0xd0] sm:$0xff]  }
  0xbd   : > { %10324 = vst [vmem:[#allocation42_spill] sm:$0xff] %v7376_v45  ;;  %1628 = vrot.lane.b32.xlu1 %v1524_v52, %s6750_s5  ;;  %v1545_v52 = vrot.slane %v10342_v60, 1 }
  0xbe   : > { %1626 = vrot.lane.b32.xlu0 %v1522_v38, %s6750_s5 }
  0xbf   : > { %v7383_v26 = vpop.permute.xlu1 %1395  ;;  %v1547_v46 = vsel %vm1449_vm1, %v1545_v52, %v1546_v30  ;;  %v10356_v30 = vld [vmem:[#allocation22_spill] sm:$0xff]  ;;  %v1565_v52 = vrot.slane %v7214_v42, 1 }
  0xc0   : > { %10326 = vst [vmem:[#allocation5_spill] sm:$0xff] %v7383_v26  ;;  %v7387_v40 = vpop.permute.xlu0 %1393  ;;  %v1566_v39 = vrot.slane %v10356_v30, 1  ;;  %v7476_v42 = vld [vmem:[%s6839_s30 + $0x1c] sm:$0xff]  }
  0xc1   : > { %10328 = vst [vmem:[#allocation6_spill] sm:$0xff] %v7387_v40  ;;  %1632 = vrot.lane.b32.xlu1 %v1529_v25, %s6750_s5  ;;  %v10345_v25 = vld [vmem:[#allocation18_spill] sm:$0xff]  ;;  %v7580_v26 = vld [vmem:[%s6839_s30 + $0xa0] sm:$0xff]   ;;  %v2082_v1 = vshll.u32 %v7476_v42, 16 }
  0xc2   : > { %1630 = vrot.lane.b32.xlu0 %v1527_v49, %s6750_s5  ;;  %v1553_v49 = vrot.slane %v10345_v25, 1  ;;  %v1569_v48 = vsel %vm1449_vm1, %v1566_v39, %v1568_v50  ;;  %v7587_v40 = vld [vmem:[%s6839_s30 + $0xbc] sm:$0xff]  }
  0xc3   : > { %v7394_v59 = vpop.permute.xlu1 %1399 }
  0xc4   : > { %10331 = vst [vmem:[#allocation7_spill] sm:$0xff] %v7394_v59  ;;  %v7398_v35 = vpop.permute.xlu0 %1397  ;;  %v1554_v4 = vsel %vm1449_vm1, %v1551_v16, %v1553_v49  ;;  %v7566_v59 = vld [vmem:[%s6839_s30 + $0x8c] sm:$0xff]  }
  0xc5   : > { %10333 = vst [vmem:[#allocation8_spill] sm:$0xff] %v7398_v35  ;;  %1636 = vrot.lane.b32.xlu1 %v1534_v63, %s6750_s5  ;;  %v10347_v63 = vld [vmem:[#allocation17_spill] sm:$0xff]  ;;  %v7573_v35 = vld [vmem:[%s6839_s30 + $0xa8] sm:$0xff]  }
  0xc6   : > { %1634 = vrot.lane.b32.xlu0 %v1532_v28, %s6750_s5  ;;  %v1550_v11 = vrot.slane %v10347_v63, 1  ;;  %v1558_v28 = vrot.slane %v7177_v7, 1 }
  0xc7   : > { %v7405_v62 = vpop.permute.xlu1 %1403 }
  0xc8   : > { %10336 = vst [vmem:[#allocation9_spill] sm:$0xff] %v7405_v62  ;;  %v7409_v3 = vpop.permute.xlu0 %1401  ;;  %v1552_v36 = vsel %vm1449_vm1, %v1550_v11, %v1551_v16  ;;  %v1559_v47 = vsel %vm1449_vm1, %v1556_v15, %v1558_v28  ;;  %v1567_v16 = vsel %vm1449_vm1, %v1565_v52, %v1566_v39  ;;  %v7489_v11 = vld [vmem:[%s6839_s30 + $0x30] sm:$0xff]   ;;  %v7545_v39 = vld [vmem:[%s6839_s30 + $0x80] sm:$0xff]  }
  0xc9   : > { %10338 = vst [vmem:[#allocation10_spill] sm:$0xff] %v7409_v3  ;;  %1640 = vrot.lane.b32.xlu1 %v1539_v54, %s6750_s5  ;;  %v1555_v54 = vrot.slane %v7171_v34, 1 }
  0xca   : > { %1638 = vrot.lane.b32.xlu0 %v1537_v0, %s6750_s5  ;;  %v10352_v0 = vld [vmem:[#allocation20_spill] sm:$0xff] }
  0xcb   : > { %v7416_v14 = vpop.permute.xlu1 %1407  ;;  %v1563_v32 = vrot.slane %v10352_v0, 1  ;;  %v1557_v12 = vsel %vm1449_vm1, %v1555_v54, %v1556_v15  ;;  %v7496_v15 = vld [vmem:[%s6839_s30 + $0x28] sm:$0xff]  }
  0xcc   : > { %10341 = vst [vmem:[#allocation12_spill] sm:$0xff] %v7416_v14  ;;  %v7420_v38 = vpop.permute.xlu0 %1405  ;;  %v2102_v14 = vshll.u32 %v7489_v11, 16 }
  0xcd   : > { %10343 = vst [vmem:[#allocation11_spill] sm:$0xff] %v7420_v38  ;;  %1644 = vrot.lane.b32.xlu1 %v1544_v21, %s6750_s5  ;;  %v1560_v21 = vrot.slane %v10354_v2, 1  ;;  %v1564_v34 = vsel %vm1449_vm1, %v1561_v57, %v1563_v32  ;;  %v7524_v32 = vld [vmem:[%s6839_s30 + $0x50] sm:$0xff]  }
  0xce   : > { %1642 = vrot.lane.b32.xlu0 %v1542_v51, %s6750_s5  ;;  %v7531_v2 = vld [vmem:[%s6839_s30 + $0x6c] sm:$0xff]   ;;  %v2104_v3 = vrot.slane %v2102_v14, 1 }
  0xcf   : > { %v7427_v56 = vpop.permute.xlu1 %1411  ;;  %v1562_v60 = vsel %vm1449_vm1, %v1560_v21, %v1561_v57  ;;  %v7517_v57 = vld [vmem:[%s6839_s30 + $0x58] sm:$0xff]  }
  0xd0   : > { %10346 = vst [vmem:[#allocation13_spill] sm:$0xff] %v7427_v56  ;;  %v7431_v44 = vpop.permute.xlu0 %1409 }
  0xd1   : > { %10348 = vst [vmem:[#allocation14_spill] sm:$0xff] %v7431_v44  ;;  %1648 = vrot.lane.b32.xlu1 %v1549_v18, %s6750_s5  ;;  %v7762_v44 = vld [vmem:[%s6839_s30 + $0x1a4] sm:$0xff]  }
  0xd2   : > { %1646 = vrot.lane.b32.xlu0 %v1547_v46, %s6750_s5  ;;  %v7482_v46 = vld [vmem:[%s6839_s30 + $0x14] sm:$0xff]  }
  0xd3   : > { %v7438_v31 = vpop.permute.xlu1 %1415  ;;  %v2075_v22 = vshrl.u32 %v7482_v46, 16 }
  0xd4   : > { %10349 = vst [vmem:[#allocation15_spill] sm:$0xff] %v7438_v31  ;;  %v7442_v37 = vpop.permute.xlu0 %1413 }
  0xd5   : > { %10350 = vst [vmem:[#allocation16_spill] sm:$0xff] %v7442_v37  ;;  %1652 = vrot.lane.b32.xlu1 %v1554_v4, %s6750_s5  ;;  %v7741_v37 = vld [vmem:[%s6839_s30 + $0x198] sm:$0xff]  }
  0xd6   : > { %1650 = vrot.lane.b32.xlu0 %v1552_v36, %s6750_s5  ;;  %v7503_v36 = vld [vmem:[%s6839_s30 + $0x44] sm:$0xff]  }
  0xd7   : > { %v7449_v7 = vpop.permute.xlu1 %1419 }
  0xd8   : > { %10353 = vst [vmem:[#allocation18_spill] sm:$0xff] %v7449_v7  ;;  %v7453_v20 = vpop.permute.xlu0 %1417 }
  0xd9   : > { %10355 = vst [vmem:[#allocation17_spill] sm:$0xff] %v7453_v20  ;;  %1656 = vrot.lane.b32.xlu1 %v1559_v47, %s6750_s5  ;;  %v7510_v47 = vld [vmem:[%s6839_s30 + $0x3c] sm:$0xff]   ;;  %v7706_v20 = vld [vmem:[%s6839_s30 + $0x154] sm:$0xff]  }
  0xda   : > { %1654 = vrot.lane.b32.xlu0 %v1557_v12, %s6750_s5 }
  0xdb   : > { %v7460_v51 = vpop.permute.xlu1 %1423 }
  0xdc   : > { %10357 = vst [vmem:[#allocation19_spill] sm:$0xff] %v7460_v51  ;;  %v7464_v18 = vpop.permute.xlu0 %1421 }
  0xdd   : > { %10358 = vst [vmem:[#allocation20_spill] sm:$0xff] %v7464_v18  ;;  %1660 = vrot.lane.b32.xlu1 %v1564_v34, %s6750_s5  ;;  %v7538_v34 = vld [vmem:[%s6839_s30 + $0x64] sm:$0xff]   ;;  %v7664_v18 = vld [vmem:[%s6839_s30 + $0x118] sm:$0xff]  }
  0xde   : > { %1658 = vrot.lane.b32.xlu0 %v1562_v60, %s6750_s5  ;;  %v7552_v60 = vld [vmem:[%s6839_s30 + $0x78] sm:$0xff]  }
  0xdf   : > { %v7469_v13 = vpop.permute.xlu1 %1427 }
  0xe0   : > { %10359 = vst [vmem:[#allocation21_spill] sm:$0xff] %v7469_v13  ;;  %v7472_v25 = vpop.permute.xlu0 %1425 }
  0xe1   : > { %10360 = vst [vmem:[#allocation22_spill] sm:$0xff] %v7472_v25  ;;  %1664 = vrot.lane.b32.xlu1 %v1569_v48, %s6750_s5  ;;  %v7559_v48 = vld [vmem:[%s6839_s30 + $0x94] sm:$0xff]  }
  0xe2   : > { %1662 = vrot.lane.b32.xlu0 %v1567_v16, %s6750_s5  ;;  %v7636_v25 = vld [vmem:[%s6839_s30 + $0xf0] sm:$0xff]  }
  0xe3   : > { %v7479_v49 = vpop.permute.xlu1 %1431 }
  0xe4   : > { %10361 = vst [vmem:[#allocation43_spill] sm:$0xff] %v7479_v49  ;;  %v7484_v63 = vpop.permute.xlu0 %1429 }
  0xe5   : > { %10362 = vst [vmem:[#allocation44_spill] sm:$0xff] %v7484_v63  ;;  %1908 = vrot.lane.b32.xlu1 %v7476_v42, %s6751_s6  ;;  %v7622_v63 = vld [vmem:[%s6839_s30 + $0xdc] sm:$0xff]  }
  0xe6   : > { %1906 = vrot.lane.b32.xlu0 %v7482_v46, %s6751_s6 }
  0xe7   : > { %v7493_v4 = vpop.permute.xlu1 %1435 }
  0xe8   : > { %10363 = vst [vmem:[#allocation45_spill] sm:$0xff] %v7493_v4  ;;  %v7498_v28 = vpop.permute.xlu0 %1433 }
  0xe9   : > { %10364 = vst [vmem:[#allocation46_spill] sm:$0xff] %v7498_v28  ;;  %1912 = vrot.lane.b32.xlu1 %v7489_v11, %s6751_s6 }
  0xea   : > { %1910 = vrot.lane.b32.xlu0 %v7496_v15, %s6751_s6 }
  0xeb   : > { %v7507_v54 = vpop.permute.xlu1 %1439 }
  0xec   : > { %10365 = vst [vmem:[#allocation47_spill] sm:$0xff] %v7507_v54  ;;  %v7512_v41 = vpop.permute.xlu0 %1437  ;;  %v7594_v54 = vld [vmem:[%s6839_s30 + $0xb4] sm:$0xff]  }
  0xed   : > { %10366 = vst [vmem:[#allocation48_spill] sm:$0xff] %v7512_v41  ;;  %1916 = vrot.lane.b32.xlu1 %v7503_v36, %s6751_s6 }
  0xee   : > { %1914 = vrot.lane.b32.xlu0 %v7510_v47, %s6751_s6 }
  0xef   : > { %v7521_v0 = vpop.permute.xlu1 %1443 }
  0xf0   : > { %10367 = vst [vmem:[#allocation49_spill] sm:$0xff] %v7521_v0  ;;  %v7526_v12 = vpop.permute.xlu0 %1441 }
  0xf1   : > { %10368 = vst [vmem:[#allocation50_spill] sm:$0xff] %v7526_v12  ;;  %1920 = vrot.lane.b32.xlu1 %v7517_v57, %s6751_s6 }
  0xf2   : > { %1918 = vrot.lane.b32.xlu0 %v7524_v32, %s6751_s6 }
  0xf3   : > { %v7535_v21 = vpop.permute.xlu1 %1447 }
  0xf4   : > { %10369 = vst [vmem:[#allocation51_spill] sm:$0xff] %v7535_v21  ;;  %v7540_v30 = vpop.permute.xlu0 %1445 }
  0xf5   : > { %10370 = vst [vmem:[#allocation52_spill] sm:$0xff] %v7540_v30  ;;  %1924 = vrot.lane.b32.xlu1 %v7531_v2, %s6751_s6 }
  0xf6   : > { %1922 = vrot.lane.b32.xlu0 %v7538_v34, %s6751_s6 }
  0xf7   : > { %v7549_v50 = vpop.permute.xlu1 %1572 }
  0xf8   : > { %10371 = vst [vmem:[#allocation53_spill] sm:$0xff] %v7549_v50  ;;  %v7554_v52 = vpop.permute.xlu0 %1570 }
  0xf9   : > { %10372 = vst [vmem:[#allocation54_spill] sm:$0xff] %v7554_v52  ;;  %1928 = vrot.lane.b32.xlu1 %v7545_v39, %s6751_s6 }
  0xfa   : > { %1926 = vrot.lane.b32.xlu0 %v7552_v60, %s6751_s6 }
  0xfb   : > { %v7563_v16 = vpop.permute.xlu1 %1576 }
  0xfc   : > { %10373 = vst [vmem:[#allocation55_spill] sm:$0xff] %v7563_v16  ;;  %v7568_v21 = vpop.permute.xlu0 %1574  ;;  %v2086_v16 = vshrl.u32 %v7476_v42, 16  ;;  %v2097_v42 = vshll.u32 %v7496_v15, 16 }
  0xfd   : > { %10374 = vst [vmem:[#allocation56_spill] sm:$0xff] %v7568_v21  ;;  %1932 = vrot.lane.b32.xlu1 %v7559_v48, %s6751_s6  ;;  %v7788_v21 = vld [vmem:[%s6839_s30 + $0x1d4] sm:$0xff]  }
  0xfe   : > { %1930 = vrot.lane.b32.xlu0 %v7566_v59, %s6751_s6  ;;  %10407 = vst [vmem:[#allocation89_spill] sm:$0xff] %v7788_v21  ;;  %v2099_v14 = vrot.slane %v2097_v42, 1 }
  0xff   : > { %v7577_v30 = vpop.permute.xlu1 %1580 }
 0x100   : > { %10375 = vst [vmem:[#allocation57_spill] sm:$0xff] %v7577_v30  ;;  %v7582_v0 = vpop.permute.xlu0 %1578 }
 0x101   : > { %10376 = vst [vmem:[#allocation58_spill] sm:$0xff] %v7582_v0  ;;  %1936 = vrot.lane.b32.xlu1 %v7573_v35, %s6751_s6  ;;  %v7755_v0 = vld [vmem:[%s6839_s30 + $0x1ac] sm:$0xff]  }
 0x102   : > { %1934 = vrot.lane.b32.xlu0 %v7580_v26, %s6751_s6 }
 0x103   : > { %v7591_v12 = vpop.permute.xlu1 %1584 }
 0x104   : > { %10377 = vst [vmem:[#allocation59_spill] sm:$0xff] %v7591_v12  ;;  %v7596_v45 = vpop.permute.xlu0 %1582 }
 0x105   : > { %10378 = vst [vmem:[#allocation60_spill] sm:$0xff] %v7596_v45  ;;  %1940 = vrot.lane.b32.xlu1 %v7587_v40, %s6751_s6  ;;  %v7734_v45 = vld [vmem:[%s6839_s30 + $0x17c] sm:$0xff]  }
 0x106   : > { %1938 = vrot.lane.b32.xlu0 %v7594_v54, %s6751_s6 }
 0x107   : > { %v7605_v41 = vpop.permute.xlu1 %1588 }
 0x108   : > { %10379 = vst [vmem:[#allocation61_spill] sm:$0xff] %v7605_v41  ;;  %v7610_v4 = vpop.permute.xlu0 %1586 }
 0x109   : > { %10380 = vst [vmem:[#allocation62_spill] sm:$0xff] %v7610_v4  ;;  %1944 = vrot.lane.b32.xlu1 %v7601_v27, %s6751_s6  ;;  %v7692_v4 = vld [vmem:[%s6839_s30 + $0x140] sm:$0xff]  }
 0x10a   : > { %1942 = vrot.lane.b32.xlu0 %v7608_v43, %s6751_s6 }
 0x10b   : > { %v7619_v28 = vpop.permute.xlu1 %1592 }
 0x10c   : > { %10381 = vst [vmem:[#allocation63_spill] sm:$0xff] %v7619_v28  ;;  %v7624_v49 = vpop.permute.xlu0 %1590 }
 0x10d   : > { %10382 = vst [vmem:[#allocation64_spill] sm:$0xff] %v7624_v49  ;;  %1948 = vrot.lane.b32.xlu1 %v7615_v23, %s6751_s6  ;;  %v7650_v49 = vld [vmem:[%s6839_s30 + $0x104] sm:$0xff]  }
 0x10e   : > { %1946 = vrot.lane.b32.xlu0 %v7622_v63, %s6751_s6 }
 0x10f   : > { %v7633_v6 = vpop.permute.xlu1 %1596 }
 0x110   : > { %10383 = vst [vmem:[#allocation65_spill] sm:$0xff] %v7633_v6  ;;  %v7638_v13 = vpop.permute.xlu0 %1594 }
 0x111   : > { %10384 = vst [vmem:[#allocation66_spill] sm:$0xff] %v7638_v13  ;;  %1952 = vrot.lane.b32.xlu1 %v7629_v58, %s6751_s6  ;;  %v7657_v13 = vld [vmem:[%s6839_s30 + $0x120] sm:$0xff]  }
 0x112   : > { %1950 = vrot.lane.b32.xlu0 %v7636_v25, %s6751_s6 }
 0x113   : > { %v7647_v10 = vpop.permute.xlu1 %1600 }
 0x114   : > { %10385 = vst [vmem:[#allocation67_spill] sm:$0xff] %v7647_v10  ;;  %v7652_v6 = vpop.permute.xlu0 %1598 }
 0x115   : > { %10386 = vst [vmem:[#allocation68_spill] sm:$0xff] %v7652_v6  ;;  %1956 = vrot.lane.b32.xlu1 %v7643_v33, %s6751_s6  ;;  %v7671_v6 = vld [vmem:[%s6839_s30 + $0x134] sm:$0xff]  }
 0x116   : > { %1954 = vrot.lane.b32.xlu0 %v7650_v49, %s6751_s6 }
 0x117   : > { %v7661_v28 = vpop.permute.xlu1 %1604 }
 0x118   : > { %10387 = vst [vmem:[#allocation69_spill] sm:$0xff] %v7661_v28  ;;  %v7666_v10 = vpop.permute.xlu0 %1602 }
 0x119   : > { %10388 = vst [vmem:[#allocation70_spill] sm:$0xff] %v7666_v10  ;;  %1960 = vrot.lane.b32.xlu1 %v7657_v13, %s6751_s6  ;;  %v7685_v10 = vld [vmem:[%s6839_s30 + $0x148] sm:$0xff]  }
 0x11a   : > { %1958 = vrot.lane.b32.xlu0 %v7664_v18, %s6751_s6 }
 0x11b   : > { %v7675_v51 = vpop.permute.xlu1 %1608 }
 0x11c   : > { %10389 = vst [vmem:[#allocation71_spill] sm:$0xff] %v7675_v51  ;;  %v7680_v28 = vpop.permute.xlu0 %1606 }
 0x11d   : > { %10390 = vst [vmem:[#allocation72_spill] sm:$0xff] %v7680_v28  ;;  %1964 = vrot.lane.b32.xlu1 %v7671_v6, %s6751_s6  ;;  %v7699_v28 = vld [vmem:[%s6839_s30 + $0x15c] sm:$0xff]  }
 0x11e   : > { %1962 = vrot.lane.b32.xlu0 %v7678_v53, %s6751_s6 }
 0x11f   : > { %v7689_v19 = vpop.permute.xlu1 %1612 }
 0x120   : > { %10391 = vst [vmem:[#allocation73_spill] sm:$0xff] %v7689_v19  ;;  %v7694_v51 = vpop.permute.xlu0 %1610 }
 0x121   : > { %10392 = vst [vmem:[#allocation74_spill] sm:$0xff] %v7694_v51  ;;  %1968 = vrot.lane.b32.xlu1 %v7685_v10, %s6751_s6  ;;  %v7713_v51 = vld [vmem:[%s6839_s30 + $0x170] sm:$0xff]  }
 0x122   : > { %1966 = vrot.lane.b32.xlu0 %v7692_v4, %s6751_s6 }
 0x123   : > { %v7703_v41 = vpop.permute.xlu1 %1616 }
 0x124   : > { %10393 = vst [vmem:[#allocation75_spill] sm:$0xff] %v7703_v41  ;;  %v7708_v19 = vpop.permute.xlu0 %1614 }
 0x125   : > { %10394 = vst [vmem:[#allocation76_spill] sm:$0xff] %v7708_v19  ;;  %1972 = vrot.lane.b32.xlu1 %v7699_v28, %s6751_s6  ;;  %v7727_v19 = vld [vmem:[%s6839_s30 + $0x184] sm:$0xff]  }
 0x126   : > { %1970 = vrot.lane.b32.xlu0 %v7706_v20, %s6751_s6 }
 0x127   : > { %v7717_v7 = vpop.permute.xlu1 %1620 }
 0x128   : > { %10395 = vst [vmem:[#allocation77_spill] sm:$0xff] %v7717_v7  ;;  %v7722_v41 = vpop.permute.xlu0 %1618  ;;  %v7810_v7 = vld [vmem:[%s6839_s30 + $0x1e8] sm:$0xff]  }
 0x129   : > { %10396 = vst [vmem:[#allocation78_spill] sm:$0xff] %v7722_v41  ;;  %1976 = vrot.lane.b32.xlu1 %v7713_v51, %s6751_s6 }
 0x12a   : > { %1974 = vrot.lane.b32.xlu0 %v7720_v55, %s6751_s6 }
 0x12b   : > { %v7731_v8 = vpop.permute.xlu1 %1624 }
 0x12c   : > { %10397 = vst [vmem:[#allocation79_spill] sm:$0xff] %v7731_v8  ;;  %v7736_v12 = vpop.permute.xlu0 %1622 }
 0x12d   : > { %10398 = vst [vmem:[#allocation80_spill] sm:$0xff] %v7736_v12  ;;  %1980 = vrot.lane.b32.xlu1 %v7727_v19, %s6751_s6  ;;  %v2084_v12 = vrot.slane %v2082_v1, 1 }
 0x12e   : > { %1978 = vrot.lane.b32.xlu0 %v7734_v45, %s6751_s6 }
 0x12f   : > { %v7745_v31 = vpop.permute.xlu1 %1628  ;;  %v2088_v52 = vor.u32 %v2086_v16, %v2084_v12  ;;  %v2117_v16 = vshll.u32 %v7510_v47, 16 }
 0x130   : > { %10399 = vst [vmem:[#allocation81_spill] sm:$0xff] %v7745_v31  ;;  %v7750_v24 = vpop.permute.xlu0 %1626  ;;  %v7772_v31 = vld [vmem:[%s6839_s30 + $0x24] ss:$0 sps:$4 sm:$0x11]  }
 0x131   : > { %10400 = vst [vmem:[#allocation82_spill] sm:$0xff] %v7750_v24  ;;  %1984 = vrot.lane.b32.xlu1 %v7741_v37, %s6751_s6  ;;  %v7769_v24 = vld [vmem:[%s6839_s30 + $0x1c0] sm:$0xff]   ;;  %10403 = vst [vmem:[#allocation85_spill] sm:$0xff] %v7772_v31  ;;  %v2090_v38 = vshll.u32 %v7772_v31, 16 }
 0x132   : > { %1982 = vrot.lane.b32.xlu0 %v7748_v5, %s6751_s6 }
 0x133   : > { %v7759_v30 = vpop.permute.xlu1 %1632  ;;  %v2092_v50 = vrot.slane %v2090_v38, 1  ;;  %v2095_v38 = vshrl.u32 %v7496_v15, 16  ;;  %v2130_v15 = vshll.u32 %v7815_v29, 16 }
 0x134   : > { %10401 = vst [vmem:[#allocation83_spill] sm:$0xff] %v7759_v30  ;;  %v7764_v56 = vpop.permute.xlu0 %1630  ;;  %v7780_v30 = vld [vmem:[%s6839_s30 + $0x1b8] sm:$0xff]  }
 0x135   : > { %10402 = vst [vmem:[#allocation84_spill] sm:$0xff] %v7764_v56  ;;  %1988 = vrot.lane.b32.xlu1 %v7755_v0, %s6751_s6  ;;  %10405 = vst [vmem:[#allocation87_spill] sm:$0xff] %v7780_v30  ;;  %v2077_v56 = vshll.u32 %v7482_v46, 16 }
 0x136   : > { %1986 = vrot.lane.b32.xlu0 %v7762_v44, %s6751_s6 }
 0x137   : > { %v7777_v9 = vpop.permute.xlu1 %1636  ;;  %v2079_v1 = vrot.slane %v2077_v56, 1  ;;  %v2122_v56 = vshll.u32 %v7503_v36, 16 }
 0x138   : > { %10404 = vst [vmem:[#allocation86_spill] sm:$0xff] %v7777_v9  ;;  %v7783_v8 = vpop.permute.xlu0 %1634  ;;  %v7794_v9 = vld [vmem:[%s6839_s30 + $0x38] ss:$0 sps:$4 sm:$0x11]  }
 0x139   : > { %10406 = vst [vmem:[#allocation88_spill] sm:$0xff] %v7783_v8  ;;  %1992 = vrot.lane.b32.xlu1 %v7769_v24, %s6751_s6  ;;  %10408 = vst [vmem:[#allocation90_spill] sm:$0xff] %v7794_v9  ;;  %v2110_v62 = vshll.u32 %v7794_v9, 16  ;;  %v2080_v17 = vor.u32 %v2079_v1, %v2075_v22  ;;  %v2093_v9 = vsel %vm872_vm0, %v2088_v52, %v2092_v50  ;;  %v2126_v22 = vshrl.u32 %v7503_v36, 16 }
 0x13a   : > { %1990 = vrot.lane.b32.xlu0 %v7780_v30, %s6751_s6  ;;  %v2124_v30 = vrot.slane %v2122_v56, 1  ;;  %v2100_v50 = vor.u32 %v2099_v14, %v2095_v38  ;;  %v2119_v52 = vrot.slane %v2117_v16, 1  ;;  %v2146_v56 = vshrl.u32 %v7517_v57, 16 }
 0x13b   : > { %v7798_v8 = vpop.permute.xlu1 %1640  ;;  %v2085_v42 = vsel %vm872_vm0, %v2080_v17, %v2084_v12  ;;  %v2132_v38 = vrot.slane %v2130_v15, 1  ;;  %v2157_v16 = vshll.u32 %v7538_v34, 16  ;;  %v2166_v15 = vshrl.u32 %v7531_v2, 16 }
 0x13c   : > { %10409 = vst [vmem:[#allocation91_spill] sm:$0xff] %v7798_v8  ;;  %v7805_v41 = vpop.permute.xlu0 %1638  ;;  %v2106_v8 = vshrl.u32 %v7489_v11, 16  ;;  %v2128_v12 = vor.u32 %v2126_v22, %v2124_v30 }
 0x13d   : > { %10411 = vst [vmem:[#allocation93_spill] sm:$0xff] %v7805_v41  ;;  %1996 = vrot.lane.b32.xlu1 %v7788_v21, %s6751_s6  ;;  %v7823_v41 = vld [vmem:[%s6839_s30 + $0x1e0] sm:$0xff]  }
 0x13e   : > { %1994 = vrot.lane.b32.xlu0 %v7801_v61, %s6751_s6  ;;  %10414 = vst [vmem:[#allocation96_spill] sm:$0xff] %v7823_v41  ;;  %v2108_v31 = vor.u32 %v2106_v8, %v2104_v3  ;;  %v7833_v21 = vld [vmem:[%s6839_s30 + $0x60] ss:$0 sps:$4 sm:$0x11]   ;;  %v2112_v61 = vrot.slane %v2110_v62, 1  ;;  %v2115_v8 = vshrl.u32 %v7510_v47, 16 }
 0x13f   : > { %v7820_v46 = vpop.permute.xlu1 %1644  ;;  %10416 = vst [vmem:[#allocation98_spill] sm:$0xff] %v7833_v21  ;;  %v2150_v29 = vshll.u32 %v7833_v21, 16  ;;  %v6450_v47 = vld [vmem:[%s6839_s30 + $0x74] ss:$0 sps:$4 sm:$0x11]  }
 0x140   : > { %10413 = vst [vmem:[#allocation95_spill] sm:$0xff] %v7820_v46  ;;  %v7827_v11 = vpop.permute.xlu0 %1642  ;;  %v2142_v46 = vshll.u32 %v7517_v57, 16  ;;  %v2113_v17 = vsel %vm872_vm0, %v2108_v31, %v2112_v61  ;;  %v2135_v57 = vshrl.u32 %v7524_v32, 16 }
 0x141   : > { %10415 = vst [vmem:[#allocation97_spill] sm:$0xff] %v7827_v11  ;;  %2000 = vrot.lane.b32.xlu1 %v7810_v7, %s6751_s6  ;;  %v2137_v11 = vshll.u32 %v7524_v32, 16  ;;  %v2152_v31 = vrot.slane %v2150_v29, 1 }
 0x142   : > { %1998 = vrot.lane.b32.xlu0 %v7823_v41, %s6751_s6  ;;  %v2144_v36 = vrot.slane %v2142_v46, 1  ;;  %v2120_v46 = vor.u32 %v2119_v52, %v2115_v8  ;;  %v6451_v41 = vld [vmem:[%s6839_s30 + $0x88] ss:$0 sps:$4 sm:$0x11]  }
 0x143   : > { %v7840_v1 = vpop.permute.xlu1 %1648 }
 0x144   : > { %10417 = vst [vmem:[#allocation99_spill] sm:$0xff] %v7840_v1  ;;  %v7845_v62 = vpop.permute.xlu0 %1646  ;;  %v2162_v1 = vshll.u32 %v7531_v2, 16  ;;  %v2148_v61 = vor.u32 %v2146_v56, %v2144_v36  ;;  %v2125_v8 = vsel %vm872_vm0, %v2120_v46, %v2124_v30  ;;  %v2175_v46 = vshrl.u32 %v7552_v60, 16 }
 0x145   : > { %10418 = vst [vmem:[#allocation100_spill] sm:$0xff] %v7845_v62  ;;  %2556 = vrot.lane.b32.xlu1 %v2093_v9, %s6752_s7  ;;  %v2105_v9 = vsel %vm872_vm0, %v2100_v50, %v2104_v3  ;;  %v2139_v62 = vrot.slane %v2137_v11, 1  ;;  %v2182_v3 = vshll.u32 %v7545_v39, 16  ;;  %v2155_v11 = vshrl.u32 %v7538_v34, 16 }
 0x146   : > { %2554 = vrot.lane.b32.xlu0 %v2085_v42, %s6752_s7  ;;  %v2164_v22 = vrot.slane %v2162_v1, 1  ;;  %v2133_v42 = vsel %vm872_vm0, %v2128_v12, %v2132_v38  ;;  %v2159_v50 = vrot.slane %v2157_v16, 1  ;;  %v2177_v1 = vshll.u32 %v7552_v60, 16 }
 0x147   : > { %v7854_v14 = vpop.permute.xlu1 %1652  ;;  %v2140_v29 = vor.u32 %v2139_v62, %v2135_v57  ;;  %v2153_v52 = vsel %vm872_vm0, %v2148_v61, %v2152_v31  ;;  %v2202_v12 = vshll.u32 %v7559_v48, 16  ;;  %v2186_v34 = vshrl.u32 %v7545_v39, 16 }
 0x148   : > { %10419 = vst [vmem:[#allocation101_spill] sm:$0xff] %v7854_v14  ;;  %v7859_v21 = vpop.permute.xlu0 %1650  ;;  %v2170_v14 = vshll.u32 %v6450_v47, 16  ;;  %v2168_v56 = vor.u32 %v2166_v15, %v2164_v22  ;;  %v2184_v47 = vrot.slane %v2182_v3, 1  ;;  %v2190_v16 = vshll.u32 %v6451_v41, 16 }
 0x149   : > { %10420 = vst [vmem:[#allocation102_spill] sm:$0xff] %v7859_v21  ;;  %2560 = vrot.lane.b32.xlu1 %v2113_v17, %s6752_s7  ;;  %v6452_v17 = vld [vmem:[%s6839_s30 + $0x9c] ss:$0 sps:$4 sm:$0x11]   ;;  %v2160_v62 = vor.u32 %v2159_v50, %v2155_v11  ;;  %v2179_v57 = vrot.slane %v2177_v1, 1  ;;  %v2197_v61 = vshll.u32 %v7566_v59, 16 }
 0x14a   : > { %2558 = vrot.lane.b32.xlu0 %v2105_v9, %s6752_s7  ;;  %v2172_v38 = vrot.slane %v2170_v14, 1  ;;  %v2145_v9 = vsel %vm872_vm0, %v2140_v29, %v2144_v36  ;;  %v2204_v14 = vrot.slane %v2202_v12, 1  ;;  %v2206_v41 = vshrl.u32 %v7559_v48, 16  ;;  %v6453_v36 = vld [vmem:[%s6839_s30 + $0xb0] ss:$0 sps:$4 sm:$0x11]  }
 0x14b   : > { %v7867_v32 = vpop.permute.xlu1 %1656  ;;  %v2210_v39 = vshll.u32 %v6452_v17, 16  ;;  %v2222_v15 = vshll.u32 %v7573_v35, 16  ;;  %v2188_v3 = vor.u32 %v2186_v34, %v2184_v47  ;;  %v2192_v11 = vrot.slane %v2190_v16, 1 }
 0x14c   : > { %10421 = vst [vmem:[#allocation103_spill] sm:$0xff] %v7867_v32  ;;  %v7872_v2 = vpop.permute.xlu0 %1654  ;;  %v2165_v50 = vsel %vm872_vm0, %v2160_v62, %v2164_v22  ;;  %v2195_v29 = vshrl.u32 %v7566_v59, 16  ;;  %v2199_v1 = vrot.slane %v2197_v61, 1  ;;  %v2217_v48 = vshll.u32 %v7580_v26, 16 }
 0x14d   : > { %10422 = vst [vmem:[#allocation104_spill] sm:$0xff] %v7872_v2  ;;  %2564 = vrot.lane.b32.xlu1 %v2133_v42, %s6752_s7  ;;  %v2173_v42 = vsel %vm872_vm0, %v2168_v56, %v2172_v38  ;;  %v2208_v56 = vor.u32 %v2206_v41, %v2204_v14  ;;  %v2212_v17 = vrot.slane %v2210_v39, 1  ;;  %v2224_v12 = vrot.slane %v2222_v15, 1  ;;  %v6454_v22 = vld [vmem:[%s6839_s30 + $0xc4] ss:$0 sps:$4 sm:$0x11]  }
 0x14e   : > { %2562 = vrot.lane.b32.xlu0 %v2125_v8, %s6752_s7  ;;  %v2180_v8 = vor.u32 %v2179_v57, %v2175_v46  ;;  %v2226_v38 = vshrl.u32 %v7573_v35, 16  ;;  %v2193_v34 = vsel %vm872_vm0, %v2188_v3, %v2192_v11  ;;  %v2230_v16 = vshll.u32 %v6453_v36, 16 }
 0x14f   : > { %v7880_v30 = vpop.permute.xlu1 %1660  ;;  %v2242_v62 = vshll.u32 %v7587_v40, 16  ;;  %v2200_v57 = vor.u32 %v2199_v1, %v2195_v29  ;;  %v2215_v61 = vshrl.u32 %v7580_v26, 16  ;;  %v2219_v41 = vrot.slane %v2217_v48, 1 }
 0x150   : > { %10423 = vst [vmem:[#allocation105_spill] sm:$0xff] %v7880_v30  ;;  %v7885_v31 = vpop.permute.xlu0 %1658  ;;  %v2185_v46 = vsel %vm872_vm0, %v2180_v8, %v2184_v47  ;;  %v2213_v39 = vsel %vm872_vm0, %v2208_v56, %v2212_v17  ;;  %v2228_v15 = vor.u32 %v2226_v38, %v2224_v12  ;;  %v2262_v3 = vshll.u32 %v7601_v27, 16 }
 0x151   : > { %10424 = vst [vmem:[#allocation106_spill] sm:$0xff] %v7885_v31  ;;  %2568 = vrot.lane.b32.xlu1 %v2153_v52, %s6752_s7  ;;  %v2232_v11 = vrot.slane %v2230_v16, 1  ;;  %v2244_v36 = vrot.slane %v2242_v62, 1  ;;  %v2235_v47 = vshrl.u32 %v7594_v54, 16  ;;  %v2205_v29 = vsel %vm872_vm0, %v2200_v57, %v2204_v14 }
 0x152   : > { %2566 = vrot.lane.b32.xlu0 %v2145_v9, %s6752_s7  ;;  %v2237_v9 = vshll.u32 %v7594_v54, 16  ;;  %v2220_v1 = vor.u32 %v2219_v41, %v2215_v61  ;;  %v2257_v48 = vshll.u32 %v7608_v43, 16  ;;  %v2264_v17 = vrot.slane %v2262_v3, 1  ;;  %v6456_v62 = vld [vmem:[%s6839_s30 + $0xec] ss:$0 sps:$4 sm:$0x11]  }
 0x153   : > { %v7893_v60 = vpop.permute.xlu1 %1664  ;;  %v2233_v16 = vsel %vm872_vm0, %v2228_v15, %v2232_v11  ;;  %v2255_v57 = vshrl.u32 %v7608_v43, 16  ;;  %v2290_v11 = vshll.u32 %v6456_v62, 16  ;;  %v6463_v31 = vld [vmem:[%s6839_s30 + $0x178] ss:$0 sps:$4 sm:$0x11]  }
 0x154   : > { %10425 = vst [vmem:[#allocation107_spill] sm:$0xff] %v7893_v60  ;;  %v7898_v52 = vpop.permute.xlu0 %1662  ;;  %v2250_v60 = vshll.u32 %v6454_v22, 16  ;;  %v2239_v8 = vrot.slane %v2237_v9, 1  ;;  %v2259_v61 = vrot.slane %v2257_v48, 1  ;;  %v2297_v48 = vshll.u32 %v7636_v25, 16 }
 0x155   : > { %10426 = vst [vmem:[#allocation108_spill] sm:$0xff] %v7898_v52  ;;  %2572 = vrot.lane.b32.xlu1 %v2173_v42, %s6752_s7  ;;  %v6455_v42 = vld [vmem:[%s6839_s30 + $0xd8] ss:$0 sps:$4 sm:$0x11]  }
 0x156   : > { %2570 = vrot.lane.b32.xlu0 %v2165_v50, %s6752_s7  ;;  %v2246_v50 = vshrl.u32 %v7587_v40, 16  ;;  %v2266_v40 = vshrl.u32 %v7601_v27, 16  ;;  %v2270_v38 = vshll.u32 %v6455_v42, 16  ;;  %v2252_v54 = vrot.slane %v2250_v60, 1 }
 0x157   : > { %v7906_v59 = vpop.permute.xlu1 %1908  ;;  %v2240_v9 = vor.u32 %v2239_v8, %v2235_v47  ;;  %v2277_v27 = vshll.u32 %v7622_v63, 16  ;;  %v2286_v42 = vshrl.u32 %v7615_v23, 16  ;;  %v2260_v8 = vor.u32 %v2259_v61, %v2255_v57 }
 0x158   : > { %v7911_v35 = vpop.permute.xlu0 %1906  ;;  %v2248_v22 = vor.u32 %v2246_v50, %v2244_v36  ;;  %v2272_v60 = vrot.slane %v2270_v38, 1  ;;  %v6457_v50 = vld [vmem:[%s6839_s30 + $0x100] ss:$0 sps:$4 sm:$0x11]   ;;  %v2295_v61 = vshrl.u32 %v7636_v25, 16 }
 0x159   : > { %2576 = vrot.lane.b32.xlu1 %v2193_v34, %s6752_s7  ;;  %v2282_v34 = vshll.u32 %v7615_v23, 16  ;;  %v2245_v47 = vsel %vm872_vm0, %v2240_v9, %v2244_v36  ;;  %v2306_v36 = vshrl.u32 %v7629_v58, 16  ;;  %v2310_v62 = vshll.u32 %v6457_v50, 16 }
 0x15a   : > { %2574 = vrot.lane.b32.xlu0 %v2185_v46, %s6752_s7  ;;  %v2225_v46 = vsel %vm872_vm0, %v2220_v1, %v2224_v12  ;;  %v2253_v3 = vsel %vm872_vm0, %v2248_v22, %v2252_v54  ;;  %v2302_v12 = vshll.u32 %v7629_v58, 16  ;;  %v2279_v1 = vrot.slane %v2277_v27, 1 }
 0x15b   : > { %v7919_v26 = vpop.permute.xlu1 %1912  ;;  %v2284_v15 = vrot.slane %v2282_v34, 1  ;;  %v7955_v34 = vld [vmem:[%s6839_s30 + $0x114] ss:$0 sps:$4 sm:$0x11]   ;;  %v2292_v22 = vrot.slane %v2290_v11, 1  ;;  %v2317_v9 = vshll.u32 %v7650_v49, 16 }
 0x15c   : > { %v7924_v56 = vpop.permute.xlu0 %1910  ;;  %v2304_v54 = vrot.slane %v2302_v12, 1  ;;  %v2299_v27 = vrot.slane %v2297_v48, 1  ;;  %v2326_v58 = vshrl.u32 %v7643_v33, 16  ;;  %v2312_v12 = vrot.slane %v2310_v62, 1 }
 0x15d   : > { %2580 = vrot.lane.b32.xlu1 %v2213_v39, %s6752_s7  ;;  %v2268_v39 = vor.u32 %v2266_v40, %v2264_v17  ;;  %v2288_v38 = vor.u32 %v2286_v42, %v2284_v15  ;;  %v2330_v42 = vshll.u32 %v7955_v34, 16  ;;  %v7988_v62 = vld [vmem:[%s6839_s30 + $0x13c] ss:$0 sps:$4 sm:$0x11]  }
 0x15e   : > { %2578 = vrot.lane.b32.xlu0 %v2205_v29, %s6752_s7  ;;  %v2275_v29 = vshrl.u32 %v7622_v63, 16  ;;  %v2308_v50 = vor.u32 %v2306_v36, %v2304_v54 }
 0x15f   : > { %v7932_v14 = vpop.permute.xlu1 %1916  ;;  %v2273_v40 = vsel %vm872_vm0, %v2268_v39, %v2272_v60  ;;  %v2293_v11 = vsel %vm872_vm0, %v2288_v38, %v2292_v22  ;;  %v2332_v38 = vrot.slane %v2330_v42, 1  ;;  %v2346_v22 = vshrl.u32 %v7657_v13, 16 }
 0x160   : > { %v7937_v41 = vpop.permute.xlu0 %1914  ;;  %v2280_v57 = vor.u32 %v2279_v1, %v2275_v29  ;;  %v2300_v29 = vor.u32 %v2299_v27, %v2295_v61  ;;  %v2337_v1 = vshll.u32 %v7664_v18, 16  ;;  %v2313_v36 = vsel %vm872_vm0, %v2308_v50, %v2312_v12 }
 0x161   : > { %2584 = vrot.lane.b32.xlu1 %v2233_v16, %s6752_s7  ;;  %v2322_v16 = vshll.u32 %v7643_v33, 16  ;;  %v2335_v61 = vshrl.u32 %v7664_v18, 16  ;;  %v2382_v50 = vshll.u32 %v7685_v10, 16  ;;  %v2370_v18 = vshll.u32 %v7988_v62, 16 }
 0x162   : > { %2582 = vrot.lane.b32.xlu0 %v2225_v46, %s6752_s7  ;;  %v2265_v46 = vsel %vm872_vm0, %v2260_v8, %v2264_v17  ;;  %v7973_v17 = vld [vmem:[%s6839_s30 + $0x128] ss:$0 sps:$4 sm:$0x11]   ;;  %v2319_v8 = vrot.slane %v2317_v9, 1  ;;  %v2285_v33 = vsel %vm872_vm0, %v2280_v57, %v2284_v15  ;;  %v2362_v15 = vshll.u32 %v7671_v6, 16 }
 0x163   : > { %v7945_v43 = vpop.permute.xlu1 %1920  ;;  %v2324_v60 = vrot.slane %v2322_v16, 1  ;;  %v2305_v57 = vsel %vm872_vm0, %v2300_v29, %v2304_v54  ;;  %v2339_v27 = vrot.slane %v2337_v1, 1  ;;  %v2366_v54 = vshrl.u32 %v7671_v6, 16 }
 0x164   : > { %10427 = vst [vmem:[#allocation109_spill] sm:$0xff] %v7945_v43  ;;  %v7950_v23 = vpop.permute.xlu0 %1918  ;;  %v2355_v1 = vshrl.u32 %v7678_v53, 16  ;;  %v2384_v6 = vrot.slane %v2382_v50, 1  ;;  %v10515_v43 = vld [vmem:[#allocation53_spill] sm:$0xff] }
 0x165   : > { %10428 = vst [vmem:[#allocation110_spill] sm:$0xff] %v7950_v23  ;;  %2588 = vrot.lane.b32.xlu1 %v2253_v3, %s6752_s7  ;;  %v2342_v3 = vshll.u32 %v7657_v13, 16  ;;  %v2357_v13 = vshll.u32 %v7678_v53, 16  ;;  %v2340_v29 = vor.u32 %v2339_v27, %v2335_v61  ;;  %v6462_v61 = vld [vmem:[%s6839_s30 + $0x164] ss:$0 sps:$4 sm:$0x11]  }
 0x166   : > { %2586 = vrot.lane.b32.xlu0 %v2245_v47, %s6752_s7  ;;  %v2315_v47 = vshrl.u32 %v7650_v49, 16  ;;  %v2350_v49 = vshll.u32 %v7973_v17, 16  ;;  %v2397_v27 = vshll.u32 %v7706_v20, 16  ;;  %v2410_v30 = vshll.u32 %v6462_v61, 16 }
 0x167   : > { %v7960_v63 = vpop.permute.xlu1 %1924  ;;  %v2344_v16 = vrot.slane %v2342_v3, 1 }
 0x168   : > { %10429 = vst [vmem:[#allocation111_spill] sm:$0xff] %v7960_v63  ;;  %v7965_v39 = vpop.permute.xlu0 %1922  ;;  %v2352_v12 = vrot.slane %v2350_v49, 1 }
 0x169   : > { %10430 = vst [vmem:[#allocation112_spill] sm:$0xff] %v7965_v39  ;;  %2592 = vrot.lane.b32.xlu1 %v2273_v40, %s6752_s7  ;;  %v2328_v40 = vor.u32 %v2326_v58, %v2324_v60  ;;  %v2348_v3 = vor.u32 %v2346_v22, %v2344_v16 }
 0x16a   : > { %2590 = vrot.lane.b32.xlu0 %v2265_v46, %s6752_s7  ;;  %v2320_v46 = vor.u32 %v2319_v8, %v2315_v47  ;;  %v2364_v47 = vrot.slane %v2362_v15, 1  ;;  %v2402_v15 = vshll.u32 %v7699_v28, 16 }
 0x16b   : > { %v7976_v25 = vpop.permute.xlu1 %1928  ;;  %v2333_v42 = vsel %vm872_vm0, %v2328_v40, %v2332_v38  ;;  %v2359_v40 = vrot.slane %v2357_v13, 1  ;;  %v2377_v38 = vshll.u32 %v7692_v4, 16  ;;  %v2345_v13 = vsel %vm872_vm0, %v2340_v29, %v2344_v16 }
 0x16c   : > { %10431 = vst [vmem:[#allocation113_spill] sm:$0xff] %v7976_v25  ;;  %v7981_v48 = vpop.permute.xlu0 %1926  ;;  %v2422_v16 = vshll.u32 %v7713_v51, 16  ;;  %v2395_v29 = vshrl.u32 %v7706_v20, 16  ;;  %v2426_v20 = vshrl.u32 %v7713_v51, 16  ;;  %v2446_v51 = vshrl.u32 %v7727_v19, 16 }
 0x16d   : > { %10432 = vst [vmem:[#allocation114_spill] sm:$0xff] %v7981_v48  ;;  %2596 = vrot.lane.b32.xlu1 %v2293_v11, %s6752_s7  ;;  %v8002_v11 = vld [vmem:[%s6839_s30 + $0x150] ss:$0 sps:$4 sm:$0x11]   ;;  %v2379_v50 = vrot.slane %v2377_v38, 1 }
 0x16e   : > { %2594 = vrot.lane.b32.xlu0 %v2285_v33, %s6752_s7  ;;  %v2325_v33 = vsel %vm872_vm0, %v2320_v46, %v2324_v60  ;;  %v2390_v49 = vshll.u32 %v8002_v11, 16  ;;  %v2368_v60 = vor.u32 %v2366_v54, %v2364_v47  ;;  %v2372_v46 = vrot.slane %v2370_v18, 1 }
 0x16f   : > { %v7992_v9 = vpop.permute.xlu1 %1932  ;;  %v2404_v54 = vrot.slane %v2402_v15, 1  ;;  %v2406_v18 = vshrl.u32 %v7699_v28, 16  ;;  %v2424_v61 = vrot.slane %v2422_v16, 1 }
 0x170   : > { %10433 = vst [vmem:[#allocation115_spill] sm:$0xff] %v7992_v9  ;;  %v7997_v58 = vpop.permute.xlu0 %1930 }
 0x171   : > { %10434 = vst [vmem:[#allocation116_spill] sm:$0xff] %v7997_v58  ;;  %2600 = vrot.lane.b32.xlu1 %v2313_v36, %s6752_s7  ;;  %v2386_v36 = vshrl.u32 %v7685_v10, 16  ;;  %v2375_v10 = vshrl.u32 %v7692_v4, 16  ;;  %v2408_v15 = vor.u32 %v2406_v18, %v2404_v54  ;;  %v2462_v18 = vshll.u32 %v7741_v37, 16 }
 0x172   : > { %2598 = vrot.lane.b32.xlu0 %v2305_v57, %s6752_s7  ;;  %v2353_v57 = vsel %vm872_vm0, %v2348_v3, %v2352_v12  ;;  %v2392_v12 = vrot.slane %v2390_v49, 1  ;;  %v2428_v16 = vor.u32 %v2426_v20, %v2424_v61 }
 0x173   : > { %v8008_v8 = vpop.permute.xlu1 %1936  ;;  %v2388_v3 = vor.u32 %v2386_v36, %v2384_v6  ;;  %v2380_v38 = vor.u32 %v2379_v50, %v2375_v10  ;;  %v2417_v36 = vshll.u32 %v7720_v55, 16  ;;  %v2415_v10 = vshrl.u32 %v7720_v55, 16 }
 0x174   : > { %10435 = vst [vmem:[#allocation117_spill] sm:$0xff] %v8008_v8  ;;  %v8013_v22 = vpop.permute.xlu0 %1934 }
 0x175   : > { %10436 = vst [vmem:[#allocation118_spill] sm:$0xff] %v8013_v22  ;;  %2604 = vrot.lane.b32.xlu1 %v2333_v42, %s6752_s7  ;;  %v2360_v42 = vor.u32 %v2359_v40, %v2355_v1  ;;  %v2399_v1 = vrot.slane %v2397_v27, 1  ;;  %v2393_v49 = vsel %vm872_vm0, %v2388_v3, %v2392_v12  ;;  %v2430_v27 = vshll.u32 %v6463_v31, 16 }
 0x176   : > { %2602 = vrot.lane.b32.xlu0 %v2325_v33, %s6752_s7  ;;  %v2373_v33 = vsel %vm872_vm0, %v2368_v60, %v2372_v46  ;;  %v2442_v60 = vshll.u32 %v7727_v19, 16  ;;  %v2412_v46 = vrot.slane %v2410_v30, 1  ;;  %v2419_v50 = vrot.slane %v2417_v36, 1 }
 0x177   : > { %v8022_v53 = vpop.permute.xlu1 %1940  ;;  %v2365_v40 = vsel %vm872_vm0, %v2360_v42, %v2364_v47  ;;  %v2385_v42 = vsel %vm872_vm0, %v2380_v38, %v2384_v6  ;;  %v2437_v3 = vshll.u32 %v7734_v45, 16  ;;  %v6465_v6 = vld [vmem:[%s6839_s30 + $0x1a0] ss:$0 sps:$4 sm:$0x11]   ;;  %v2435_v38 = vshrl.u32 %v7734_v45, 16 }
 0x178   : > { %10437 = vst [vmem:[#allocation119_spill] sm:$0xff] %v8022_v53  ;;  %v8027_v52 = vpop.permute.xlu0 %1938  ;;  %v2444_v30 = vrot.slane %v2442_v60, 1  ;;  %v2457_v19 = vshll.u32 %v7748_v5, 16  ;;  %v2464_v60 = vrot.slane %v2462_v18, 1 }
 0x179   : > { %10438 = vst [vmem:[#allocation120_spill] sm:$0xff] %v8027_v52  ;;  %2608 = vrot.lane.b32.xlu1 %v2353_v57, %s6752_s7  ;;  %v6464_v57 = vld [vmem:[%s6839_s30 + $0x18c] ss:$0 sps:$4 sm:$0x11]   ;;  %v2439_v36 = vrot.slane %v2437_v3, 1  ;;  %v2455_v3 = vshrl.u32 %v7748_v5, 16 }
 0x17a   : > { %2606 = vrot.lane.b32.xlu0 %v2345_v13, %s6752_s7  ;;  %v2400_v13 = vor.u32 %v2399_v1, %v2395_v29  ;;  %v2450_v31 = vshll.u32 %v6464_v57, 16  ;;  %v2432_v29 = vrot.slane %v2430_v27, 1  ;;  %v2470_v27 = vshll.u32 %v6465_v6, 16 }
 0x17b   : > { %v8035_v4 = vpop.permute.xlu1 %1944 }
 0x17c   : > { %10439 = vst [vmem:[#allocation121_spill] sm:$0xff] %v8035_v4  ;;  %v8040_v28 = vpop.permute.xlu0 %1942  ;;  %v2405_v1 = vsel %vm872_vm0, %v2400_v13, %v2404_v54  ;;  %v2452_v57 = vrot.slane %v2450_v31, 1  ;;  %v2433_v20 = vsel %vm872_vm0, %v2428_v16, %v2432_v29  ;;  %v6466_v54 = vld [vmem:[%s6839_s30 + $0x1b4] ss:$0 sps:$4 sm:$0x11]   ;;  %v2482_v13 = vshll.u32 %v7755_v0, 16 }
 0x17d   : > { %10440 = vst [vmem:[#allocation122_spill] sm:$0xff] %v8040_v28  ;;  %2612 = vrot.lane.b32.xlu1 %v2373_v33, %s6752_s7  ;;  %v2413_v33 = vsel %vm872_vm0, %v2408_v15, %v2412_v46  ;;  %v2448_v15 = vor.u32 %v2446_v51, %v2444_v30  ;;  %v2466_v46 = vshrl.u32 %v7741_v37, 16  ;;  %v2459_v51 = vrot.slane %v2457_v19, 1  ;;  %v10445_v19 = vld [vmem:[#allocation87_spill] sm:$0xff] }
 0x17e   : > { %2610 = vrot.lane.b32.xlu0 %v2365_v40, %s6752_s7  ;;  %v2420_v40 = vor.u32 %v2419_v50, %v2415_v10  ;;  %v2440_v50 = vor.u32 %v2439_v36, %v2435_v38  ;;  %v2502_v16 = vshll.u32 %v7769_v24, 16  ;;  %v2472_v29 = vrot.slane %v2470_v27, 1  ;;  %v10446_v27 = vld [vmem:[#allocation89_spill] sm:$0xff] }
 0x17f   : > { %v8048_v47 = vpop.permute.xlu1 %1948  ;;  %v2453_v31 = vsel %vm872_vm0, %v2448_v15, %v2452_v57  ;;  %v2468_v18 = vor.u32 %v2466_v46, %v2464_v60  ;;  %v2484_v6 = vrot.slane %v2482_v13, 1  ;;  %v2460_v36 = vor.u32 %v2459_v51, %v2455_v3 }
 0x180   : > { %10441 = vst [vmem:[#allocation123_spill] sm:$0xff] %v8048_v47  ;;  %v8053_v12 = vpop.permute.xlu0 %1946  ;;  %v2425_v10 = vsel %vm872_vm0, %v2420_v40, %v2424_v61  ;;  %v2475_v61 = vshrl.u32 %v7762_v44, 16  ;;  %v2445_v38 = vsel %vm872_vm0, %v2440_v50, %v2444_v30  ;;  %v2497_v15 = vshll.u32 %v10445_v19, 16 }
 0x181   : > { %10442 = vst [vmem:[#allocation124_spill] sm:$0xff] %v8053_v12  ;;  %2616 = vrot.lane.b32.xlu1 %v2393_v49, %s6752_s7  ;;  %v2504_v46 = vrot.slane %v2502_v16, 1  ;;  %v2473_v13 = vsel %vm872_vm0, %v2468_v18, %v2472_v29  ;;  %v2465_v3 = vsel %vm872_vm0, %v2460_v36, %v2464_v60  ;;  %v2495_v51 = vshrl.u32 %v10445_v19, 16  ;;  %v8230_v12 = vld [vmem:[%s6839_s30 + $0x38] ss:$0 sps:$4 sm:$0x11]  }
 0x182   : > { %2614 = vrot.lane.b32.xlu0 %v2385_v42, %s6752_s7  ;;  %v2477_v42 = vshll.u32 %v7762_v44, 16  ;;  %v2542_v60 = vshll.u32 %v7810_v7, 16  ;;  %v3290_v2 = vshll.u32 %v8230_v12, 16 }
 0x183   : > { %v8061_v55 = vpop.permute.xlu1 %1952 }
 0x184   : > { %10443 = vst [vmem:[#allocation125_spill] sm:$0xff] %v8061_v55  ;;  %v8066_v49 = vpop.permute.xlu0 %1950  ;;  %v2490_v55 = vshll.u32 %v6466_v54, 16  ;;  %v2479_v40 = vrot.slane %v2477_v42, 1  ;;  %v2522_v54 = vshll.u32 %v10446_v27, 16 }
 0x185   : > { %10444 = vst [vmem:[#allocation126_spill] sm:$0xff] %v8066_v49  ;;  %2620 = vrot.lane.b32.xlu1 %v2413_v33, %s6752_s7  ;;  %v6467_v33 = vld [vmem:[%s6839_s30 + $0x1c8] ss:$0 sps:$4 sm:$0x11]  }
 0x186   : > { %2618 = vrot.lane.b32.xlu0 %v2405_v1, %s6752_s7  ;;  %v2486_v1 = vshrl.u32 %v7755_v0, 16  ;;  %v2506_v0 = vshrl.u32 %v7769_v24, 16  ;;  %v2492_v44 = vrot.slane %v2490_v55, 1  ;;  %v6468_v42 = vld [vmem:[%s6839_s30 + $0x1dc] ss:$0 sps:$4 sm:$0x11]   ;;  %v2480_v50 = vor.u32 %v2479_v40, %v2475_v61 }
 0x187   : > { %v8074_v45 = vpop.permute.xlu1 %1956  ;;  %v10447_v24 = vld [vmem:[#allocation92_spill] sm:$0xff]  ;;  %v2524_v29 = vrot.slane %v2522_v54, 1  ;;  %v2530_v49 = vshll.u32 %v6468_v42, 16  ;;  %v6469_v61 = vld [vmem:[%s6839_s30 + $0x1f0] ss:$0 sps:$4 sm:$0x11]  }
 0x188   : > { %v8079_v37 = vpop.permute.xlu0 %1954  ;;  %v2508_v18 = vor.u32 %v2506_v0, %v2504_v46  ;;  %v2485_v36 = vsel %vm872_vm0, %v2480_v50, %v2484_v6  ;;  %v2544_v42 = vrot.slane %v2542_v60, 1  ;;  %v2550_v47 = vshll.u32 %v6469_v61, 16  ;;  %v6556_v60 = vld [vmem:[%s6839_s30 + $0x1c] sm:$0xff]  }
 0x189   : > { %2624 = vrot.lane.b32.xlu1 %v2433_v20, %s6752_s7  ;;  %v2510_v20 = vshll.u32 %v6467_v33, 16  ;;  %v2517_v33 = vshll.u32 %v10447_v24, 16 }
 0x18a   : > { %2622 = vrot.lane.b32.xlu0 %v2425_v10, %s6752_s7  ;;  %v2488_v10 = vor.u32 %v2486_v1, %v2484_v6  ;;  %v2526_v1 = vshrl.u32 %v10446_v27, 16 }
 0x18b   : > { %v8087_v5 = vpop.permute.xlu1 %1960  ;;  %v2512_v55 = vrot.slane %v2510_v20, 1  ;;  %v2519_v0 = vrot.slane %v2517_v33, 1  ;;  %v10449_v20 = vld [vmem:[#allocation96_spill] sm:$0xff] }
 0x18c   : > { %v8092_v57 = vpop.permute.xlu0 %1958  ;;  %v2537_v54 = vshll.u32 %v10449_v20, 16 }
 0x18d   : > { %2628 = vrot.lane.b32.xlu1 %v2453_v31, %s6752_s7  ;;  %v2499_v31 = vrot.slane %v2497_v15, 1  ;;  %v2515_v15 = vshrl.u32 %v10447_v24, 16  ;;  %v2513_v27 = vsel %vm872_vm0, %v2508_v18, %v2512_v55  ;;  %v2552_v18 = vrot.slane %v2550_v47, 1 }
 0x18e   : > { %2626 = vrot.lane.b32.xlu0 %v2445_v38, %s6752_s7  ;;  %v2493_v38 = vsel %vm872_vm0, %v2488_v10, %v2492_v44  ;;  %v2528_v10 = vor.u32 %v2526_v1, %v2524_v29  ;;  %v2532_v44 = vrot.slane %v2530_v49, 1  ;;  %v2539_v24 = vrot.slane %v2537_v54, 1 }
 0x18f   : > { %v8100_v30 = vpop.permute.xlu1 %1964  ;;  %v2500_v19 = vor.u32 %v2499_v31, %v2495_v51  ;;  %v2520_v51 = vor.u32 %v2519_v0, %v2515_v15  ;;  %v2535_v31 = vshrl.u32 %v10449_v20, 16 }
 0x190   : > { %v8105_v16 = vpop.permute.xlu0 %1962  ;;  %v2533_v49 = vsel %vm872_vm0, %v2528_v10, %v2532_v44  ;;  %v6558_v10 = vld [vmem:[%s6839_s30 + $0x30] sm:$0xff]  }
 0x191   : > { %2632 = vrot.lane.b32.xlu1 %v2473_v13, %s6752_s7  ;;  %v2505_v50 = vsel %vm872_vm0, %v2500_v19, %v2504_v46  ;;  %v2525_v46 = vsel %vm872_vm0, %v2520_v51, %v2524_v29  ;;  %v2540_v1 = vor.u32 %v2539_v24, %v2535_v31  ;;  %v10455_v19 = vld [vmem:[#allocation85_spill] sm:$0xff]  ;;  %v2656_v44 = vrot.slane %v6558_v10, 1  ;;  %v6559_v31 = vld [vmem:[%s6839_s30 + $0x28] sm:$0xff]   ;;  %v10464_v10 = vld [vmem:[#allocation98_spill] sm:$0xff] }
 0x192   : > { %2630 = vrot.lane.b32.xlu0 %v2465_v3, %s6752_s7  ;;  %v2546_v3 = vshrl.u32 %v7810_v7, 16  ;;  %v2653_v15 = vrot.slane %v10455_v19, 1  ;;  %v6557_v29 = vld [vmem:[%s6839_s30 + $0x14] sm:$0xff]   ;;  %v2655_v24 = vrot.slane %v6559_v31, 1  ;;  %v6561_v19 = vld [vmem:[%s6839_s30 + $0x3c] sm:$0xff]  }
 0x193   : > { %v8113_v40 = vpop.permute.xlu1 %1968  ;;  %v2545_v0 = vsel %vm872_vm0, %v2540_v1, %v2544_v42  ;;  %v2650_v20 = vrot.slane %v6557_v29, 1  ;;  %v10461_v1 = vld [vmem:[#allocation94_spill] sm:$0xff] }
 0x194   : > { %10448 = vst [vmem:[#allocation87_spill] sm:$0xff] %v8113_v40  ;;  %v8118_v13 = vpop.permute.xlu0 %1966  ;;  %v2548_v7 = vor.u32 %v2546_v3, %v2544_v42  ;;  %v10458_v3 = vld [vmem:[#allocation90_spill] sm:$0xff]  ;;  %v10513_v40 = vld [vmem:[#allocation9_spill] sm:$0xff] }
 0x195   : > { %10450 = vst [vmem:[#allocation89_spill] sm:$0xff] %v8118_v13  ;;  %2636 = vrot.lane.b32.xlu1 %v2493_v38, %s6752_s7  ;;  %v6581_v13 = vld [vmem:[%s6839_s30 + $0xf0] sm:$0xff]  }
 0x196   : > { %2634 = vrot.lane.b32.xlu0 %v2485_v36, %s6752_s7  ;;  %v2553_v61 = vsel %vm872_vm0, %v2548_v7, %v2552_v18  ;;  %v2651_v36 = vrot.slane %v6556_v60, 1  ;;  %v6560_v18 = vld [vmem:[%s6839_s30 + $0x44] sm:$0xff]  }
 0x197   : > { %v8124_v6 = vpop.permute.xlu1 %1972 }
 0x198   : > { %10451 = vst [vmem:[#allocation92_spill] sm:$0xff] %v8124_v6  ;;  %v8128_v33 = vpop.permute.xlu0 %1970  ;;  %v2652_v42 = vsel %vm1449_vm1, %v2650_v20, %v2651_v36  ;;  %v6562_v20 = vld [vmem:[%s6839_s30 + $0x58] sm:$0xff]  }
 0x199   : > { %10452 = vst [vmem:[#allocation96_spill] sm:$0xff] %v8128_v33  ;;  %2640 = vrot.lane.b32.xlu1 %v2513_v27, %s6752_s7  ;;  %v2654_v27 = vsel %vm1449_vm1, %v2651_v36, %v2653_v15  ;;  %v2657_v36 = vsel %vm1449_vm1, %v2655_v24, %v2656_v44  ;;  %v2660_v15 = vrot.slane %v6561_v19, 1 }
 0x19a   : > { %2638 = vrot.lane.b32.xlu0 %v2505_v50, %s6752_s7  ;;  %v2658_v50 = vrot.slane %v10458_v3, 1  ;;  %v2668_v3 = vrot.slane %v10464_v10, 1  ;;  %v8195_v10 = vld [vmem:[%s6839_s30 + $0x28] sm:$0xff]  }
 0x19b   : > { %v8133_v55 = vpop.permute.xlu1 %1976 }
 0x19c   : > { %10453 = vst [vmem:[#allocation127_spill] sm:$0xff] %v8133_v55  ;;  %v8136_v38 = vpop.permute.xlu0 %1974  ;;  %v2659_v7 = vsel %vm1449_vm1, %v2656_v44, %v2658_v50 }
 0x19d   : > { %10454 = vst [vmem:[#allocation128_spill] sm:$0xff] %v8136_v38  ;;  %2644 = vrot.lane.b32.xlu1 %v2533_v49, %s6752_s7 }
 0x19e   : > { %2642 = vrot.lane.b32.xlu0 %v2525_v46, %s6752_s7  ;;  %v2661_v46 = vrot.slane %v6560_v18, 1  ;;  %v6564_v18 = vld [vmem:[%s6839_s30 + $0x10c] sm:$0xff]  }
 0x19f   : > { %v8143_v47 = vpop.permute.xlu1 %1980 }
 0x1a0   : > { %10456 = vst [vmem:[#allocation85_spill] sm:$0xff] %v8143_v47  ;;  %v8147_v54 = vpop.permute.xlu0 %1978  ;;  %v2662_v44 = vsel %vm1449_vm1, %v2660_v15, %v2661_v46  ;;  %v6565_v15 = vld [vmem:[%s6839_s30 + $0x104] sm:$0xff]  }
 0x1a1   : > { %10457 = vst [vmem:[#allocation129_spill] sm:$0xff] %v8147_v54  ;;  %2648 = vrot.lane.b32.xlu1 %v2553_v61, %s6752_s7  ;;  %v2663_v61 = vrot.slane %v10461_v1, 1  ;;  %v2711_v1 = vrot.slane %v6564_v18, 1  ;;  %v3277_v18 = vshll.u32 %v8195_v10, 16 }
 0x1a2   : > { %2646 = vrot.lane.b32.xlu0 %v2545_v0, %s6752_s7  ;;  %s9747_s7 = scalar_lea.vmem [#allocation2], %s9705_s29 }
 0x1a3   : > { %v8154_v51 = vpop.permute.xlu1 %1984  ;;  %v2664_v29 = vsel %vm1449_vm1, %v2661_v46, %v2663_v61  ;;  %v2713_v61 = vrot.slane %v7955_v34, 1  ;;  %s5499_s10 = sshll.u32 %s9747_s7, 4  ;;  %s10198_s10 = int_to_ptr.vmem [resolvable:$true] %s5499_s10 }
 0x1a4   : > { %10459 = vst [vmem:[#allocation90_spill] sm:$0xff] %v8154_v51  ;;  %v8158_v49 = vpop.permute.xlu0 %1982  ;;  %v6481_v51 = vld [vmem:[%s6839_s30 + $0x4c] ss:$0 sps:$4 sm:$0x11]   ;;  %s6669_s21 = scalar_lea.vmem %s10198_s10, 12288 }
 0x1a5   : > { %10460 = vst [vmem:[#allocation130_spill] sm:$0xff] %v8158_v49  ;;  %2772 = vrot.lane.b32.xlu1 %v2654_v27, %s6753_s8  ;;  %v2666_v27 = vrot.slane %v6562_v20, 1  ;;  %v2710_v20 = vrot.slane %v6565_v15, 1  ;;  %v2714_v34 = vsel %vm1449_vm1, %v2711_v1, %v2713_v61  ;;  %p6670_p12 = scmp.ne.s32.totalorder %s10198_s10, %s6669_s21 }
 0x1a6   : > { %2770 = vrot.lane.b32.xlu0 %v2652_v42, %s6753_s8  ;;  %v6563_v42 = vld [vmem:[%s6839_s30 + $0x50] sm:$0xff]  }
 0x1a7   : > { %v8165_v60 = vpop.permute.xlu1 %1988  ;;  %v2665_v31 = vrot.slane %v6563_v42, 1  ;;  %p6671_p13 = pnand %p6670_p12, %p6819_p4 }
 0x1a8   : > { %10462 = vst [vmem:[#allocation94_spill] sm:$0xff] %v8165_v60  ;;  %v8169_v0 = vpop.permute.xlu0 %1986 }
 0x1a9   : > { %10463 = vst [vmem:[#allocation131_spill] sm:$0xff] %v8169_v0  ;;  %2776 = vrot.lane.b32.xlu1 %v2659_v7, %s6753_s8  ;;  %v2669_v7 = vsel %vm1449_vm1, %v2666_v27, %v2668_v3  ;;  %v2667_v46 = vsel %vm1449_vm1, %v2665_v31, %v2666_v27  ;;  %v8202_v3 = vld [vmem:[%s6839_s30 + $0x120] sm:$0xff]   ;;  %v2712_v27 = vsel %vm1449_vm1, %v2710_v20, %v2711_v1  ;;  %v8210_v31 = vld [vmem:[%s6839_s30 + $0x30] sm:$0xff]   ;;  %v3275_v20 = vshrl.u32 %v8195_v10, 16  ;;  %p6672_p0 = pneg %p6671_p13 }
 0x1aa   : > { %2774 = vrot.lane.b32.xlu0 %v2657_v36, %s6753_s8  ;;  %v8187_v36 = vld [vmem:[%s6839_s30 + $0x118] sm:$0xff]  }
 0x1ab   : > { %v8176_v50 = vpop.permute.xlu1 %1992  ;;  %v3517_v42 = vshll.u32 %v8187_v36, 16  ;;  %v3515_v61 = vshrl.u32 %v8187_v36, 16 }
 0x1ac   : > { %10465 = vst [vmem:[#allocation98_spill] sm:$0xff] %v8176_v50  ;;  %v8180_v24 = vpop.permute.xlu0 %1990 }
 0x1ad   : > { %10466 = vst [vmem:[#allocation132_spill] sm:$0xff] %v8180_v24  ;;  %2780 = vrot.lane.b32.xlu1 %v2664_v29, %s6753_s8 }
 0x1ae   : > { %2778 = vrot.lane.b32.xlu0 %v2662_v44, %s6753_s8 }
 0x1af   : > { %v8190_v19 = vpop.permute.xlu1 %1996 }
 0x1b0   : > { %10467 = vst [vmem:[#allocation133_spill] sm:$0xff] %v8190_v19  ;;  %v8197_v29 = vpop.permute.xlu0 %1994  ;;  %v8222_v19 = vld [vmem:[%s6839_s30 + $0x128] ss:$0 sps:$4 sm:$0x11]  }
 0x1b1   : > { %10468 = vst [vmem:[#allocation134_spill] sm:$0xff] %v8197_v29  ;;  %2784 = vrot.lane.b32.xlu1 %v2669_v7, %s6753_s8  ;;  %v6498_v7 = vld [vmem:[%s10252_s1] sm:$0xff]   ;;  %v3530_v28 = vshll.u32 %v8222_v19, 16 }
 0x1b2   : > { %2782 = vrot.lane.b32.xlu0 %v2667_v46, %s6753_s8  ;;  %v3519_v46 = vrot.slane %v3517_v42, 1  ;;  %6149 = vmatprep.subr.bf16.mxu0 %v6498_v7  ;;  %v6499_v42 = vld [vmem:[%s10252_s1 + $0x8] sm:$0xff]  }
 0x1b3   : > { %v8206_v44 = vpop.permute.xlu1 %2000  ;;  %6251 = vmatprep.subr.bf16.mxu1 %v6498_v7  ;;  %6150 = vmatpush3.bf16.msra.mxu0 %v6498_v7 }
 0x1b4   : > { %10469 = vst [vmem:[#allocation135_spill] sm:$0xff] %v8206_v44  ;;  %v8213_v15 = vpop.permute.xlu0 %1998  ;;  %v3522_v44 = vshll.u32 %v8202_v3, 16  ;;  %6254 = vmatpush3.bf16.msra.mxu1 %v6498_v7  ;;  %6151 = vmatprep.subr.bf16.mxu0 %v6499_v42  ;;  %v3286_v7 = vshrl.u32 %v8210_v31, 16 }
 0x1b5   : > { %10470 = vst [vmem:[#allocation136_spill] sm:$0xff] %v8213_v15  ;;  %2820 = vrot.lane.b32.xlu1 %v2714_v34, %s6753_s8  ;;  %v3279_v15 = vrot.slane %v3277_v18, 1  ;;  %v3282_v34 = vshll.u32 %v8210_v31, 16  ;;  %v3526_v18 = vshrl.u32 %v8202_v3, 16  ;;  %6252 = vmatprep.subr.bf16.mxu1 %v6499_v42 }
 0x1b6   : > { %2818 = vrot.lane.b32.xlu0 %v2712_v27, %s6753_s8  ;;  %v3520_v27 = vor.u32 %v3519_v46, %v3515_v61  ;;  %v3524_v50 = vrot.slane %v3522_v44, 1  ;;  %v6502_v44 = vld [vmem:[%s10252_s1 + $0x10] ss:$0 sps:$4 sm:$0x33]  }
 0x1b7   : > { %v8225_v1 = vpop.permute.xlu1 %2556  ;;  %v3280_v32 = vor.u32 %v3279_v15, %v3275_v20  ;;  %v3284_v24 = vrot.slane %v3282_v34, 1  ;;  %6152 = vmatpush3.bf16.msra.mxu0 %v6499_v42  ;;  %v3532_v20 = vrot.slane %v3530_v28, 1  ;;  %v4968_v53 = vsel %vm4966_vm2, %v6502_v44, 0 }
 0x1b8   : > { %v8232_v29 = vpop.permute.xlu0 %2554  ;;  %6255 = vmatpush3.bf16.msra.mxu1 %v6499_v42  ;;  %v3525_v15 = vsel %vm872_vm0, %v3520_v27, %v3524_v50  ;;  %v3528_v46 = vor.u32 %v3526_v18, %v3524_v50  ;;  %6257 = vmatprep.subr.msk.bf16.mxu0 %vm4966_vm2, %v6502_v44  ;;  %v3292_v42 = vrot.slane %v3290_v2, 1  ;;  %v3910_v50 = vrot.slane %v8187_v36, 1 }
 0x1b9   : > { %3154 = vrot.lane.b32.xlu1 %v8187_v36, %s6754_s11  ;;  %v3285_v60 = vsel %vm872_vm0, %v3280_v32, %v3284_v24  ;;  %v3288_v52 = vor.u32 %v3286_v7, %v3284_v24  ;;  %6258 = vmatprep.subr.msk.bf16.mxu1 %vm4966_vm2, %v6502_v44  ;;  %v3911_v27 = vrot.slane %v8202_v3, 1  ;;  %v3850_v2 = vrot.slane %v8195_v10, 1  ;;  %v6566_v44 = vld [vmem:[%s6839_s30 + $0x120] sm:$0xff]  }
 0x1ba   : > { %3106 = vrot.lane.b32.xlu0 %v8195_v10, %s6754_s11  ;;  %v3533_v28 = vsel %vm872_vm0, %v3528_v46, %v3532_v20  ;;  %v3851_v24 = vrot.slane %v8210_v31, 1  ;;  %v3913_v36 = vrot.slane %v8222_v19, 1  ;;  %v3853_v10 = vrot.slane %v8230_v12, 1  ;;  %v8289_v46 = vld [vmem:[%s6839_s30 + $0x12c] sm:$0xff]  }
 0x1bb   : > { %v8243_v4 = vpop.permute.xlu1 %2560  ;;  %6154 = vmatpush3.bf16.msra.mxu0 %v4968_v53  ;;  %v3293_v32 = vsel %vm872_vm0, %v3288_v52, %v3292_v42  ;;  %v2716_v19 = vrot.slane %v6566_v44, 1  ;;  %v6567_v42 = vld [vmem:[%s6839_s30 + $0x118] sm:$0xff]   ;;  %v3915_v58 = vrot.slane %v8289_v46, 1 }
 0x1bc   : > { %v8247_v61 = vpop.permute.xlu0 %2558  ;;  %6256 = vmatpush3.bf16.msra.mxu1 %v4968_v53  ;;  %v3912_v53 = vsel %vm1449_vm1, %v3910_v50, %v3911_v27  ;;  %v3852_v52 = vsel %vm1449_vm1, %v3850_v2, %v3851_v24  ;;  %v3854_v12 = vsel %vm1449_vm1, %v3851_v24, %v3853_v10  ;;  %v8297_v50 = vld [vmem:[%s6839_s30 + $0x3c] sm:$0xff]   ;;  %v3537_v2 = vshll.u32 %v8289_v46, 16 }
 0x1bd   : > { %3156 = vrot.lane.b32.xlu1 %v8202_v3, %s6754_s11 }
 0x1be   : > { %3108 = vrot.lane.b32.xlu0 %v8210_v31, %s6754_s11  ;;  %v3914_v31 = vsel %vm1449_vm1, %v3911_v27, %v3913_v36  ;;  %v8304_v27 = vld [vmem:[%s6839_s30 + $0x134] sm:$0xff]   ;;  %v8312_v36 = vld [vmem:[%s6839_s30 + $0x44] sm:$0xff]   ;;  %v3539_v44 = vrot.slane %v3537_v2, 1 }
 0x1bf   : > { %v8257_v34 = vpop.permute.xlu1 %2564  ;;  %v3302_v21 = vshll.u32 %v8312_v36, 16  ;;  %v3546_v8 = vshrl.u32 %v8304_v27, 16 }
 0x1c0   : > { %v8260_v0 = vpop.permute.xlu0 %2562 }
 0x1c1   : > { %3802 = vrot.lane.b32.xlu1 %v3525_v15, %s6755_s26  ;;  %v2718_v15 = vrot.slane %v7973_v17, 1 }
 0x1c2   : > { %3754 = vrot.lane.b32.xlu0 %v3285_v60, %s6755_s26 }
 0x1c3   : > { %v8267_v18 = vpop.permute.xlu1 %2568  ;;  %v2719_v17 = vsel %vm1449_vm1, %v2716_v19, %v2718_v15  ;;  %v3542_v15 = vshll.u32 %v8304_v27, 16 }
 0x1c4   : > { %10471 = vst [vmem:[#allocation137_spill] sm:$0xff] %v8267_v18  ;;  %v8272_v7 = vpop.permute.xlu0 %2566  ;;  %v6580_v18 = vld [vmem:[%s6839_s30 + $0xf8] sm:$0xff]  }
 0x1c5   : > { %10472 = vst [vmem:[#allocation138_spill] sm:$0xff] %v8272_v7  ;;  %3804 = vrot.lane.b32.xlu1 %v3533_v28, %s6755_s26  ;;  %v2715_v28 = vrot.slane %v6567_v42, 1  ;;  %v6480_v42 = vld [vmem:[%s6839_s30 + $0x13c] ss:$0 sps:$4 sm:$0x11]   ;;  %v3544_v2 = vrot.slane %v3542_v15, 1  ;;  %v4118_v23 = vsel %vm4066_vm3, %v6580_v18, %v10513_v40 }
 0x1c6   : > { %3756 = vrot.lane.b32.xlu0 %v3293_v32, %s6755_s26  ;;  %v3550_v49 = vshll.u32 %v6480_v42, 16  ;;  %v10518_v18 = vld [vmem:[#allocation78_spill] sm:$0xff] }
 0x1c7   : > { %v8278_v60 = vpop.permute.xlu1 %2572  ;;  %v2717_v24 = vsel %vm1449_vm1, %v2715_v28, %v2716_v19  ;;  %v3295_v19 = vshrl.u32 %v8297_v50, 16 }
 0x1c8   : > { %10473 = vst [vmem:[#allocation139_spill] sm:$0xff] %v8278_v60  ;;  %v8282_v3 = vpop.permute.xlu0 %2570  ;;  %v3552_v15 = vrot.slane %v3550_v49, 1 }
 0x1c9   : > { %10474 = vst [vmem:[#allocation140_spill] sm:$0xff] %v8282_v3  ;;  %4018 = vrot.lane.b32.xlu1 %v3912_v53, %s6756_s27 }
 0x1ca   : > { %3970 = vrot.lane.b32.xlu0 %v3852_v52, %s6756_s27  ;;  %v3297_v52 = vshll.u32 %v8297_v50, 16 }
 0x1cb   : > { %v8292_v20 = vpop.permute.xlu1 %2576 }
 0x1cc   : > { %10475 = vst [vmem:[#allocation141_spill] sm:$0xff] %v8292_v20  ;;  %v8299_v32 = vpop.permute.xlu0 %2574  ;;  %v3299_v28 = vrot.slane %v3297_v52, 1  ;;  %v3304_v52 = vrot.slane %v3302_v21, 1 }
 0x1cd   : > { %10476 = vst [vmem:[#allocation142_spill] sm:$0xff] %v8299_v32  ;;  %4020 = vrot.lane.b32.xlu1 %v3914_v31, %s6756_s27  ;;  %v3535_v31 = vshrl.u32 %v8289_v46, 16 }
 0x1ce   : > { %3972 = vrot.lane.b32.xlu0 %v3854_v12, %s6756_s27 }
 0x1cf   : > { %v8308_v53 = vpop.permute.xlu1 %2580 }
 0x1d0   : > { %10477 = vst [vmem:[#allocation143_spill] sm:$0xff] %v8308_v53  ;;  %v8315_v10 = vpop.permute.xlu0 %2578  ;;  %v3310_v53 = vshll.u32 %v6481_v51, 16 }
 0x1d1   : > { %10478 = vst [vmem:[#allocation144_spill] sm:$0xff] %v8315_v10  ;;  %2824 = vrot.lane.b32.xlu1 %v2719_v17, %s6753_s8  ;;  %v3540_v17 = vor.u32 %v3539_v44, %v3535_v31  ;;  %v3306_v10 = vshrl.u32 %v8312_v36, 16  ;;  %v3548_v44 = vor.u32 %v3546_v8, %v3544_v2  ;;  %v3916_v8 = vrot.slane %v8304_v27, 1 }
 0x1d2   : > { %2822 = vrot.lane.b32.xlu0 %v2717_v24, %s6753_s8 }
 0x1d3   : > { %v8322_v12 = vpop.permute.xlu1 %2584  ;;  %v3545_v31 = vsel %vm872_vm0, %v3540_v17, %v3544_v2  ;;  %v3308_v21 = vor.u32 %v3306_v10, %v3304_v52  ;;  %v3855_v10 = vrot.slane %v8297_v50, 1 }
 0x1d4   : > { %10479 = vst [vmem:[#allocation145_spill] sm:$0xff] %v8322_v12  ;;  %v8327_v22 = vpop.permute.xlu0 %2582  ;;  %v3300_v12 = vor.u32 %v3299_v28, %v3295_v19  ;;  %v3312_v28 = vrot.slane %v3310_v53, 1  ;;  %v3856_v53 = vrot.slane %v8312_v36, 1 }
 0x1d5   : > { %10480 = vst [vmem:[#allocation146_spill] sm:$0xff] %v8327_v22  ;;  %3158 = vrot.lane.b32.xlu1 %v8289_v46, %s6754_s11  ;;  %v3917_v46 = vsel %vm1449_vm1, %v3915_v58, %v3916_v8  ;;  %v2723_v58 = vrot.slane %v7988_v62, 1 }
 0x1d6   : > { %3110 = vrot.lane.b32.xlu0 %v8297_v50, %s6754_s11  ;;  %v3305_v19 = vsel %vm872_vm0, %v3300_v12, %v3304_v52  ;;  %v3313_v17 = vsel %vm872_vm0, %v3308_v21, %v3312_v28  ;;  %v3857_v52 = vsel %vm1449_vm1, %v3855_v10, %v3856_v53  ;;  %v8382_v28 = vld [vmem:[%s6839_s30 + $0x50] sm:$0xff]  }
 0x1d7   : > { %v8334_v24 = vpop.permute.xlu1 %2588 }
 0x1d8   : > { %10481 = vst [vmem:[#allocation147_spill] sm:$0xff] %v8334_v24  ;;  %v8337_v47 = vpop.permute.xlu0 %2586 }
 0x1d9   : > { %10482 = vst [vmem:[#allocation148_spill] sm:$0xff] %v8337_v47  ;;  %3160 = vrot.lane.b32.xlu1 %v8304_v27, %s6754_s11  ;;  %v3553_v47 = vsel %vm872_vm0, %v3548_v44, %v3552_v15  ;;  %v3918_v27 = vrot.slane %v6480_v42, 1  ;;  %v8374_v42 = vld [vmem:[%s6839_s30 + $0x140] sm:$0xff]  }
 0x1da   : > { %3112 = vrot.lane.b32.xlu0 %v8312_v36, %s6754_s11  ;;  %v3557_v10 = vshll.u32 %v8374_v42, 16  ;;  %v3920_v38 = vrot.slane %v8374_v42, 1 }
 0x1db   : > { %v8344_v22 = vpop.permute.xlu1 %2592  ;;  %v3919_v36 = vsel %vm1449_vm1, %v3916_v8, %v3918_v27  ;;  %v8389_v8 = vld [vmem:[%s6839_s30 + $0x148] sm:$0xff]   ;;  %v8397_v27 = vld [vmem:[%s6839_s30 + $0x58] sm:$0xff]  }
 0x1dc   : > { %10483 = vst [vmem:[#allocation149_spill] sm:$0xff] %v8344_v22  ;;  %v8347_v24 = vpop.permute.xlu0 %2590  ;;  %v3326_v54 = vshrl.u32 %v8397_v27, 16 }
 0x1dd   : > { %10484 = vst [vmem:[#allocation150_spill] sm:$0xff] %v8347_v24  ;;  %3806 = vrot.lane.b32.xlu1 %v3545_v31, %s6755_s26  ;;  %v3858_v31 = vrot.slane %v6481_v51, 1 }
 0x1de   : > { %3758 = vrot.lane.b32.xlu0 %v3305_v19, %s6755_s26  ;;  %v6569_v19 = vld [vmem:[%s6839_s30 + $0x12c] sm:$0xff]  }
 0x1df   : > { %v8354_v49 = vpop.permute.xlu1 %2596  ;;  %v3859_v51 = vsel %vm1449_vm1, %v3856_v53, %v3858_v31  ;;  %v2720_v21 = vrot.slane %v6569_v19, 1  ;;  %v6486_v19 = vld [vmem:[%s6839_s30 + $0x150] ss:$0 sps:$4 sm:$0x11]  }
 0x1e0   : > { %10485 = vst [vmem:[#allocation151_spill] sm:$0xff] %v8354_v49  ;;  %v8359_v12 = vpop.permute.xlu0 %2594  ;;  %v3570_v22 = vshll.u32 %v6486_v19, 16 }
 0x1e1   : > { %10486 = vst [vmem:[#allocation152_spill] sm:$0xff] %v8359_v12  ;;  %3808 = vrot.lane.b32.xlu1 %v3553_v47, %s6755_s26  ;;  %v6568_v47 = vld [vmem:[%s6839_s30 + $0x134] sm:$0xff]   ;;  %v3566_v12 = vshrl.u32 %v8389_v8, 16 }
 0x1e2   : > { %3760 = vrot.lane.b32.xlu0 %v3313_v17, %s6755_s26  ;;  %v2721_v44 = vrot.slane %v6568_v47, 1  ;;  %v3559_v47 = vrot.slane %v3557_v10, 1 }
 0x1e3   : > { %v8364_v2 = vpop.permute.xlu1 %2600 }
 0x1e4   : > { %10487 = vst [vmem:[#allocation153_spill] sm:$0xff] %v8364_v2  ;;  %v8367_v50 = vpop.permute.xlu0 %2598  ;;  %v2724_v62 = vsel %vm1449_vm1, %v2721_v44, %v2723_v58  ;;  %v2722_v53 = vsel %vm1449_vm1, %v2720_v21, %v2721_v44  ;;  %v3562_v58 = vshll.u32 %v8389_v8, 16  ;;  %v3315_v44 = vshrl.u32 %v8382_v28, 16 }
 0x1e5   : > { %10488 = vst [vmem:[#allocation154_spill] sm:$0xff] %v8367_v50  ;;  %4022 = vrot.lane.b32.xlu1 %v3917_v46, %s6756_s27  ;;  %v3322_v2 = vshll.u32 %v8397_v27, 16  ;;  %v6487_v50 = vld [vmem:[%s6839_s30 + $0x60] ss:$0 sps:$4 sm:$0x11]  }
 0x1e6   : > { %3974 = vrot.lane.b32.xlu0 %v3857_v52, %s6756_s27  ;;  %v3317_v52 = vshll.u32 %v8382_v28, 16  ;;  %v3564_v10 = vrot.slane %v3562_v58, 1  ;;  %v3330_v9 = vshll.u32 %v6487_v50, 16  ;;  %v3572_v58 = vrot.slane %v3570_v22, 1 }
 0x1e7   : > { %v8377_v15 = vpop.permute.xlu1 %2604 }
 0x1e8   : > { %v8384_v17 = vpop.permute.xlu0 %2602  ;;  %v3319_v21 = vrot.slane %v3317_v52, 1  ;;  %v3324_v52 = vrot.slane %v3322_v2, 1 }
 0x1e9   : > { %4024 = vrot.lane.b32.xlu1 %v3919_v36, %s6756_s27  ;;  %v3555_v36 = vshrl.u32 %v8374_v42, 16 }
 0x1ea   : > { %3976 = vrot.lane.b32.xlu0 %v3859_v51, %s6756_s27  ;;  %v3320_v24 = vor.u32 %v3319_v21, %v3315_v44  ;;  %v3328_v2 = vor.u32 %v3326_v54, %v3324_v52  ;;  %v3332_v21 = vrot.slane %v3330_v9, 1  ;;  %v3860_v54 = vrot.slane %v8382_v28, 1 }
 0x1eb   : > { %v8393_v46 = vpop.permute.xlu1 %2608  ;;  %v3861_v9 = vrot.slane %v8397_v27, 1 }
 0x1ec   : > { %v8400_v31 = vpop.permute.xlu0 %2606  ;;  %v3325_v44 = vsel %vm872_vm0, %v3320_v24, %v3324_v52 }
 0x1ed   : > { %2828 = vrot.lane.b32.xlu1 %v2724_v62, %s6753_s8  ;;  %v3560_v62 = vor.u32 %v3559_v47, %v3555_v36  ;;  %v3568_v47 = vor.u32 %v3566_v12, %v3564_v10  ;;  %v3921_v12 = vrot.slane %v8389_v8, 1  ;;  %v3862_v52 = vsel %vm1449_vm1, %v3860_v54, %v3861_v9 }
 0x1ee   : > { %2826 = vrot.lane.b32.xlu0 %v2722_v53, %s6753_s8 }
 0x1ef   : > { %v8407_v51 = vpop.permute.xlu1 %2612  ;;  %v3565_v36 = vsel %vm872_vm0, %v3560_v62, %v3564_v10  ;;  %v3573_v48 = vsel %vm872_vm0, %v3568_v47, %v3572_v58  ;;  %v3333_v62 = vsel %vm872_vm0, %v3328_v2, %v3332_v21  ;;  %v8467_v21 = vld [vmem:[%s6839_s30 + $0x64] sm:$0xff]  }
 0x1f0   : > { %10489 = vst [vmem:[#allocation155_spill] sm:$0xff] %v8407_v51  ;;  %v8412_v49 = vpop.permute.xlu0 %2610  ;;  %v10517_v51 = vld [vmem:[#allocation77_spill] sm:$0xff] }
 0x1f1   : > { %3162 = vrot.lane.b32.xlu1 %v8374_v42, %s6754_s11  ;;  %v3922_v42 = vsel %vm1449_vm1, %v3920_v38, %v3921_v12  ;;  %v2728_v38 = vrot.slane %v8002_v11, 1  ;;  %v4215_v40 = vsel %vm4163_vm4, %v4118_v23, %v10517_v51 }
 0x1f2   : > { %3114 = vrot.lane.b32.xlu0 %v8382_v28, %s6754_s11 }
 0x1f3   : > { %v8419_v53 = vpop.permute.xlu1 %2616 }
 0x1f4   : > { %10490 = vst [vmem:[#allocation156_spill] sm:$0xff] %v8419_v53  ;;  %v8422_v32 = vpop.permute.xlu0 %2614 }
 0x1f5   : > { %10491 = vst [vmem:[#allocation157_spill] sm:$0xff] %v8422_v32  ;;  %3164 = vrot.lane.b32.xlu1 %v8389_v8, %s6754_s11  ;;  %v3923_v8 = vrot.slane %v6486_v19, 1  ;;  %v8459_v19 = vld [vmem:[%s6839_s30 + $0x154] sm:$0xff]  }
 0x1f6   : > { %3116 = vrot.lane.b32.xlu0 %v8397_v27, %s6754_s11  ;;  %v3577_v54 = vshll.u32 %v8459_v19, 16  ;;  %v3925_v25 = vrot.slane %v8459_v19, 1 }
 0x1f7   : > { %v8429_v20 = vpop.permute.xlu1 %2620  ;;  %v3924_v27 = vsel %vm1449_vm1, %v3921_v12, %v3923_v8  ;;  %v8474_v12 = vld [vmem:[%s6839_s30 + $0x15c] sm:$0xff]   ;;  %v8482_v8 = vld [vmem:[%s6839_s30 + $0x6c] sm:$0xff]  }
 0x1f8   : > { %10492 = vst [vmem:[#allocation158_spill] sm:$0xff] %v8429_v20  ;;  %v8432_v55 = vpop.permute.xlu0 %2618  ;;  %v8587_v20 = vld [vmem:[%s6839_s30 + $0x178] ss:$0 sps:$4 sm:$0x11]  }
 0x1f9   : > { %10493 = vst [vmem:[#allocation159_spill] sm:$0xff] %v8432_v55  ;;  %3810 = vrot.lane.b32.xlu1 %v3565_v36, %s6755_s26  ;;  %v3863_v36 = vrot.slane %v6487_v50, 1  ;;  %v8595_v55 = vld [vmem:[%s6839_s30 + $0x88] ss:$0 sps:$4 sm:$0x11]  }
 0x1fa   : > { %3762 = vrot.lane.b32.xlu0 %v3325_v44, %s6755_s26  ;;  %v6571_v44 = vld [vmem:[%s6839_s30 + $0x140] sm:$0xff]  }
 0x1fb   : > { %v8439_v22 = vpop.permute.xlu1 %2624  ;;  %v3864_v50 = vsel %vm1449_vm1, %v3861_v9, %v3863_v36  ;;  %v2725_v2 = vrot.slane %v6571_v44, 1  ;;  %v6492_v44 = vld [vmem:[%s6839_s30 + $0x164] ss:$0 sps:$4 sm:$0x11]  }
 0x1fc   : > { %10494 = vst [vmem:[#allocation160_spill] sm:$0xff] %v8439_v22  ;;  %v8444_v24 = vpop.permute.xlu0 %2622 }
 0x1fd   : > { %10495 = vst [vmem:[#allocation161_spill] sm:$0xff] %v8444_v24  ;;  %3812 = vrot.lane.b32.xlu1 %v3573_v48, %s6755_s26  ;;  %v6570_v48 = vld [vmem:[%s6839_s30 + $0x148] sm:$0xff]  }
 0x1fe   : > { %3764 = vrot.lane.b32.xlu0 %v3333_v62, %s6755_s26  ;;  %v2726_v47 = vrot.slane %v6570_v48, 1  ;;  %v3579_v48 = vrot.slane %v3577_v54, 1 }
 0x1ff   : > { %v8449_v10 = vpop.permute.xlu1 %2628 }
 0x200   : > { %10496 = vst [vmem:[#allocation162_spill] sm:$0xff] %v8449_v10  ;;  %v8452_v28 = vpop.permute.xlu0 %2626  ;;  %v2729_v11 = vsel %vm1449_vm1, %v2726_v47, %v2728_v38  ;;  %v2727_v9 = vsel %vm1449_vm1, %v2725_v2, %v2726_v47  ;;  %v3582_v38 = vshll.u32 %v8474_v12, 16  ;;  %v3335_v47 = vshrl.u32 %v8467_v21, 16 }
 0x201   : > { %10497 = vst [vmem:[#allocation163_spill] sm:$0xff] %v8452_v28  ;;  %4026 = vrot.lane.b32.xlu1 %v3922_v42, %s6756_s27  ;;  %v3590_v10 = vshll.u32 %v6492_v44, 16  ;;  %v3346_v28 = vshrl.u32 %v8482_v8, 16 }
 0x202   : > { %3978 = vrot.lane.b32.xlu0 %v3862_v52, %s6756_s27  ;;  %v3337_v52 = vshll.u32 %v8467_v21, 16  ;;  %v3584_v54 = vrot.slane %v3582_v38, 1 }
 0x203   : > { %v8462_v58 = vpop.permute.xlu1 %2632  ;;  %v3592_v38 = vrot.slane %v3590_v10, 1 }
 0x204   : > { %10498 = vst [vmem:[#allocation164_spill] sm:$0xff] %v8462_v58  ;;  %v8469_v62 = vpop.permute.xlu0 %2630  ;;  %v3339_v2 = vrot.slane %v3337_v52, 1  ;;  %v6493_v58 = vld [vmem:[%s6839_s30 + $0x74] ss:$0 sps:$4 sm:$0x11]  }
 0x205   : > { %10499 = vst [vmem:[#allocation165_spill] sm:$0xff] %v8469_v62  ;;  %4028 = vrot.lane.b32.xlu1 %v3924_v27, %s6756_s27  ;;  %v3575_v27 = vshrl.u32 %v8459_v19, 16  ;;  %v3350_v22 = vshll.u32 %v6493_v58, 16 }
 0x206   : > { %3980 = vrot.lane.b32.xlu0 %v3864_v50, %s6756_s27 }
 0x207   : > { %v8478_v42 = vpop.permute.xlu1 %2636 }
 0x208   : > { %10500 = vst [vmem:[#allocation166_spill] sm:$0xff] %v8478_v42  ;;  %v8485_v36 = vpop.permute.xlu0 %2634  ;;  %v3342_v42 = vshll.u32 %v8482_v8, 16 }
 0x209   : > { %10501 = vst [vmem:[#allocation167_spill] sm:$0xff] %v8485_v36  ;;  %2832 = vrot.lane.b32.xlu1 %v2729_v11, %s6753_s8  ;;  %v3580_v11 = vor.u32 %v3579_v48, %v3575_v27  ;;  %v3586_v36 = vshrl.u32 %v8474_v12, 16 }
 0x20a   : > { %2830 = vrot.lane.b32.xlu0 %v2727_v9, %s6753_s8  ;;  %v3344_v52 = vrot.slane %v3342_v42, 1 }
 0x20b   : > { %v8492_v50 = vpop.permute.xlu1 %2640  ;;  %v3585_v27 = vsel %vm872_vm0, %v3580_v11, %v3584_v54  ;;  %v3588_v48 = vor.u32 %v3586_v36, %v3584_v54  ;;  %v3926_v36 = vrot.slane %v8474_v12, 1 }
 0x20c   : > { %10502 = vst [vmem:[#allocation168_spill] sm:$0xff] %v8492_v50  ;;  %v8497_v62 = vpop.permute.xlu0 %2638  ;;  %v3340_v50 = vor.u32 %v3339_v2, %v3335_v47  ;;  %v3348_v42 = vor.u32 %v3346_v28, %v3344_v52  ;;  %v3352_v2 = vrot.slane %v3350_v22, 1  ;;  %v3865_v22 = vrot.slane %v8467_v21, 1 }
 0x20d   : > { %10503 = vst [vmem:[#allocation169_spill] sm:$0xff] %v8497_v62  ;;  %3166 = vrot.lane.b32.xlu1 %v8459_v19, %s6754_s11  ;;  %v3866_v28 = vrot.slane %v8482_v8, 1  ;;  %v3927_v19 = vsel %vm1449_vm1, %v3925_v25, %v3926_v36 }
 0x20e   : > { %3118 = vrot.lane.b32.xlu0 %v8467_v21, %s6754_s11  ;;  %v3345_v47 = vsel %vm872_vm0, %v3340_v50, %v3344_v52  ;;  %v3353_v11 = vsel %vm872_vm0, %v3348_v42, %v3352_v2  ;;  %v6575_v2 = vld [vmem:[%s6839_s30 + $0x6c] sm:$0xff]  }
 0x20f   : > { %v8504_v9 = vpop.permute.xlu1 %2644  ;;  %v3867_v52 = vsel %vm1449_vm1, %v3865_v22, %v3866_v28 }
 0x210   : > { %10504 = vst [vmem:[#allocation170_spill] sm:$0xff] %v8504_v9  ;;  %v8507_v24 = vpop.permute.xlu0 %2642 }
 0x211   : > { %10505 = vst [vmem:[#allocation171_spill] sm:$0xff] %v8507_v24  ;;  %3168 = vrot.lane.b32.xlu1 %v8474_v12, %s6754_s11  ;;  %v3593_v24 = vsel %vm872_vm0, %v3588_v48, %v3592_v38  ;;  %v3928_v12 = vrot.slane %v6492_v44, 1 }
 0x212   : > { %3120 = vrot.lane.b32.xlu0 %v8482_v8, %s6754_s11  ;;  %v6573_v8 = vld [vmem:[%s6839_s30 + $0x15c] sm:$0xff]  }
 0x213   : > { %v8514_v62 = vpop.permute.xlu1 %2648  ;;  %v3929_v21 = vsel %vm1449_vm1, %v3926_v36, %v3928_v12  ;;  %v2731_v44 = vrot.slane %v6573_v8, 1 }
 0x214   : > { %10506 = vst [vmem:[#allocation172_spill] sm:$0xff] %v8514_v62  ;;  %v8517_v9 = vpop.permute.xlu0 %2646 }
 0x215   : > { %10507 = vst [vmem:[#allocation173_spill] sm:$0xff] %v8517_v9  ;;  %3814 = vrot.lane.b32.xlu1 %v3585_v27, %s6755_s26  ;;  %v3868_v27 = vrot.slane %v6493_v58, 1  ;;  %v6574_v58 = vld [vmem:[%s6839_s30 + $0x64] sm:$0xff]  }
 0x216   : > { %3766 = vrot.lane.b32.xlu0 %v3345_v47, %s6755_s26  ;;  %v2670_v42 = vrot.slane %v6574_v58, 1  ;;  %v8563_v58 = vld [vmem:[%s6839_s30 + $0x78] sm:$0xff]  }
 0x217   : > { %v8524_v10 = vpop.permute.xlu1 %2772  ;;  %v3869_v47 = vsel %vm1449_vm1, %v3866_v28, %v3868_v27  ;;  %v3357_v62 = vshll.u32 %v8563_v58, 16 }
 0x218   : > { %v8529_v50 = vpop.permute.xlu0 %2770 }
 0x219   : > { %3816 = vrot.lane.b32.xlu1 %v3593_v24, %s6755_s26  ;;  %v6572_v24 = vld [vmem:[%s6839_s30 + $0x154] sm:$0xff]  }
 0x21a   : > { %3768 = vrot.lane.b32.xlu0 %v3353_v11, %s6755_s26  ;;  %v2730_v25 = vrot.slane %v6572_v24, 1  ;;  %v2671_v11 = vrot.slane %v6575_v2, 1  ;;  %v6577_v24 = vld [vmem:[%s6839_s30 + $0x74] ss:$0 sps:$4 sm:$0x11]  }
 0x21b   : > { %v8534_v54 = vpop.permute.xlu1 %2776  ;;  %v2673_v8 = vrot.slane %v6577_v24, 1  ;;  %v8578_v24 = vld [vmem:[%s6839_s30 + $0x80] sm:$0xff]  }
 0x21c   : > { %v8537_v48 = vpop.permute.xlu0 %2774  ;;  %v2732_v36 = vsel %vm1449_vm1, %v2730_v25, %v2731_v44  ;;  %v2672_v27 = vsel %vm1449_vm1, %v2670_v42, %v2671_v11  ;;  %v8570_v25 = vld [vmem:[%s6839_s30 + $0x170] sm:$0xff]   ;;  %v3362_v3 = vshll.u32 %v8578_v24, 16  ;;  %v3366_v63 = vshrl.u32 %v8578_v24, 16 }
 0x21d   : > { %4030 = vrot.lane.b32.xlu1 %v3927_v19, %s6756_s27  ;;  %v6576_v19 = vld [vmem:[%s6839_s30 + $0x164] ss:$0 sps:$4 sm:$0x11]   ;;  %v2674_v42 = vsel %vm1449_vm1, %v2671_v11, %v2673_v8  ;;  %v3355_v11 = vshrl.u32 %v8563_v58, 16  ;;  %v3359_v8 = vrot.slane %v3357_v62, 1  ;;  %v3606_v6 = vshrl.u32 %v8570_v25, 16 }
 0x21e   : > { %3982 = vrot.lane.b32.xlu0 %v3867_v52, %s6756_s27  ;;  %v2733_v12 = vrot.slane %v6576_v19, 1  ;;  %v8555_v52 = vld [vmem:[%s6839_s30 + $0x168] sm:$0xff]   ;;  %v3364_v33 = vrot.slane %v3362_v3, 1 }
 0x21f   : > { %v8544_v38 = vpop.permute.xlu1 %2780  ;;  %v3597_v19 = vshll.u32 %v8555_v52, 16  ;;  %v3360_v39 = vor.u32 %v3359_v8, %v3355_v11  ;;  %v6579_v8 = vld [vmem:[%s6839_s30] sm:$0xff]   ;;  %v10512_v3 = vld [vmem:[#allocation24_spill] sm:$0xff] }
 0x220   : > { %10508 = vst [vmem:[#allocation174_spill] sm:$0xff] %v8544_v38  ;;  %v8549_v22 = vpop.permute.xlu0 %2778  ;;  %v4068_v32 = vsel %vm4066_vm3, %v6579_v8, %v10512_v3  ;;  %v3368_v8 = vor.u32 %v3366_v63, %v3364_v33  ;;  %v3930_v63 = vrot.slane %v8555_v52, 1 }
 0x221   : > { %4032 = vrot.lane.b32.xlu1 %v3929_v21, %s6756_s27  ;;  %v2734_v21 = vsel %vm1449_vm1, %v2731_v44, %v2733_v12  ;;  %v3595_v44 = vshrl.u32 %v8555_v52, 16  ;;  %v3602_v12 = vshll.u32 %v8570_v25, 16 }
 0x222   : > { %3984 = vrot.lane.b32.xlu0 %v3869_v47, %s6756_s27 }
 0x223   : > { %v8558_v28 = vpop.permute.xlu1 %2784  ;;  %v3604_v60 = vrot.slane %v3602_v12, 1  ;;  %v10511_v12 = vld [vmem:[#allocation26_spill] sm:$0xff] }
 0x224   : > { %10509 = vst [vmem:[#allocation175_spill] sm:$0xff] %v8558_v28  ;;  %v8565_v2 = vpop.permute.xlu0 %2782 }
 0x225   : > { %10510 = vst [vmem:[#allocation176_spill] sm:$0xff] %v8565_v2  ;;  %2834 = vrot.lane.b32.xlu1 %v2732_v36, %s6753_s8  ;;  %v3599_v36 = vrot.slane %v3597_v19, 1  ;;  %v3608_v7 = vor.u32 %v3606_v6, %v3604_v60 }
 0x226   : > { %2786 = vrot.lane.b32.xlu0 %v2672_v27, %s6753_s8 }
 0x227   : > { %v8574_v47 = vpop.permute.xlu1 %2820  ;;  %v3600_v19 = vor.u32 %v3599_v36, %v3595_v44  ;;  %v3370_v44 = vshll.u32 %v8595_v55, 16  ;;  %v6578_v36 = vld [vmem:[%s6839_s30 + $0x8] sm:$0xff]  }
 0x228   : > { %v8581_v9 = vpop.permute.xlu0 %2818  ;;  %v4070_v28 = vsel %vm4066_vm3, %v6578_v36, %v10511_v12  ;;  %v10514_v36 = vld [vmem:[#allocation10_spill] sm:$0xff] }
 0x229   : > { %2836 = vrot.lane.b32.xlu1 %v2734_v21, %s6753_s8  ;;  %v3605_v53 = vsel %vm872_vm0, %v3600_v19, %v3604_v60  ;;  %v4116_v12 = vsel %vm4066_vm3, %v6581_v13, %v10514_v36  ;;  %v4167_v38 = vsel %vm4163_vm4, %v4070_v28, %v10515_v43  ;;  %v10516_v60 = vld [vmem:[#allocation54_spill] sm:$0xff]  ;;  %v3372_v3 = vrot.slane %v3370_v44, 1 }
 0x22a   : > { %2788 = vrot.lane.b32.xlu0 %v2674_v42, %s6753_s8  ;;  %v3610_v42 = vshll.u32 %v8587_v20, 16  ;;  %v4165_v19 = vsel %vm4163_vm4, %v4068_v32, %v10516_v60  ;;  %v4213_v13 = vsel %vm4163_vm4, %v4116_v12, %v10518_v18  ;;  %v4264_v43 = vsel %vm4260_vm5, %v4167_v38, %v7906_v59  ;;  %v6582_v60 = vld [vmem:[%s6839_s30 + $0x168] sm:$0xff]  }
 0x22b   : > { %v8590_v27 = vpop.permute.xlu1 %3154  ;;  %v4262_v32 = vsel %vm4260_vm5, %v4165_v19, %v7911_v35  ;;  %v4310_v23 = vsel %vm4260_vm5, %v4213_v13, %v8079_v37  ;;  %v3373_v35 = vsel %vm872_vm0, %v3368_v8, %v3372_v3  ;;  %v4312_v38 = vsel %vm4260_vm5, %v4215_v40, %v8074_v45 }
 0x22c   : > { %v8597_v21 = vpop.permute.xlu0 %3106  ;;  %v3612_v11 = vrot.slane %v3610_v42, 1  ;;  %v3365_v42 = vsel %vm872_vm0, %v3360_v39, %v3364_v33  ;;  %v3931_v33 = vrot.slane %v8570_v25, 1  ;;  %v4407_v51 = vsel %vm4357_vm6, %v4310_v23, %v8384_v17  ;;  %v6586_v23 = vld [vmem:[%s6839_s30 + $0x178] ss:$0 sps:$4 sm:$0x11]  }
 0x22d   : > { %3170 = vrot.lane.b32.xlu1 %v8555_v52, %s6754_s11  ;;  %v4504_v37 = vsel %vm4454_vm7, %v4407_v51, %v8581_v9  ;;  %v4359_v17 = vsel %vm4357_vm6, %v4262_v32, %v8232_v29  ;;  %v4361_v45 = vsel %vm4357_vm6, %v4264_v43, %v8225_v1  ;;  %v3873_v29 = vrot.slane %v8595_v55, 1  ;;  %v6584_v43 = vld [vmem:[%s6839_s30 + $0x78] sm:$0xff]  }
 0x22e   : > { %3122 = vrot.lane.b32.xlu0 %v8563_v58, %s6754_s11  ;;  %v3613_v39 = vsel %vm872_vm0, %v3608_v7, %v3612_v11  ;;  %v3870_v7 = vrot.slane %v8563_v58, 1  ;;  %v4601_v58 = vsel %vm4551_vm8, %v4504_v37, %v8590_v27  ;;  %v4456_v9 = vsel %vm4454_vm7, %v4359_v17, %v8529_v50  ;;  %v8706_v51 = vld [vmem:[%s6839_s30 + $0x17c] sm:$0xff]   ;;  %v8715_v37 = vld [vmem:[%s6839_s30 + $0x8c] sm:$0xff]   ;;  %v8722_v17 = vld [vmem:[%s6839_s30 + $0x184] sm:$0xff]  }
 0x22f   : > { %v8605_v62 = vpop.permute.xlu1 %3156  ;;  %v4409_v27 = vsel %vm4357_vm6, %v4312_v38, %v8377_v15  ;;  %v4553_v11 = vsel %vm4551_vm8, %v4456_v9, %v8597_v21  ;;  %v2735_v19 = vrot.slane %v6582_v60, 1  ;;  %v4458_v8 = vsel %vm4454_vm7, %v4361_v45, %v8524_v10  ;;  %v6585_v10 = vld [vmem:[%s6839_s30 + $0x80] sm:$0xff]   ;;  %v8728_v9 = vld [vmem:[%s6839_s30 + $0x94] sm:$0xff]  }
 0x230   : > { %v8612_v2 = vpop.permute.xlu0 %3108  ;;  %v4506_v50 = vsel %vm4454_vm7, %v4409_v27, %v8574_v47  ;;  %v2676_v32 = vrot.slane %v6585_v10, 1  ;;  %v10520_v10 = vld [vmem:[#allocation23_spill] sm:$0xff] }
 0x231   : > { %3172 = vrot.lane.b32.xlu1 %v8570_v25, %s6754_s11  ;;  %v3933_v25 = vrot.slane %v8587_v20, 1  ;;  %v4603_v15 = vsel %vm4551_vm8, %v4506_v50, %v8605_v62  ;;  %v4555_v18 = vsel %vm4551_vm8, %v4458_v8, %v8612_v2  ;;  %v8743_v50 = vld [vmem:[%s6839_s30 + $0x9c] ss:$0 sps:$4 sm:$0x11]   ;;  %v3386_v8 = vshrl.u32 %v8728_v9, 16 }
 0x232   : > { %3124 = vrot.lane.b32.xlu0 %v8578_v24, %s6754_s11 }
 0x233   : > { %v3803_v6 = vpop.permute.xlu1 %3802  ;;  %v3934_v55 = vsel %vm1449_vm1, %v3931_v33, %v3933_v25 }
 0x234   : > { %v3755_v28 = vpop.permute.xlu0 %3754  ;;  %v4698_v44 = vsel %vm4648_vm9, %v4601_v58, %v3803_v6  ;;  %v3617_v58 = vshll.u32 %v8706_v51, 16 }
 0x235   : > { %3818 = vrot.lane.b32.xlu1 %v3605_v53, %s6755_s26  ;;  %v3871_v53 = vrot.slane %v8578_v24, 1  ;;  %v3932_v24 = vsel %vm1449_vm1, %v3930_v63, %v3931_v33  ;;  %v4650_v12 = vsel %vm4648_vm9, %v4553_v11, %v3755_v28  ;;  %v2675_v28 = vrot.slane %v6584_v43, 1 }
 0x236   : > { %3770 = vrot.lane.b32.xlu0 %v3365_v42, %s6755_s26  ;;  %v6583_v42 = vld [vmem:[%s6839_s30 + $0x170] sm:$0xff]   ;;  %v3619_v27 = vrot.slane %v3617_v58, 1  ;;  %v3622_v11 = vshll.u32 %v8722_v17, 16 }
 0x237   : > { %v3805_v59 = vpop.permute.xlu1 %3804  ;;  %v3872_v1 = vsel %vm1449_vm1, %v3870_v7, %v3871_v53  ;;  %v2736_v47 = vrot.slane %v6583_v42, 1  ;;  %v3874_v62 = vsel %vm1449_vm1, %v3871_v53, %v3873_v29  ;;  %v2677_v7 = vsel %vm1449_vm1, %v2675_v28, %v2676_v32  ;;  %v6587_v53 = vld [vmem:[%s6839_s30 + $0x88] ss:$0 sps:$4 sm:$0x11]   ;;  %v6589_v28 = vld [vmem:[%s6839_s30 + $0x14] sm:$0xff]  }
 0x238   : > { %v3757_v52 = vpop.permute.xlu0 %3756  ;;  %v4700_v3 = vsel %vm4648_vm9, %v4603_v15, %v3805_v59  ;;  %v2738_v59 = vrot.slane %v6586_v23, 1  ;;  %v2678_v38 = vrot.slane %v6587_v53, 1  ;;  %v3615_v29 = vshrl.u32 %v8706_v51, 16  ;;  %v10522_v23 = vld [vmem:[#allocation11_spill] sm:$0xff] }
 0x239   : > { %3820 = vrot.lane.b32.xlu1 %v3613_v39, %s6755_s26  ;;  %v4652_v39 = vsel %vm4648_vm9, %v4555_v18, %v3757_v52  ;;  %v2737_v2 = vsel %vm1449_vm1, %v2735_v19, %v2736_v47  ;;  %v3624_v60 = vrot.slane %v3622_v11, 1  ;;  %v3626_v19 = vshrl.u32 %v8722_v17, 16 }
 0x23a   : > { %3772 = vrot.lane.b32.xlu0 %v3373_v35, %s6755_s26  ;;  %v2739_v25 = vsel %vm1449_vm1, %v2736_v47, %v2738_v59  ;;  %v2679_v45 = vsel %vm1449_vm1, %v2676_v32, %v2678_v38  ;;  %v4072_v32 = vsel %vm4066_vm3, %v6589_v28, %v10520_v10  ;;  %v3875_v10 = vrot.slane %v8715_v37, 1 }
 0x23b   : > { %v4019_v20 = vpop.permute.xlu1 %4018 }
 0x23c   : > { %v4795_v36 = vsel %vm4745_vm10, %v4698_v44, %v4019_v20  ;;  %v3971_v6 = vpop.permute.xlu0 %3970  ;;  %v3377_v44 = vshll.u32 %v8715_v37, 16 }
 0x23d   : > { %4034 = vrot.lane.b32.xlu1 %v3932_v24, %s6756_s27  ;;  %6203 = vmatprep.mubr.msk.bf16.mxu1 %vm4869_vm11, %v4795_v36  ;;  %v4747_v21 = vsel %vm4745_vm10, %v4650_v12, %v3971_v6  ;;  %v3375_v12 = vshrl.u32 %v8715_v37, 16 }
 0x23e   : > { %3986 = vrot.lane.b32.xlu0 %v3872_v1, %s6756_s27  ;;  %6155 = vmatprep.mubr.msk.bf16.mxu0 %vm4869_vm11, %v4747_v21  ;;  %v8737_v1 = vld [vmem:[%s6839_s30 + $0x18c] ss:$0 sps:$4 sm:$0x11]   ;;  %v3379_v6 = vrot.slane %v3377_v44, 1  ;;  %v3620_v21 = vor.u32 %v3619_v27, %v3615_v29  ;;  %v3628_v44 = vor.u32 %v3626_v19, %v3624_v60 }
 0x23f   : > { %v4021_v40 = vpop.permute.xlu1 %4020  ;;  %v3630_v42 = vshll.u32 %v8737_v1, 16  ;;  %v10525_v27 = vld [vmem:[#allocation56_spill] sm:$0xff] }
 0x240   : > { %v4797_v13 = vsel %vm4745_vm10, %v4700_v3, %v4021_v40  ;;  %v3973_v63 = vpop.permute.xlu0 %3972  ;;  %v3390_v3 = vshll.u32 %v8743_v50, 16  ;;  %v6588_v40 = vld [vmem:[%s6839_s30 + $0x1c] sm:$0xff]   ;;  %v4169_v11 = vsel %vm4163_vm4, %v4072_v32, %v10525_v27  ;;  %v3876_v32 = vrot.slane %v8728_v9, 1  ;;  %v6595_v27 = vld [vmem:[%s6839_s30 + $0x94] sm:$0xff]  }
 0x241   : > { %4036 = vrot.lane.b32.xlu1 %v3934_v55, %s6756_s27  ;;  %6204 = vmatmul.mubr.msk.bf16.vlgmr.msra.gmra.mrb[0].mxu1 %vm4869_vm11, %v4797_v13  ;;  %v4749_v33 = vsel %vm4745_vm10, %v4652_v39, %v3973_v63  ;;  %v3382_v55 = vshll.u32 %v8728_v9, 16  ;;  %v3380_v13 = vor.u32 %v3379_v6, %v3375_v12  ;;  %v6590_v39 = vld [vmem:[%s6839_s30 + $0x10c] sm:$0xff]   ;;  %v3632_v29 = vrot.slane %v3630_v42, 1 }
 0x242   : > { %3988 = vrot.lane.b32.xlu0 %v3874_v62, %s6756_s27  ;;  %6156 = vmatmul.mubr.msk.bf16.vlgmr.msra.gmra.mrb[0].mxu0 %vm4869_vm11, %v4749_v33  ;;  %v10519_v62 = vld [vmem:[#allocation25_spill] sm:$0xff]  ;;  %v10521_v63 = vld [vmem:[#allocation12_spill] sm:$0xff] }
 0x243   : > { %v8710_v35 = vpop.permute.xlu1 %2824  ;;  %v4074_v18 = vsel %vm4066_vm3, %v6588_v40, %v10519_v62  ;;  %v3384_v43 = vrot.slane %v3382_v55, 1  ;;  %v4122_v33 = vsel %vm4066_vm3, %v6590_v39, %v10521_v63  ;;  %v3392_v40 = vrot.slane %v3390_v3, 1  ;;  %v10526_v62 = vld [vmem:[#allocation79_spill] sm:$0xff] }
 0x244   : > { %v8717_v52 = vpop.permute.xlu0 %2822 }
 0x245   : > { %2838 = vrot.lane.b32.xlu1 %v2737_v2, %s6753_s8  ;;  %v6591_v2 = vld [vmem:[%s6839_s30 + $0x104] sm:$0xff]   ;;  %v3388_v55 = vor.u32 %v3386_v8, %v3384_v43  ;;  %v3385_v19 = vsel %vm872_vm0, %v3380_v13, %v3384_v43  ;;  %v3935_v13 = vrot.slane %v8706_v51, 1 }
 0x246   : > { %2790 = vrot.lane.b32.xlu0 %v2677_v7, %s6753_s8  ;;  %v4120_v59 = vsel %vm4066_vm3, %v6591_v2, %v10522_v23  ;;  %v10523_v7 = vld [vmem:[#allocation55_spill] sm:$0xff]  ;;  %v3877_v23 = vsel %vm1449_vm1, %v3875_v10, %v3876_v32 }
 0x247   : > { %v3159_v24 = vpop.permute.xlu1 %3158  ;;  %v4171_v53 = vsel %vm4163_vm4, %v4074_v18, %v10523_v7  ;;  %v4219_v18 = vsel %vm4163_vm4, %v4122_v33, %v10526_v62  ;;  %v8856_v62 = vld [vmem:[%s6839_s30 + $0x190] sm:$0xff]  }
 0x248   : > { %v8731_v20 = vpop.permute.xlu0 %3110  ;;  %v4316_v42 = vsel %vm4260_vm5, %v4219_v18, %v8087_v5 }
 0x249   : > { %2840 = vrot.lane.b32.xlu1 %v2739_v25, %s6753_s8  ;;  %v10524_v25 = vld [vmem:[#allocation80_spill] sm:$0xff] }
 0x24a   : > { %2792 = vrot.lane.b32.xlu0 %v2679_v45, %s6753_s8  ;;  %v4217_v58 = vsel %vm4163_vm4, %v4120_v59, %v10524_v25  ;;  %v3625_v45 = vsel %vm872_vm0, %v3620_v21, %v3624_v60  ;;  %v4266_v21 = vsel %vm4260_vm5, %v4169_v11, %v7924_v56  ;;  %v6593_v25 = vld [vmem:[%s6839_s30 + $0x184] sm:$0xff]   ;;  %v2681_v11 = vrot.slane %v6595_v27, 1 }
 0x24b   : > { %v8740_v36 = vpop.permute.xlu1 %3160  ;;  %v4314_v12 = vsel %vm4260_vm5, %v4217_v58, %v8092_v57  ;;  %v4268_v57 = vsel %vm4260_vm5, %v4171_v53, %v7919_v26  ;;  %v4363_v8 = vsel %vm4357_vm6, %v4266_v21, %v8247_v61  ;;  %v3936_v26 = vrot.slane %v8722_v17, 1 }
 0x24c   : > { %v8747_v15 = vpop.permute.xlu0 %3112  ;;  %v4411_v60 = vsel %vm4357_vm6, %v4314_v12, %v8400_v31  ;;  %v3633_v31 = vsel %vm872_vm0, %v3628_v44, %v3632_v29  ;;  %v4460_v5 = vsel %vm4454_vm7, %v4363_v8, %v8537_v48  ;;  %v4365_v48 = vsel %vm4357_vm6, %v4268_v57, %v8243_v4  ;;  %v6594_v44 = vld [vmem:[%s6839_s30 + $0x8c] sm:$0xff]   ;;  %v8864_v57 = vld [vmem:[%s6839_s30 + $0xa0] sm:$0xff]  }
 0x24d   : > { %3174 = vrot.lane.b32.xlu1 %v8706_v51, %s6754_s11  ;;  %v4508_v3 = vsel %vm4454_vm7, %v4411_v60, %v8717_v52  ;;  %v3393_v52 = vsel %vm872_vm0, %v3388_v55, %v3392_v40  ;;  %v4557_v51 = vsel %vm4551_vm8, %v4460_v5, %v8731_v20  ;;  %v3938_v20 = vrot.slane %v8737_v1, 1  ;;  %v6596_v55 = vld [vmem:[%s6839_s30 + $0x18c] ss:$0 sps:$4 sm:$0x11]  }
 0x24e   : > { %3126 = vrot.lane.b32.xlu0 %v8715_v37, %s6754_s11  ;;  %v4605_v56 = vsel %vm4551_vm8, %v4508_v3, %v3159_v24  ;;  %v4413_v24 = vsel %vm4357_vm6, %v4316_v42, %v8393_v46  ;;  %v4462_v4 = vsel %vm4454_vm7, %v4365_v48, %v8534_v54  ;;  %v3878_v1 = vrot.slane %v8743_v50, 1  ;;  %v6597_v60 = vld [vmem:[%s6839_s30 + $0x9c] ss:$0 sps:$4 sm:$0x11]   ;;  %v10528_v48 = vld [vmem:[#allocation28_spill] sm:$0xff] }
 0x24f   : > { %v3807_v47 = vpop.permute.xlu1 %3806  ;;  %v3939_v53 = vsel %vm1449_vm1, %v3936_v26, %v3938_v20  ;;  %v2741_v58 = vrot.slane %v6593_v25, 1  ;;  %v2680_v29 = vrot.slane %v6594_v44, 1  ;;  %v2743_v40 = vrot.slane %v6596_v55, 1  ;;  %v8871_v3 = vld [vmem:[%s6839_s30 + $0x198] sm:$0xff]  }
 0x250   : > { %v3759_v38 = vpop.permute.xlu0 %3758  ;;  %v4702_v43 = vsel %vm4648_vm9, %v4605_v56, %v3807_v47  ;;  %v4510_v47 = vsel %vm4454_vm7, %v4413_v24, %v8710_v35  ;;  %v3642_v10 = vshll.u32 %v8871_v3, 16  ;;  %v6598_v24 = vld [vmem:[%s6839_s30 + $0x30] sm:$0xff]   ;;  %v6601_v20 = vld [vmem:[%s6839_s30 + $0x118] sm:$0xff]  }
 0x251   : > { %3176 = vrot.lane.b32.xlu1 %v8722_v17, %s6754_s11  ;;  %v4654_v39 = vsel %vm4648_vm9, %v4557_v51, %v3759_v38  ;;  %v4607_v46 = vsel %vm4551_vm8, %v4510_v47, %v8740_v36  ;;  %v4559_v36 = vsel %vm4551_vm8, %v4462_v4, %v8747_v15  ;;  %v6592_v15 = vld [vmem:[%s6839_s30 + $0x17c] sm:$0xff]   ;;  %v2682_v21 = vsel %vm1449_vm1, %v2680_v29, %v2681_v11 }
 0x252   : > { %3128 = vrot.lane.b32.xlu0 %v8728_v9, %s6754_s11  ;;  %v3937_v9 = vsel %vm1449_vm1, %v3935_v13, %v3936_v26  ;;  %v2740_v38 = vrot.slane %v6592_v15, 1  ;;  %v2744_v8 = vsel %vm1449_vm1, %v2741_v58, %v2743_v40  ;;  %v8879_v13 = vld [vmem:[%s6839_s30 + $0xa8] sm:$0xff]   ;;  %v3397_v26 = vshll.u32 %v8864_v57, 16  ;;  %v10527_v51 = vld [vmem:[#allocation27_spill] sm:$0xff]  ;;  %v10530_v4 = vld [vmem:[#allocation14_spill] sm:$0xff] }
 0x253   : > { %v3809_v6 = vpop.permute.xlu1 %3808  ;;  %v3644_v29 = vrot.slane %v3642_v10, 1  ;;  %v3406_v55 = vshrl.u32 %v8879_v13, 16 }
 0x254   : > { %v3761_v28 = vpop.permute.xlu0 %3760  ;;  %v4704_v35 = vsel %vm4648_vm9, %v4607_v46, %v3809_v6  ;;  %v2742_v6 = vsel %vm1449_vm1, %v2740_v38, %v2741_v58  ;;  %v10533_v38 = vld [vmem:[#allocation81_spill] sm:$0xff]  ;;  %v10534_v58 = vld [vmem:[#allocation82_spill] sm:$0xff] }
 0x255   : > { %3822 = vrot.lane.b32.xlu1 %v3625_v45, %s6755_s26  ;;  %v4656_v54 = vsel %vm4648_vm9, %v4559_v36, %v3761_v28  ;;  %v3879_v45 = vsel %vm1449_vm1, %v3876_v32, %v3878_v1  ;;  %v3637_v28 = vshll.u32 %v8856_v62, 16  ;;  %v6599_v32 = vld [vmem:[%s6839_s30 + $0x28] sm:$0xff]   ;;  %v3399_v36 = vrot.slane %v3397_v26, 1 }
 0x256   : > { %3774 = vrot.lane.b32.xlu0 %v3385_v19, %s6755_s26  ;;  %v2683_v19 = vrot.slane %v6597_v60, 1  ;;  %v4076_v47 = vsel %vm4066_vm3, %v6599_v32, %v10528_v48 }
 0x257   : > { %v4023_v61 = vpop.permute.xlu1 %4022 }
 0x258   : > { %v4799_v17 = vsel %vm4745_vm10, %v4702_v43, %v4023_v61  ;;  %v3975_v63 = vpop.permute.xlu0 %3974  ;;  %v8886_v43 = vld [vmem:[%s6839_s30 + $0x1a0] ss:$0 sps:$4 sm:$0x11]   ;;  %v3635_v61 = vshrl.u32 %v8856_v62, 16 }
 0x259   : > { %3824 = vrot.lane.b32.xlu1 %v3633_v31, %s6755_s26  ;;  %6207 = vmatprep.mubr.msk.bf16.mxu1 %vm4869_vm11, %v4799_v17  ;;  %v4751_v37 = vsel %vm4745_vm10, %v4654_v39, %v3975_v63  ;;  %v2684_v31 = vsel %vm1449_vm1, %v2681_v11, %v2683_v19  ;;  %v4078_v17 = vsel %vm4066_vm3, %v6598_v24, %v10527_v51  ;;  %v6600_v39 = vld [vmem:[%s6839_s30 + $0x120] sm:$0xff]   ;;  %v10529_v63 = vld [vmem:[#allocation13_spill] sm:$0xff]  ;;  %v3650_v15 = vshll.u32 %v8886_v43, 16 }
 0x25a   : > { %3776 = vrot.lane.b32.xlu0 %v3393_v52, %s6755_s26  ;;  %6159 = vmatprep.mubr.msk.bf16.mxu0 %vm4869_vm11, %v4751_v37  ;;  %v3639_v52 = vrot.slane %v3637_v28, 1  ;;  %v4126_v46 = vsel %vm4066_vm3, %v6600_v39, %v10529_v63 }
 0x25b   : > { %v4025_v33 = vpop.permute.xlu1 %4024  ;;  %v4223_v25 = vsel %vm4163_vm4, %v4126_v46, %v10533_v38  ;;  %v3652_v26 = vrot.slane %v3650_v15, 1  ;;  %v3940_v46 = vrot.slane %v8856_v62, 1  ;;  %v6603_v38 = vld [vmem:[%s6839_s30 + $0x198] sm:$0xff]  }
 0x25c   : > { %v4801_v2 = vsel %vm4745_vm10, %v4704_v35, %v4025_v33  ;;  %v3977_v59 = vpop.permute.xlu0 %3976  ;;  %v4124_v35 = vsel %vm4066_vm3, %v6601_v20, %v10530_v4  ;;  %v3395_v33 = vshrl.u32 %v8864_v57, 16  ;;  %v3640_v44 = vor.u32 %v3639_v52, %v3635_v61  ;;  %v10536_v20 = vld [vmem:[#allocation174_spill] sm:$0xff] }
 0x25d   : > { %4038 = vrot.lane.b32.xlu1 %v3937_v9, %s6756_s27  ;;  %6208 = vmatmul.mubr.msk.bf16.gmra.mrb[4].mxu1 %vm4869_vm11, %v4801_v2  ;;  %v4753_v7 = vsel %vm4745_vm10, %v4656_v54, %v3977_v59  ;;  %v8901_v9 = vld [vmem:[%s6839_s30 + $0xb0] ss:$0 sps:$4 sm:$0x11]   ;;  %v3402_v2 = vshll.u32 %v8879_v13, 16  ;;  %v10532_v54 = vld [vmem:[#allocation58_spill] sm:$0xff] }
 0x25e   : > { %3990 = vrot.lane.b32.xlu0 %v3877_v23, %s6756_s27  ;;  %6160 = vmatmul.mubr.msk.bf16.gmra.mrb[4].mxu0 %vm4869_vm11, %v4753_v7  ;;  %v10531_v23 = vld [vmem:[#allocation57_spill] sm:$0xff]  ;;  %v4173_v59 = vsel %vm4163_vm4, %v4076_v47, %v10532_v54  ;;  %v3410_v40 = vshll.u32 %v8901_v9, 16  ;;  %v3400_v19 = vor.u32 %v3399_v36, %v3395_v33 }
 0x25f   : > { %v8845_v50 = vpop.permute.xlu1 %2828  ;;  %v4175_v1 = vsel %vm4163_vm4, %v4078_v17, %v10531_v23 }
 0x260   : > { %v8850_v12 = vpop.permute.xlu0 %2826  ;;  %v4272_v27 = vsel %vm4260_vm5, %v4175_v1, %v7932_v14  ;;  %v4320_v14 = vsel %vm4260_vm5, %v4223_v25, %v8100_v30  ;;  %v3645_v30 = vsel %vm872_vm0, %v3640_v44, %v3644_v29  ;;  %v3412_v51 = vrot.slane %v3410_v40, 1  ;;  %v6606_v40 = vld [vmem:[%s6839_s30 + $0x1a0] ss:$0 sps:$4 sm:$0x11]  }
 0x261   : > { %4040 = vrot.lane.b32.xlu1 %v3939_v53, %s6756_s27  ;;  %v3646_v53 = vshrl.u32 %v8871_v3, 16  ;;  %v2746_v25 = vrot.slane %v6603_v38, 1 }
 0x262   : > { %3992 = vrot.lane.b32.xlu0 %v3879_v45, %s6756_s27  ;;  %v4221_v45 = vsel %vm4163_vm4, %v4124_v35, %v10534_v58 }
 0x263   : > { %v8859_v18 = vpop.permute.xlu1 %3162  ;;  %v4318_v11 = vsel %vm4260_vm5, %v4221_v45, %v8105_v16  ;;  %v6604_v45 = vld [vmem:[%s6839_s30 + $0xa0] sm:$0xff]  }
 0x264   : > { %v8866_v42 = vpop.permute.xlu0 %3114  ;;  %v4415_v60 = vsel %vm4357_vm6, %v4318_v11, %v8412_v49  ;;  %v2685_v44 = vrot.slane %v6604_v45, 1  ;;  %v10550_v45 = vld [vmem:[#allocation157_spill] sm:$0xff] }
 0x265   : > { %2842 = vrot.lane.b32.xlu1 %v2742_v6, %s6753_s8  ;;  %v4512_v16 = vsel %vm4454_vm7, %v4415_v60, %v8850_v12 }
 0x266   : > { %2794 = vrot.lane.b32.xlu0 %v2682_v21, %s6753_s8  ;;  %v4270_v21 = vsel %vm4260_vm5, %v4173_v59, %v7937_v41  ;;  %v4369_v41 = vsel %vm4357_vm6, %v4272_v27, %v8257_v34  ;;  %v4609_v61 = vsel %vm4551_vm8, %v4512_v16, %v8859_v18  ;;  %v10535_v34 = vld [vmem:[#allocation155_spill] sm:$0xff]  ;;  %v3883_v59 = vrot.slane %v8901_v9, 1 }
 0x267   : > { %v8875_v56 = vpop.permute.xlu1 %3164  ;;  %v4367_v49 = vsel %vm4357_vm6, %v4270_v21, %v8260_v0  ;;  %v4417_v17 = vsel %vm4357_vm6, %v4320_v14, %v10535_v34  ;;  %v2748_v21 = vrot.slane %v6606_v40, 1  ;;  %v6607_v14 = vld [vmem:[%s6839_s30 + $0xb0] ss:$0 sps:$4 sm:$0x11]  }
 0x268   : > { %v8882_v5 = vpop.permute.xlu0 %3116  ;;  %v4464_v12 = vsel %vm4454_vm7, %v4367_v49, %v8549_v22  ;;  %v4514_v22 = vsel %vm4454_vm7, %v4417_v17, %v8845_v50  ;;  %v4466_v50 = vsel %vm4454_vm7, %v4369_v41, %v10536_v20  ;;  %v2688_v16 = vrot.slane %v6607_v14, 1  ;;  %v6608_v49 = vld [vmem:[%s6839_s30 + $0x44] sm:$0xff]   ;;  %v6610_v17 = vld [vmem:[%s6839_s30 + $0x134] sm:$0xff]  }
 0x269   : > { %2844 = vrot.lane.b32.xlu1 %v2744_v8, %s6753_s8  ;;  %v3404_v8 = vrot.slane %v3402_v2, 1  ;;  %v4561_v0 = vsel %vm4551_vm8, %v4464_v12, %v8866_v42  ;;  %v4611_v63 = vsel %vm4551_vm8, %v4514_v22, %v8875_v56  ;;  %v4563_v56 = vsel %vm4551_vm8, %v4466_v50, %v8882_v5  ;;  %v10540_v22 = vld [vmem:[#allocation16_spill] sm:$0xff] }
 0x26a   : > { %2796 = vrot.lane.b32.xlu0 %v2684_v31, %s6753_s8  ;;  %v3648_v31 = vor.u32 %v3646_v53, %v3644_v29  ;;  %v3943_v5 = vrot.slane %v8886_v43, 1  ;;  %v6602_v43 = vld [vmem:[%s6839_s30 + $0x190] sm:$0xff]   ;;  %v6605_v29 = vld [vmem:[%s6839_s30 + $0xa8] sm:$0xff]   ;;  %v2749_v41 = vsel %vm1449_vm1, %v2746_v25, %v2748_v21 }
 0x26b   : > { %v3811_v37 = vpop.permute.xlu1 %3810  ;;  %v3408_v24 = vor.u32 %v3406_v55, %v3404_v8  ;;  %v3405_v32 = vsel %vm872_vm0, %v3400_v19, %v3404_v8  ;;  %v2745_v15 = vrot.slane %v6602_v43, 1  ;;  %v2686_v27 = vrot.slane %v6605_v29, 1  ;;  %v9014_v19 = vld [vmem:[%s6839_s30 + $0xb4] sm:$0xff]   ;;  %v10542_v50 = vld [vmem:[#allocation60_spill] sm:$0xff] }
 0x26c   : > { %v3763_v7 = vpop.permute.xlu0 %3762  ;;  %v4706_v52 = vsel %vm4648_vm9, %v4609_v61, %v3811_v37  ;;  %v3653_v39 = vsel %vm872_vm0, %v3648_v31, %v3652_v26  ;;  %v3941_v37 = vrot.slane %v8871_v3, 1  ;;  %v9022_v31 = vld [vmem:[%s6839_s30 + $0x1ac] sm:$0xff]   ;;  %v9074_v29 = vld [vmem:[%s6839_s30 + $0xc4] ss:$0 sps:$4 sm:$0x11]  }
 0x26d   : > { %3178 = vrot.lane.b32.xlu1 %v8856_v62, %s6754_s11  ;;  %v4658_v48 = vsel %vm4648_vm9, %v4561_v0, %v3763_v7  ;;  %v3413_v33 = vsel %vm872_vm0, %v3408_v24, %v3412_v51  ;;  %v3880_v62 = vrot.slane %v8864_v57, 1  ;;  %v2747_v55 = vsel %vm1449_vm1, %v2745_v15, %v2746_v25  ;;  %v10537_v61 = vld [vmem:[#allocation29_spill] sm:$0xff]  ;;  %v6609_v24 = vld [vmem:[%s6839_s30 + $0x3c] sm:$0xff]  }
 0x26e   : > { %3130 = vrot.lane.b32.xlu0 %v8864_v57, %s6754_s11  ;;  %v3942_v54 = vsel %vm1449_vm1, %v3940_v46, %v3941_v37  ;;  %v3944_v53 = vsel %vm1449_vm1, %v3941_v37, %v3943_v5  ;;  %v2687_v8 = vsel %vm1449_vm1, %v2685_v44, %v2686_v27  ;;  %v10538_v51 = vld [vmem:[#allocation30_spill] sm:$0xff]  ;;  %v10539_v0 = vld [vmem:[#allocation15_spill] sm:$0xff]  ;;  %v3662_v20 = vshll.u32 %v9022_v31, 16  ;;  %v10549_v25 = vld [vmem:[#allocation137_spill] sm:$0xff] }
 0x26f   : > { %v3813_v6 = vpop.permute.xlu1 %3812  ;;  %v4080_v34 = vsel %vm4066_vm3, %v6609_v24, %v10538_v51  ;;  %v3415_v5 = vshrl.u32 %v9014_v19, 16  ;;  %v10548_v15 = vld [vmem:[#allocation87_spill] sm:$0xff] }
 0x270   : > { %v3765_v28 = vpop.permute.xlu0 %3764  ;;  %v4708_v4 = vsel %vm4648_vm9, %v4611_v63, %v3813_v6  ;;  %v9006_v6 = vld [vmem:[%s6839_s30 + $0x1a4] sm:$0xff]   ;;  %v3664_v14 = vrot.slane %v3662_v20, 1 }
 0x271   : > { %3180 = vrot.lane.b32.xlu1 %v8871_v3, %s6754_s11  ;;  %v3881_v3 = vrot.slane %v8879_v13, 1  ;;  %v4660_v2 = vsel %vm4648_vm9, %v4563_v56, %v3765_v28  ;;  %v3657_v26 = vshll.u32 %v9006_v6, 16  ;;  %v3655_v46 = vshrl.u32 %v9006_v6, 16  ;;  %v10544_v56 = vld [vmem:[#allocation84_spill] sm:$0xff] }
 0x272   : > { %3132 = vrot.lane.b32.xlu0 %v8879_v13, %s6754_s11 }
 0x273   : > { %v4027_v10 = vpop.permute.xlu1 %4026  ;;  %v3882_v13 = vsel %vm1449_vm1, %v3880_v62, %v3881_v3  ;;  %v3884_v9 = vsel %vm1449_vm1, %v3881_v3, %v3883_v59  ;;  %v3659_v37 = vrot.slane %v3657_v26, 1  ;;  %v10545_v62 = vld [vmem:[#allocation109_spill] sm:$0xff] }
 0x274   : > { %v4803_v18 = vsel %vm4745_vm10, %v4706_v52, %v4027_v10  ;;  %v3979_v47 = vpop.permute.xlu0 %3978  ;;  %v9031_v52 = vld [vmem:[%s6839_s30 + $0xbc] sm:$0xff]   ;;  %v3417_v10 = vshll.u32 %v9014_v19, 16 }
 0x275   : > { %3826 = vrot.lane.b32.xlu1 %v3645_v30, %s6755_s26  ;;  %6211 = vmatprep.mubr.msk.bf16.mxu1 %vm4869_vm11, %v4803_v18  ;;  %v4755_v42 = vsel %vm4745_vm10, %v4658_v48, %v3979_v47  ;;  %v4082_v30 = vsel %vm4066_vm3, %v6608_v49, %v10537_v61  ;;  %v4130_v18 = vsel %vm4066_vm3, %v6610_v17, %v10539_v0  ;;  %v3422_v59 = vshll.u32 %v9031_v52, 16 }
 0x276   : > { %3778 = vrot.lane.b32.xlu0 %v3405_v32, %s6755_s26  ;;  %6163 = vmatprep.mubr.msk.bf16.mxu0 %vm4869_vm11, %v4755_v42  ;;  %v6611_v32 = vld [vmem:[%s6839_s30 + $0x12c] sm:$0xff]   ;;  %v2689_v47 = vsel %vm1449_vm1, %v2686_v27, %v2688_v16  ;;  %v10551_v27 = vld [vmem:[#allocation138_spill] sm:$0xff]  ;;  %v3666_v49 = vshrl.u32 %v9022_v31, 16  ;;  %v3426_v0 = vshrl.u32 %v9031_v52, 16 }
 0x277   : > { %v4029_v35 = vpop.permute.xlu1 %4028  ;;  %v4128_v48 = vsel %vm4066_vm3, %v6611_v32, %v10540_v22  ;;  %v10552_v16 = vld [vmem:[#allocation156_spill] sm:$0xff] }
 0x278   : > { %v4805_v36 = vsel %vm4745_vm10, %v4708_v4, %v4029_v35  ;;  %v3981_v23 = vpop.permute.xlu0 %3980  ;;  %v4177_v4 = vsel %vm4163_vm4, %v4080_v34, %v10542_v50  ;;  %v10543_v35 = vld [vmem:[#allocation83_spill] sm:$0xff]  ;;  %v3424_v34 = vrot.slane %v3422_v59, 1 }
 0x279   : > { %3828 = vrot.lane.b32.xlu1 %v3653_v39, %s6755_s26  ;;  %6212 = vmatmul.mubr.msk.bf16.gmra.mrb[8].mxu1 %vm4869_vm11, %v4805_v36  ;;  %v4757_v1 = vsel %vm4745_vm10, %v4660_v2, %v3981_v23  ;;  %v10541_v39 = vld [vmem:[#allocation59_spill] sm:$0xff]  ;;  %v4225_v36 = vsel %vm4163_vm4, %v4128_v48, %v10544_v56  ;;  %v9058_v2 = vld [vmem:[%s6839_s30 + $0x1b4] ss:$0 sps:$4 sm:$0x11]  }
 0x27a   : > { %3780 = vrot.lane.b32.xlu0 %v3413_v33, %s6755_s26  ;;  %6164 = vmatmul.mubr.msk.bf16.gmra.mrb[8].mxu0 %vm4869_vm11, %v4757_v1  ;;  %v4179_v63 = vsel %vm4163_vm4, %v4082_v30, %v10541_v39  ;;  %v4227_v33 = vsel %vm4163_vm4, %v4130_v18, %v10543_v35  ;;  %v10546_v23 = vld [vmem:[#allocation89_spill] sm:$0xff]  ;;  %v3670_v61 = vshll.u32 %v9058_v2, 16  ;;  %v10553_v30 = vld [vmem:[#allocation176_spill] sm:$0xff]  ;;  %v3430_v18 = vshll.u32 %v9074_v29, 16 }
 0x27b   : > { %v8986_v57 = vpop.permute.xlu1 %2832  ;;  %v4276_v3 = vsel %vm4260_vm5, %v4179_v63, %v10545_v62  ;;  %v4322_v1 = vsel %vm4260_vm5, %v4225_v36, %v10546_v23  ;;  %v4324_v38 = vsel %vm4260_vm5, %v4227_v33, %v10548_v15  ;;  %v3668_v39 = vor.u32 %v3666_v49, %v3664_v14  ;;  %v6612_v15 = vld [vmem:[%s6839_s30 + $0x1a4] sm:$0xff]  }
 0x27c   : > { %v8990_v7 = vpop.permute.xlu0 %2830  ;;  %v4419_v44 = vsel %vm4357_vm6, %v4322_v1, %v10550_v45  ;;  %v4421_v26 = vsel %vm4357_vm6, %v4324_v38, %v10552_v16  ;;  %v3672_v63 = vrot.slane %v3670_v61, 1  ;;  %v3432_v35 = vrot.slane %v3430_v18, 1  ;;  %v6617_v61 = vld [vmem:[%s6839_s30 + $0xc4] ss:$0 sps:$4 sm:$0x11]   ;;  %v9183_v18 = vld [vmem:[%s6839_s30 + $0xd0] sm:$0xff]  }
 0x27d   : > { %4042 = vrot.lane.b32.xlu1 %v3942_v54, %s6756_s27  ;;  %v4516_v40 = vsel %vm4454_vm7, %v4419_v44, %v8990_v7  ;;  %v4518_v32 = vsel %vm4454_vm7, %v4421_v26, %v8986_v57  ;;  %v3946_v23 = vrot.slane %v9022_v31, 1  ;;  %v2750_v38 = vrot.slane %v6612_v15, 1  ;;  %v6614_v44 = vld [vmem:[%s6839_s30 + $0xb4] sm:$0xff]  }
 0x27e   : > { %3994 = vrot.lane.b32.xlu0 %v3882_v13, %s6756_s27  ;;  %v3419_v13 = vrot.slane %v3417_v10, 1  ;;  %v3673_v62 = vsel %vm872_vm0, %v3668_v39, %v3672_v63  ;;  %v6621_v63 = vld [vmem:[%s6839_s30 + $0x140] sm:$0xff]   ;;  %v3442_v15 = vshll.u32 %v9183_v18, 16 }
 0x27f   : > { %v8997_v58 = vpop.permute.xlu1 %3166 }
 0x280   : > { %v9002_v11 = vpop.permute.xlu0 %3118  ;;  %v3420_v51 = vor.u32 %v3419_v13, %v3415_v5  ;;  %v3886_v5 = vrot.slane %v9031_v52, 1 }
 0x281   : > { %4044 = vrot.lane.b32.xlu1 %v3944_v53, %s6756_s27  ;;  %v10547_v53 = vld [vmem:[#allocation110_spill] sm:$0xff] }
 0x282   : > { %3996 = vrot.lane.b32.xlu0 %v3884_v9, %s6756_s27  ;;  %v4274_v43 = vsel %vm4260_vm5, %v4177_v4, %v10547_v53  ;;  %v4373_v9 = vsel %vm4357_vm6, %v4276_v3, %v10549_v25  ;;  %v3425_v20 = vsel %vm872_vm0, %v3420_v51, %v3424_v34  ;;  %v3428_v4 = vor.u32 %v3426_v0, %v3424_v34  ;;  %v6618_v34 = vld [vmem:[%s6839_s30 + $0x58] sm:$0xff]  }
 0x283   : > { %v9011_v60 = vpop.permute.xlu1 %3168  ;;  %v3945_v3 = vrot.slane %v9006_v6, 1 }
 0x284   : > { %v9018_v28 = vpop.permute.xlu0 %3120  ;;  %v3433_v1 = vsel %vm872_vm0, %v3428_v4, %v3432_v35 }
 0x285   : > { %2846 = vrot.lane.b32.xlu1 %v2747_v55, %s6753_s8  ;;  %v4371_v55 = vsel %vm4357_vm6, %v4274_v43, %v10551_v27  ;;  %v6615_v27 = vld [vmem:[%s6839_s30 + $0xbc] sm:$0xff]  }
 0x286   : > { %2798 = vrot.lane.b32.xlu0 %v2687_v8, %s6753_s8  ;;  %v3660_v8 = vor.u32 %v3659_v37, %v3655_v46  ;;  %v4468_v10 = vsel %vm4454_vm7, %v4371_v55, %v10553_v30  ;;  %v10554_v46 = vld [vmem:[#allocation175_spill] sm:$0xff]  ;;  %v2691_v55 = vrot.slane %v6615_v27, 1  ;;  %v2693_v30 = vrot.slane %v6617_v61, 1 }
 0x287   : > { %v3815_v12 = vpop.permute.xlu1 %3814  ;;  %v4565_v17 = vsel %vm4551_vm8, %v4468_v10, %v9002_v11  ;;  %v4615_v11 = vsel %vm4551_vm8, %v4518_v32, %v9011_v60  ;;  %v4470_v57 = vsel %vm4454_vm7, %v4373_v9, %v10554_v46  ;;  %v10558_v46 = vld [vmem:[#allocation17_spill] sm:$0xff]  ;;  %v10568_v27 = vld [vmem:[#allocation159_spill] sm:$0xff] }
 0x288   : > { %v3767_v42 = vpop.permute.xlu0 %3766  ;;  %v3665_v48 = vsel %vm872_vm0, %v3660_v8, %v3664_v14  ;;  %v4567_v60 = vsel %vm4551_vm8, %v4470_v57, %v9018_v28  ;;  %v6616_v14 = vld [vmem:[%s6839_s30 + $0x1b4] ss:$0 sps:$4 sm:$0x11]   ;;  %v4132_v57 = vsel %vm4066_vm3, %v6621_v63, %v10558_v46 }
 0x289   : > { %2848 = vrot.lane.b32.xlu1 %v2749_v41, %s6753_s8  ;;  %v4613_v41 = vsel %vm4551_vm8, %v4516_v40, %v8997_v58  ;;  %v2753_v16 = vrot.slane %v6616_v14, 1  ;;  %v10569_v14 = vld [vmem:[#allocation140_spill] sm:$0xff] }
 0x28a   : > { %2800 = vrot.lane.b32.xlu0 %v2689_v47, %s6753_s8  ;;  %v4710_v7 = vsel %vm4648_vm9, %v4613_v41, %v3815_v12  ;;  %v4662_v12 = vsel %vm4648_vm9, %v4565_v17, %v3767_v42  ;;  %v9166_v41 = vld [vmem:[%s6839_s30 + $0xc8] sm:$0xff]   ;;  %v10555_v17 = vld [vmem:[#allocation31_spill] sm:$0xff] }
 0x28b   : > { %v3817_v54 = vpop.permute.xlu1 %3816  ;;  %v3437_v32 = vshll.u32 %v9166_v41, 16 }
 0x28c   : > { %v3769_v21 = vpop.permute.xlu0 %3768  ;;  %v4712_v42 = vsel %vm4648_vm9, %v4615_v11, %v3817_v54  ;;  %v3885_v54 = vrot.slane %v9014_v19, 1  ;;  %v6620_v11 = vld [vmem:[%s6839_s30 + $0x148] sm:$0xff]  }
 0x28d   : > { %3182 = vrot.lane.b32.xlu1 %v9006_v6, %s6754_s11  ;;  %v4664_v33 = vsel %vm4648_vm9, %v4567_v60, %v3769_v21  ;;  %v3947_v6 = vsel %vm1449_vm1, %v3945_v3, %v3946_v23  ;;  %v9158_v21 = vld [vmem:[%s6839_s30 + $0x1b8] sm:$0xff]   ;;  %v10562_v3 = vld [vmem:[#allocation88_spill] sm:$0xff] }
 0x28e   : > { %3134 = vrot.lane.b32.xlu0 %v9014_v19, %s6754_s11  ;;  %v3887_v53 = vsel %vm1449_vm1, %v3885_v54, %v3886_v5  ;;  %v3888_v19 = vrot.slane %v9074_v29, 1  ;;  %v2690_v29 = vrot.slane %v6614_v44, 1  ;;  %v10567_v44 = vld [vmem:[#allocation139_spill] sm:$0xff] }
 0x28f   : > { %v4031_v24 = vpop.permute.xlu1 %4030 }
 0x290   : > { %v4807_v58 = vsel %vm4745_vm10, %v4710_v7, %v4031_v24  ;;  %v3983_v22 = vpop.permute.xlu0 %3982  ;;  %v3889_v45 = vsel %vm1449_vm1, %v3886_v5, %v3888_v19  ;;  %v2692_v49 = vsel %vm1449_vm1, %v2690_v29, %v2691_v55  ;;  %v9174_v7 = vld [vmem:[%s6839_s30 + $0x1c0] sm:$0xff]   ;;  %v3677_v24 = vshll.u32 %v9158_v21, 16  ;;  %v9210_v5 = vld [vmem:[%s6839_s30 + $0x1c8] ss:$0 sps:$4 sm:$0x11]  }
 0x291   : > { %3184 = vrot.lane.b32.xlu1 %v9022_v31, %s6754_s11  ;;  %6215 = vmatprep.mubr.msk.bf16.mxu1 %vm4869_vm11, %v4807_v58  ;;  %v4759_v47 = vsel %vm4745_vm10, %v4662_v12, %v3983_v22  ;;  %v3948_v31 = vrot.slane %v9058_v2, 1  ;;  %v6613_v2 = vld [vmem:[%s6839_s30 + $0x1ac] sm:$0xff]   ;;  %v4086_v58 = vsel %vm4066_vm3, %v6618_v34, %v10555_v17  ;;  %v3682_v35 = vshll.u32 %v9174_v7, 16 }
 0x292   : > { %3136 = vrot.lane.b32.xlu0 %v9031_v52, %s6754_s11  ;;  %6167 = vmatprep.mubr.msk.bf16.mxu0 %vm4869_vm11, %v4759_v47  ;;  %v2751_v25 = vrot.slane %v6613_v2, 1  ;;  %v6619_v12 = vld [vmem:[%s6839_s30 + $0x50] sm:$0xff]   ;;  %v10556_v22 = vld [vmem:[#allocation32_spill] sm:$0xff]  ;;  %v10557_v47 = vld [vmem:[#allocation18_spill] sm:$0xff]  ;;  %v3679_v4 = vrot.slane %v3677_v24, 1  ;;  %v3435_v19 = vshrl.u32 %v9166_v41, 16 }
 0x293   : > { %v4033_v37 = vpop.permute.xlu1 %4032  ;;  %v3949_v52 = vsel %vm1449_vm1, %v3946_v23, %v3948_v31  ;;  %v4134_v39 = vsel %vm4066_vm3, %v6620_v11, %v10557_v47  ;;  %v4229_v23 = vsel %vm4163_vm4, %v4132_v57, %v10562_v3  ;;  %v3684_v24 = vrot.slane %v3682_v35, 1 }
 0x294   : > { %v4809_v50 = vsel %vm4745_vm10, %v4712_v42, %v4033_v37  ;;  %v3985_v56 = vpop.permute.xlu0 %3984  ;;  %v2752_v8 = vsel %vm1449_vm1, %v2750_v38, %v2751_v25  ;;  %v2754_v51 = vsel %vm1449_vm1, %v2751_v25, %v2753_v16  ;;  %v2694_v42 = vsel %vm1449_vm1, %v2691_v55, %v2693_v30  ;;  %v10559_v37 = vld [vmem:[#allocation61_spill] sm:$0xff]  ;;  %v10565_v38 = vld [vmem:[#allocation112_spill] sm:$0xff] }
 0x295   : > { %3830 = vrot.lane.b32.xlu1 %v3665_v48, %s6755_s26  ;;  %6216 = vmatmul.mubr.msk.bf16.gmra.mrb[12].mxu1 %vm4869_vm11, %v4809_v50  ;;  %v4761_v36 = vsel %vm4745_vm10, %v4664_v33, %v3985_v56  ;;  %v4084_v48 = vsel %vm4066_vm3, %v6619_v12, %v10556_v22  ;;  %v3675_v50 = vshrl.u32 %v9158_v21, 16  ;;  %v10560_v33 = vld [vmem:[#allocation62_spill] sm:$0xff]  ;;  %v10566_v25 = vld [vmem:[#allocation92_spill] sm:$0xff]  ;;  %v3444_v11 = vrot.slane %v3442_v15, 1 }
 0x296   : > { %3782 = vrot.lane.b32.xlu0 %v3425_v20, %s6755_s26  ;;  %6168 = vmatmul.mubr.msk.bf16.gmra.mrb[12].mxu0 %vm4869_vm11, %v4761_v36  ;;  %v4183_v20 = vsel %vm4163_vm4, %v4086_v58, %v10559_v37  ;;  %v4181_v56 = vsel %vm4163_vm4, %v4084_v48, %v10560_v33  ;;  %v10561_v36 = vld [vmem:[#allocation86_spill] sm:$0xff]  ;;  %v3686_v58 = vshrl.u32 %v9174_v7, 16 }
 0x297   : > { %v9127_v28 = vpop.permute.xlu1 %2834  ;;  %v4278_v2 = vsel %vm4260_vm5, %v4181_v56, %v10565_v38  ;;  %v3680_v30 = vor.u32 %v3679_v4, %v3675_v50  ;;  %v6622_v38 = vld [vmem:[%s6839_s30 + $0x1b8] sm:$0xff]  }
 0x298   : > { %v9132_v13 = vpop.permute.xlu0 %2786  ;;  %v4375_v16 = vsel %vm4357_vm6, %v4278_v2, %v10569_v14  ;;  %v3688_v37 = vor.u32 %v3686_v58, %v3684_v24  ;;  %v2755_v2 = vrot.slane %v6622_v38, 1 }
 0x299   : > { %3832 = vrot.lane.b32.xlu1 %v3673_v62, %s6755_s26  ;;  %v4231_v62 = vsel %vm4163_vm4, %v4134_v39, %v10561_v36  ;;  %v4472_v12 = vsel %vm4454_vm7, %v4375_v16, %v9132_v13  ;;  %v3446_v39 = vshrl.u32 %v9183_v18, 16  ;;  %v3685_v57 = vsel %vm872_vm0, %v3680_v30, %v3684_v24  ;;  %v9310_v16 = vld [vmem:[%s6839_s30 + $0x1cc] sm:$0xff]  }
 0x29a   : > { %3784 = vrot.lane.b32.xlu0 %v3433_v1, %s6755_s26  ;;  %v10563_v1 = vld [vmem:[#allocation111_spill] sm:$0xff] }
 0x29b   : > { %v9138_v59 = vpop.permute.xlu1 %2836  ;;  %v4280_v54 = vsel %vm4260_vm5, %v4183_v20, %v10563_v1  ;;  %v3448_v33 = vor.u32 %v3446_v39, %v3444_v11  ;;  %v3951_v1 = vrot.slane %v9174_v7, 1  ;;  %v9335_v39 = vld [vmem:[%s6839_s30 + $0xe4] sm:$0xff]  }
 0x29c   : > { %v9142_v43 = vpop.permute.xlu0 %2788  ;;  %v4377_v29 = vsel %vm4357_vm6, %v4280_v54, %v10567_v44  ;;  %v3462_v38 = vshll.u32 %v9335_v39, 16 }
 0x29d   : > { %4046 = vrot.lane.b32.xlu1 %v3947_v6, %s6756_s27  ;;  %v10564_v6 = vld [vmem:[#allocation96_spill] sm:$0xff] }
 0x29e   : > { %3998 = vrot.lane.b32.xlu0 %v3887_v53, %s6756_s27  ;;  %v4326_v31 = vsel %vm4260_vm5, %v4229_v23, %v10564_v6  ;;  %v3950_v23 = vrot.slane %v9158_v21, 1  ;;  %v3890_v6 = vrot.slane %v9166_v41, 1 }
 0x29f   : > { %v9149_v9 = vpop.permute.xlu1 %3170  ;;  %v4423_v55 = vsel %vm4357_vm6, %v4326_v31, %v10568_v27  ;;  %v3891_v31 = vrot.slane %v9183_v18, 1 }
 0x2a0   : > { %v9154_v40 = vpop.permute.xlu0 %3122 }
 0x2a1   : > { %4048 = vrot.lane.b32.xlu1 %v3949_v52, %s6756_s27  ;;  %v3439_v52 = vrot.slane %v3437_v32, 1  ;;  %v3690_v32 = vshll.u32 %v9210_v5, 16  ;;  %v4569_v47 = vsel %vm4551_vm8, %v4472_v12, %v9154_v40  ;;  %v9326_v12 = vld [vmem:[%s6839_s30 + $0x1d4] sm:$0xff]  }
 0x2a2   : > { %4000 = vrot.lane.b32.xlu0 %v3889_v45, %s6756_s27  ;;  %v4328_v45 = vsel %vm4260_vm5, %v4231_v62, %v10566_v25 }
 0x2a3   : > { %v9163_v26 = vpop.permute.xlu1 %3172  ;;  %v3440_v48 = vor.u32 %v3439_v52, %v3435_v19  ;;  %v3692_v20 = vrot.slane %v3690_v32, 1  ;;  %v3892_v52 = vsel %vm1449_vm1, %v3890_v6, %v3891_v31 }
 0x2a4   : > { %v9170_v10 = vpop.permute.xlu0 %3124 }
 0x2a5   : > { %2850 = vrot.lane.b32.xlu1 %v2752_v8, %s6753_s8  ;;  %v9226_v8 = vld [vmem:[%s6839_s30 + $0xd8] ss:$0 sps:$4 sm:$0x11]   ;;  %v3445_v4 = vsel %vm872_vm0, %v3440_v48, %v3444_v11  ;;  %v3693_v3 = vsel %vm872_vm0, %v3688_v37, %v3692_v20  ;;  %v6628_v48 = vld [vmem:[%s6839_s30 + $0x6c] sm:$0xff]  }
 0x2a6   : > { %2802 = vrot.lane.b32.xlu0 %v2692_v49, %s6753_s8  ;;  %v4520_v49 = vsel %vm4454_vm7, %v4423_v55, %v9127_v28  ;;  %v3450_v63 = vshll.u32 %v9226_v8, 16  ;;  %v6625_v55 = vld [vmem:[%s6839_s30 + $0xd0] sm:$0xff]   ;;  %v10574_v20 = vld [vmem:[#allocation20_spill] sm:$0xff] }
 0x2a7   : > { %v3819_v0 = vpop.permute.xlu1 %3818  ;;  %v4617_v17 = vsel %vm4551_vm8, %v4520_v49, %v9149_v9  ;;  %v10571_v11 = vld [vmem:[#allocation33_spill] sm:$0xff] }
 0x2a8   : > { %v3771_v60 = vpop.permute.xlu0 %3770  ;;  %v4714_v28 = vsel %vm4648_vm9, %v4617_v17, %v3819_v0  ;;  %v3452_v56 = vrot.slane %v3450_v63, 1  ;;  %v6627_v17 = vld [vmem:[%s6839_s30 + $0xd8] ss:$0 sps:$4 sm:$0x11]  }
 0x2a9   : > { %2852 = vrot.lane.b32.xlu1 %v2754_v51, %s6753_s8  ;;  %v10570_v51 = vld [vmem:[#allocation158_spill] sm:$0xff]  ;;  %v4666_v0 = vsel %vm4648_vm9, %v4569_v47, %v3771_v60  ;;  %v2698_v58 = vrot.slane %v6627_v17, 1  ;;  %v4090_v47 = vsel %vm4066_vm3, %v6628_v48, %v10571_v11 }
 0x2aa   : > { %2804 = vrot.lane.b32.xlu0 %v2694_v42, %s6753_s8  ;;  %v4425_v34 = vsel %vm4357_vm6, %v4328_v45, %v10570_v51  ;;  %v3453_v54 = vsel %vm872_vm0, %v3448_v33, %v3452_v56  ;;  %v9318_v51 = vld [vmem:[%s6839_s30 + $0xdc] sm:$0xff]   ;;  %v6631_v37 = vld [vmem:[%s6839_s30 + $0x154] sm:$0xff]   ;;  %v3702_v56 = vshll.u32 %v9326_v12, 16 }
 0x2ab   : > { %v3821_v53 = vpop.permute.xlu1 %3820  ;;  %v4522_v13 = vsel %vm4454_vm7, %v4425_v34, %v9138_v59  ;;  %v4474_v59 = vsel %vm4454_vm7, %v4377_v29, %v9142_v43  ;;  %v6624_v29 = vld [vmem:[%s6839_s30 + $0xc8] sm:$0xff]   ;;  %v3457_v63 = vshll.u32 %v9318_v51, 16 }
 0x2ac   : > { %v3773_v61 = vpop.permute.xlu0 %3772  ;;  %v4619_v40 = vsel %vm4551_vm8, %v4522_v13, %v9163_v26  ;;  %v4571_v26 = vsel %vm4551_vm8, %v4474_v59, %v9170_v10  ;;  %v2695_v27 = vrot.slane %v6624_v29, 1  ;;  %v6629_v13 = vld [vmem:[%s6839_s30 + $0x64] sm:$0xff]   ;;  %v4136_v59 = vsel %vm4066_vm3, %v6631_v37, %v10574_v20  ;;  %v10583_v29 = vld [vmem:[#allocation141_spill] sm:$0xff] }
 0x2ad   : > { %3186 = vrot.lane.b32.xlu1 %v9158_v21, %s6754_s11  ;;  %v4716_v60 = vsel %vm4648_vm9, %v4619_v40, %v3821_v53  ;;  %v4668_v36 = vsel %vm4648_vm9, %v4571_v26, %v3773_v61  ;;  %v3952_v21 = vsel %vm1449_vm1, %v3950_v23, %v3951_v1  ;;  %v6626_v61 = vld [vmem:[%s6839_s30 + $0x1c8] ss:$0 sps:$4 sm:$0x11]   ;;  %v10573_v40 = vld [vmem:[#allocation19_spill] sm:$0xff]  ;;  %v10578_v23 = vld [vmem:[#allocation93_spill] sm:$0xff] }
 0x2ae   : > { %3138 = vrot.lane.b32.xlu0 %v9166_v41, %s6754_s11  ;;  %v3893_v41 = vrot.slane %v9226_v8, 1  ;;  %v2696_v8 = vrot.slane %v6625_v55, 1  ;;  %v2758_v30 = vrot.slane %v6626_v61, 1  ;;  %v10584_v55 = vld [vmem:[#allocation161_spill] sm:$0xff]  ;;  %v10585_v61 = vld [vmem:[#allocation142_spill] sm:$0xff] }
 0x2af   : > { %v4035_v22 = vpop.permute.xlu1 %4034 }
 0x2b0   : > { %v4811_v9 = vsel %vm4745_vm10, %v4714_v28, %v4035_v22  ;;  %v3987_v46 = vpop.permute.xlu0 %3986  ;;  %v3894_v44 = vsel %vm1449_vm1, %v3891_v31, %v3893_v41  ;;  %v2697_v34 = vsel %vm1449_vm1, %v2695_v27, %v2696_v8  ;;  %v3697_v28 = vshll.u32 %v9310_v16, 16  ;;  %v9362_v31 = vld [vmem:[%s6839_s30 + $0x1dc] ss:$0 sps:$4 sm:$0x11]  }
 0x2b1   : > { %3188 = vrot.lane.b32.xlu1 %v9174_v7, %s6754_s11  ;;  %6219 = vmatprep.mubr.msk.bf16.mxu1 %vm4869_vm11, %v4811_v9  ;;  %v4763_v42 = vsel %vm4745_vm10, %v4666_v0, %v3987_v46  ;;  %v3953_v7 = vrot.slane %v9210_v5, 1  ;;  %v6623_v5 = vld [vmem:[%s6839_s30 + $0x1c0] sm:$0xff]   ;;  %v10572_v0 = vld [vmem:[#allocation34_spill] sm:$0xff]  ;;  %v3455_v41 = vshrl.u32 %v9318_v51, 16 }
 0x2b2   : > { %3140 = vrot.lane.b32.xlu0 %v9183_v18, %s6754_s11  ;;  %6171 = vmatprep.mubr.msk.bf16.mxu0 %vm4869_vm11, %v4763_v42  ;;  %v2756_v25 = vrot.slane %v6623_v5, 1  ;;  %v4088_v46 = vsel %vm4066_vm3, %v6629_v13, %v10572_v0  ;;  %v3699_v33 = vrot.slane %v3697_v28, 1  ;;  %v3704_v28 = vrot.slane %v3702_v56, 1 }
 0x2b3   : > { %v4037_v50 = vpop.permute.xlu1 %4036  ;;  %v3954_v18 = vsel %vm1449_vm1, %v3951_v1, %v3953_v7  ;;  %v4233_v1 = vsel %vm4163_vm4, %v4136_v59, %v10578_v23 }
 0x2b4   : > { %v4813_v35 = vsel %vm4745_vm10, %v4716_v60, %v4037_v50  ;;  %v3989_v43 = vpop.permute.xlu0 %3988  ;;  %v2757_v49 = vsel %vm1449_vm1, %v2755_v2, %v2756_v25  ;;  %v2759_v22 = vsel %vm1449_vm1, %v2756_v25, %v2758_v30  ;;  %v2699_v60 = vsel %vm1449_vm1, %v2696_v8, %v2698_v58  ;;  %v10575_v50 = vld [vmem:[#allocation63_spill] sm:$0xff]  ;;  %v10581_v2 = vld [vmem:[#allocation114_spill] sm:$0xff] }
 0x2b5   : > { %3834 = vrot.lane.b32.xlu1 %v3685_v57, %s6755_s26  ;;  %6220 = vmatmul.mubr.msk.bf16.gmra.mrb[16].mxu1 %vm4869_vm11, %v4813_v35  ;;  %v4765_v62 = vsel %vm4745_vm10, %v4668_v36, %v3989_v43  ;;  %v6630_v57 = vld [vmem:[%s6839_s30 + $0x15c] sm:$0xff]   ;;  %v3695_v35 = vshrl.u32 %v9310_v16, 16  ;;  %v10576_v36 = vld [vmem:[#allocation64_spill] sm:$0xff] }
 0x2b6   : > { %3786 = vrot.lane.b32.xlu0 %v3445_v4, %s6755_s26  ;;  %6172 = vmatmul.mubr.msk.bf16.gmra.mrb[16].mxu0 %vm4869_vm11, %v4765_v62  ;;  %v4138_v42 = vsel %vm4066_vm3, %v6630_v57, %v10573_v40  ;;  %v4187_v4 = vsel %vm4163_vm4, %v4090_v47, %v10575_v50  ;;  %v4185_v43 = vsel %vm4163_vm4, %v4088_v46, %v10576_v36  ;;  %v10577_v62 = vld [vmem:[#allocation91_spill] sm:$0xff]  ;;  %v3706_v47 = vshrl.u32 %v9326_v12, 16 }
 0x2b7   : > { %v9279_v10 = vpop.permute.xlu1 %2838  ;;  %v4282_v5 = vsel %vm4260_vm5, %v4185_v43, %v10581_v2  ;;  %v10582_v25 = vld [vmem:[#allocation127_spill] sm:$0xff]  ;;  %v3700_v58 = vor.u32 %v3699_v33, %v3695_v35  ;;  %v3464_v57 = vrot.slane %v3462_v38, 1  ;;  %v6632_v2 = vld [vmem:[%s6839_s30 + $0x1cc] sm:$0xff]  }
 0x2b8   : > { %v9284_v53 = vpop.permute.xlu0 %2790  ;;  %v4379_v30 = vsel %vm4357_vm6, %v4282_v5, %v10585_v61  ;;  %v3708_v50 = vor.u32 %v3706_v47, %v3704_v28  ;;  %v2760_v5 = vrot.slane %v6632_v2, 1 }
 0x2b9   : > { %3836 = vrot.lane.b32.xlu1 %v3693_v3, %s6755_s26  ;;  %v4235_v3 = vsel %vm4163_vm4, %v4138_v42, %v10577_v62  ;;  %v4476_v13 = vsel %vm4454_vm7, %v4379_v30, %v9284_v53  ;;  %v3466_v42 = vshrl.u32 %v9335_v39, 16  ;;  %v3705_v59 = vsel %vm872_vm0, %v3700_v58, %v3704_v28  ;;  %v9462_v30 = vld [vmem:[%s6839_s30 + $0x1e0] sm:$0xff]  }
 0x2ba   : > { %3788 = vrot.lane.b32.xlu0 %v3453_v54, %s6755_s26  ;;  %v10579_v54 = vld [vmem:[#allocation113_spill] sm:$0xff] }
 0x2bb   : > { %v9290_v19 = vpop.permute.xlu1 %2840  ;;  %v4284_v6 = vsel %vm4260_vm5, %v4187_v4, %v10579_v54  ;;  %v3468_v36 = vor.u32 %v3466_v42, %v3464_v57  ;;  %v3956_v54 = vrot.slane %v9326_v12, 1  ;;  %v9487_v42 = vld [vmem:[%s6839_s30 + $0xf8] sm:$0xff]  }
 0x2bc   : > { %v9294_v15 = vpop.permute.xlu0 %2792  ;;  %v4381_v27 = vsel %vm4357_vm6, %v4284_v6, %v10583_v29  ;;  %v3482_v2 = vshll.u32 %v9487_v42, 16 }
 0x2bd   : > { %4050 = vrot.lane.b32.xlu1 %v3952_v21, %s6756_s27  ;;  %v10580_v21 = vld [vmem:[#allocation128_spill] sm:$0xff] }
 0x2be   : > { %4002 = vrot.lane.b32.xlu0 %v3892_v52, %s6756_s27  ;;  %v4330_v7 = vsel %vm4260_vm5, %v4233_v1, %v10580_v21  ;;  %v3955_v1 = vrot.slane %v9310_v16, 1  ;;  %v3895_v21 = vrot.slane %v9318_v51, 1 }
 0x2bf   : > { %v9301_v45 = vpop.permute.xlu1 %3174  ;;  %v4427_v8 = vsel %vm4357_vm6, %v4330_v7, %v10584_v55  ;;  %v3896_v7 = vrot.slane %v9335_v39, 1 }
 0x2c0   : > { %v9306_v14 = vpop.permute.xlu0 %3126 }
 0x2c1   : > { %4052 = vrot.lane.b32.xlu1 %v3954_v18, %s6756_s27  ;;  %v3459_v18 = vrot.slane %v3457_v63, 1  ;;  %v3710_v63 = vshll.u32 %v9362_v31, 16  ;;  %v4573_v40 = vsel %vm4551_vm8, %v4476_v13, %v9306_v14  ;;  %v9478_v13 = vld [vmem:[%s6839_s30 + $0x1e8] sm:$0xff]  }
 0x2c2   : > { %4004 = vrot.lane.b32.xlu0 %v3894_v44, %s6756_s27  ;;  %v4332_v44 = vsel %vm4260_vm5, %v4235_v3, %v10582_v25 }
 0x2c3   : > { %v9315_v24 = vpop.permute.xlu1 %3176  ;;  %v3460_v46 = vor.u32 %v3459_v18, %v3455_v41  ;;  %v3712_v4 = vrot.slane %v3710_v63, 1  ;;  %v3897_v18 = vsel %vm1449_vm1, %v3895_v21, %v3896_v7 }
 0x2c4   : > { %v9322_v32 = vpop.permute.xlu0 %3128 }
 0x2c5   : > { %2854 = vrot.lane.b32.xlu1 %v2757_v49, %s6753_s8  ;;  %v9378_v49 = vld [vmem:[%s6839_s30 + $0xec] ss:$0 sps:$4 sm:$0x11]   ;;  %v3465_v33 = vsel %vm872_vm0, %v3460_v46, %v3464_v57  ;;  %v3713_v23 = vsel %vm872_vm0, %v3708_v50, %v3712_v4  ;;  %v6638_v46 = vld [vmem:[%s6839_s30 + $0x80] sm:$0xff]   ;;  %v10590_v4 = vld [vmem:[#allocation22_spill] sm:$0xff] }
 0x2c6   : > { %2806 = vrot.lane.b32.xlu0 %v2697_v34, %s6753_s8  ;;  %v4524_v34 = vsel %vm4454_vm7, %v4427_v8, %v9279_v10  ;;  %v3470_v37 = vshll.u32 %v9378_v49, 16  ;;  %v6635_v8 = vld [vmem:[%s6839_s30 + $0xe4] sm:$0xff]  }
 0x2c7   : > { %v3823_v9 = vpop.permute.xlu1 %3822  ;;  %v4621_v11 = vsel %vm4551_vm8, %v4524_v34, %v9301_v45  ;;  %v10587_v57 = vld [vmem:[#allocation35_spill] sm:$0xff]  ;;  %v6641_v50 = vld [vmem:[%s6839_s30 + $0x168] sm:$0xff]  }
 0x2c8   : > { %v3775_v26 = vpop.permute.xlu0 %3774  ;;  %v4718_v10 = vsel %vm4648_vm9, %v4621_v11, %v3823_v9  ;;  %v3472_v43 = vrot.slane %v3470_v37, 1  ;;  %v6637_v11 = vld [vmem:[%s6839_s30 + $0xec] ss:$0 sps:$4 sm:$0x11]  }
 0x2c9   : > { %2856 = vrot.lane.b32.xlu1 %v2759_v22, %s6753_s8  ;;  %v10586_v22 = vld [vmem:[#allocation160_spill] sm:$0xff]  ;;  %v4670_v9 = vsel %vm4648_vm9, %v4573_v40, %v3775_v26  ;;  %v2703_v47 = vrot.slane %v6637_v11, 1  ;;  %v4094_v40 = vsel %vm4066_vm3, %v6638_v46, %v10587_v57 }
 0x2ca   : > { %2808 = vrot.lane.b32.xlu0 %v2699_v60, %s6753_s8  ;;  %v4429_v48 = vsel %vm4357_vm6, %v4332_v44, %v10586_v22  ;;  %v3473_v6 = vsel %vm872_vm0, %v3468_v36, %v3472_v43  ;;  %v9470_v22 = vld [vmem:[%s6839_s30 + $0xf0] sm:$0xff]   ;;  %v3722_v43 = vshll.u32 %v9478_v13, 16 }
 0x2cb   : > { %v3825_v52 = vpop.permute.xlu1 %3824  ;;  %v4526_v53 = vsel %vm4454_vm7, %v4429_v48, %v9290_v19  ;;  %v4478_v19 = vsel %vm4454_vm7, %v4381_v27, %v9294_v15  ;;  %v6634_v27 = vld [vmem:[%s6839_s30 + $0xdc] sm:$0xff]   ;;  %v3477_v37 = vshll.u32 %v9470_v22, 16 }
 0x2cc   : > { %v3777_v17 = vpop.permute.xlu0 %3776  ;;  %v4623_v14 = vsel %vm4551_vm8, %v4526_v53, %v9315_v24  ;;  %v4575_v24 = vsel %vm4551_vm8, %v4478_v19, %v9322_v32  ;;  %v2700_v55 = vrot.slane %v6634_v27, 1  ;;  %v6639_v53 = vld [vmem:[%s6839_s30 + $0x78] sm:$0xff]   ;;  %v4140_v19 = vsel %vm4066_vm3, %v6641_v50, %v10590_v4  ;;  %v10599_v27 = vld [vmem:[#allocation143_spill] sm:$0xff] }
 0x2cd   : > { %3190 = vrot.lane.b32.xlu1 %v9310_v16, %s6754_s11  ;;  %v4720_v26 = vsel %vm4648_vm9, %v4623_v14, %v3825_v52  ;;  %v4672_v62 = vsel %vm4648_vm9, %v4575_v24, %v3777_v17  ;;  %v3957_v16 = vsel %vm1449_vm1, %v3955_v1, %v3956_v54  ;;  %v6636_v17 = vld [vmem:[%s6839_s30 + $0x1dc] ss:$0 sps:$4 sm:$0x11]   ;;  %v10589_v14 = vld [vmem:[#allocation21_spill] sm:$0xff] }
 0x2ce   : > { %3142 = vrot.lane.b32.xlu0 %v9318_v51, %s6754_s11  ;;  %v3898_v51 = vrot.slane %v9378_v49, 1  ;;  %v2701_v49 = vrot.slane %v6635_v8, 1  ;;  %v2763_v58 = vrot.slane %v6636_v17, 1  ;;  %v10594_v1 = vld [vmem:[#allocation97_spill] sm:$0xff]  ;;  %v10600_v8 = vld [vmem:[#allocation163_spill] sm:$0xff]  ;;  %v10601_v17 = vld [vmem:[#allocation144_spill] sm:$0xff] }
 0x2cf   : > { %v4039_v0 = vpop.permute.xlu1 %4038 }
 0x2d0   : > { %v4815_v45 = vsel %vm4745_vm10, %v4718_v10, %v4039_v0  ;;  %v3991_v20 = vpop.permute.xlu0 %3990  ;;  %v3899_v29 = vsel %vm1449_vm1, %v3896_v7, %v3898_v51  ;;  %v2702_v48 = vsel %vm1449_vm1, %v2700_v55, %v2701_v49  ;;  %v3717_v10 = vshll.u32 %v9462_v30, 16  ;;  %v9514_v7 = vld [vmem:[%s6839_s30 + $0x1f0] ss:$0 sps:$4 sm:$0x11]  }
 0x2d1   : > { %3192 = vrot.lane.b32.xlu1 %v9326_v12, %s6754_s11  ;;  %6223 = vmatprep.mubr.msk.bf16.mxu1 %vm4869_vm11, %v4815_v45  ;;  %v4767_v60 = vsel %vm4745_vm10, %v4670_v9, %v3991_v20  ;;  %v3958_v12 = vrot.slane %v9362_v31, 1  ;;  %v6633_v31 = vld [vmem:[%s6839_s30 + $0x1d4] sm:$0xff]   ;;  %v10588_v9 = vld [vmem:[#allocation36_spill] sm:$0xff]  ;;  %v3475_v51 = vshrl.u32 %v9470_v22, 16 }
 0x2d2   : > { %3144 = vrot.lane.b32.xlu0 %v9335_v39, %s6754_s11  ;;  %6175 = vmatprep.mubr.msk.bf16.mxu0 %vm4869_vm11, %v4767_v60  ;;  %v2761_v25 = vrot.slane %v6633_v31, 1  ;;  %v4092_v20 = vsel %vm4066_vm3, %v6639_v53, %v10588_v9  ;;  %v3719_v36 = vrot.slane %v3717_v10, 1  ;;  %v3724_v10 = vrot.slane %v3722_v43, 1 }
 0x2d3   : > { %v4041_v35 = vpop.permute.xlu1 %4040  ;;  %v3959_v39 = vsel %vm1449_vm1, %v3956_v54, %v3958_v12  ;;  %v4237_v54 = vsel %vm4163_vm4, %v4140_v19, %v10594_v1 }
 0x2d4   : > { %v4817_v56 = vsel %vm4745_vm10, %v4720_v26, %v4041_v35  ;;  %v3993_v15 = vpop.permute.xlu0 %3992  ;;  %v2762_v34 = vsel %vm1449_vm1, %v2760_v5, %v2761_v25  ;;  %v2764_v0 = vsel %vm1449_vm1, %v2761_v25, %v2763_v58  ;;  %v2704_v26 = vsel %vm1449_vm1, %v2701_v49, %v2703_v47  ;;  %v10591_v35 = vld [vmem:[#allocation65_spill] sm:$0xff]  ;;  %v10597_v5 = vld [vmem:[#allocation116_spill] sm:$0xff] }
 0x2d5   : > { %3838 = vrot.lane.b32.xlu1 %v3705_v59, %s6755_s26  ;;  %6224 = vmatmul.mubr.msk.bf16.gmra.mrb[20].mxu1 %vm4869_vm11, %v4817_v56  ;;  %v4769_v3 = vsel %vm4745_vm10, %v4672_v62, %v3993_v15  ;;  %v6640_v59 = vld [vmem:[%s6839_s30 + $0x170] sm:$0xff]   ;;  %v3715_v56 = vshrl.u32 %v9462_v30, 16  ;;  %v10592_v62 = vld [vmem:[#allocation66_spill] sm:$0xff] }
 0x2d6   : > { %3790 = vrot.lane.b32.xlu0 %v3465_v33, %s6755_s26  ;;  %6176 = vmatmul.mubr.msk.bf16.gmra.mrb[20].mxu0 %vm4869_vm11, %v4769_v3  ;;  %v4142_v60 = vsel %vm4066_vm3, %v6640_v59, %v10589_v14  ;;  %v4191_v33 = vsel %vm4163_vm4, %v4094_v40, %v10591_v35  ;;  %v4189_v15 = vsel %vm4163_vm4, %v4092_v20, %v10592_v62  ;;  %v10593_v3 = vld [vmem:[#allocation95_spill] sm:$0xff]  ;;  %v10598_v25 = vld [vmem:[#allocation85_spill] sm:$0xff]  ;;  %v3726_v40 = vshrl.u32 %v9478_v13, 16 }
 0x2d7   : > { %v9431_v32 = vpop.permute.xlu1 %2842  ;;  %v4286_v31 = vsel %vm4260_vm5, %v4189_v15, %v10597_v5  ;;  %v3720_v47 = vor.u32 %v3719_v36, %v3715_v56  ;;  %v3484_v59 = vrot.slane %v3482_v2, 1  ;;  %v6642_v5 = vld [vmem:[%s6839_s30 + $0x1e0] sm:$0xff]  }
 0x2d8   : > { %v9436_v52 = vpop.permute.xlu0 %2794  ;;  %v4383_v58 = vsel %vm4357_vm6, %v4286_v31, %v10601_v17  ;;  %v3728_v35 = vor.u32 %v3726_v40, %v3724_v10  ;;  %v2765_v31 = vrot.slane %v6642_v5, 1 }
 0x2d9   : > { %3840 = vrot.lane.b32.xlu1 %v3713_v23, %s6755_s26  ;;  %v4239_v23 = vsel %vm4163_vm4, %v4142_v60, %v10593_v3  ;;  %v4480_v53 = vsel %vm4454_vm7, %v4383_v58, %v9436_v52  ;;  %v3486_v60 = vshrl.u32 %v9487_v42, 16  ;;  %v3725_v19 = vsel %vm872_vm0, %v3720_v47, %v3724_v10  ;;  %v9616_v47 = vld [vmem:[%s6839_s30 + $0x1f4] sm:$0xff]  }
 0x2da   : > { %3792 = vrot.lane.b32.xlu0 %v3473_v6, %s6755_s26  ;;  %v10595_v6 = vld [vmem:[#allocation115_spill] sm:$0xff] }
 0x2db   : > { %v9442_v41 = vpop.permute.xlu1 %2844  ;;  %v4288_v21 = vsel %vm4260_vm5, %v4191_v33, %v10595_v6  ;;  %v3488_v62 = vor.u32 %v3486_v60, %v3484_v59  ;;  %v3961_v6 = vrot.slane %v9478_v13, 1  ;;  %v10603_v60 = vld [vmem:[#allocation37_spill] sm:$0xff] }
 0x2dc   : > { %v9446_v38 = vpop.permute.xlu0 %2796  ;;  %v4385_v55 = vsel %vm4357_vm6, %v4288_v21, %v10599_v27 }
 0x2dd   : > { %4054 = vrot.lane.b32.xlu1 %v3957_v16, %s6756_s27  ;;  %v10596_v16 = vld [vmem:[#allocation129_spill] sm:$0xff] }
 0x2de   : > { %4006 = vrot.lane.b32.xlu0 %v3897_v18, %s6756_s27  ;;  %v4334_v12 = vsel %vm4260_vm5, %v4237_v54, %v10596_v16  ;;  %v3960_v54 = vrot.slane %v9462_v30, 1  ;;  %v3900_v16 = vrot.slane %v9470_v22, 1 }
 0x2df   : > { %v9453_v44 = vpop.permute.xlu1 %3178  ;;  %v4431_v49 = vsel %vm4357_vm6, %v4334_v12, %v10600_v8  ;;  %v3901_v12 = vrot.slane %v9487_v42, 1 }
 0x2e0   : > { %v9458_v61 = vpop.permute.xlu0 %3130 }
 0x2e1   : > { %4056 = vrot.lane.b32.xlu1 %v3959_v39, %s6756_s27  ;;  %v3479_v39 = vrot.slane %v3477_v37, 1  ;;  %v3730_v37 = vshll.u32 %v9514_v7, 16  ;;  %v4577_v14 = vsel %vm4551_vm8, %v4480_v53, %v9458_v61 }
 0x2e2   : > { %4008 = vrot.lane.b32.xlu0 %v3899_v29, %s6756_s27  ;;  %v4336_v29 = vsel %vm4260_vm5, %v4239_v23, %v10598_v25 }
 0x2e3   : > { %v9467_v28 = vpop.permute.xlu1 %3180  ;;  %v3480_v20 = vor.u32 %v3479_v39, %v3475_v51  ;;  %v3732_v33 = vrot.slane %v3730_v37, 1  ;;  %v3902_v39 = vsel %vm1449_vm1, %v3900_v16, %v3901_v12  ;;  %v10611_v16 = vld [vmem:[#allocation130_spill] sm:$0xff] }
 0x2e4   : > { %v9474_v63 = vpop.permute.xlu0 %3132 }
 0x2e5   : > { %2858 = vrot.lane.b32.xlu1 %v2762_v34, %s6753_s8  ;;  %v9530_v34 = vld [vmem:[%s6839_s30 + $0x100] ss:$0 sps:$4 sm:$0x11]   ;;  %v3485_v36 = vsel %vm872_vm0, %v3480_v20, %v3484_v59  ;;  %v3733_v1 = vsel %vm872_vm0, %v3728_v35, %v3732_v33  ;;  %v9636_v59 = vld [vmem:[%s6839_s30 + $0x10c] sm:$0xff]  }
 0x2e6   : > { %2810 = vrot.lane.b32.xlu0 %v2702_v48, %s6753_s8  ;;  %v4528_v48 = vsel %vm4454_vm7, %v4431_v49, %v9431_v32  ;;  %v3490_v50 = vshll.u32 %v9530_v34, 16  ;;  %v6645_v49 = vld [vmem:[%s6839_s30 + $0xf8] sm:$0xff]  }
 0x2e7   : > { %v3827_v45 = vpop.permute.xlu1 %3826  ;;  %v4625_v57 = vsel %vm4551_vm8, %v4528_v48, %v9453_v44  ;;  %v6646_v48 = vld [vmem:[%s6839_s30 + $0x1f0] ss:$0 sps:$4 sm:$0x11]   ;;  %v6651_v33 = vld [vmem:[%s6839_s30 + $0x17c] sm:$0xff]  }
 0x2e8   : > { %v3779_v24 = vpop.permute.xlu0 %3778  ;;  %v4722_v32 = vsel %vm4648_vm9, %v4625_v57, %v3827_v45  ;;  %v3492_v15 = vrot.slane %v3490_v50, 1  ;;  %v6647_v57 = vld [vmem:[%s6839_s30 + $0x100] ss:$0 sps:$4 sm:$0x11]  }
 0x2e9   : > { %2860 = vrot.lane.b32.xlu1 %v2764_v0, %s6753_s8  ;;  %v10602_v0 = vld [vmem:[#allocation162_spill] sm:$0xff]  ;;  %v4674_v45 = vsel %vm4648_vm9, %v4577_v14, %v3779_v24  ;;  %v2708_v40 = vrot.slane %v6647_v57, 1 }
 0x2ea   : > { %2812 = vrot.lane.b32.xlu0 %v2704_v26, %s6753_s8  ;;  %v4433_v46 = vsel %vm4357_vm6, %v4336_v29, %v10602_v0  ;;  %v3493_v21 = vsel %vm872_vm0, %v3488_v62, %v3492_v15  ;;  %v9622_v0 = vld [vmem:[%s6839_s30 + $0x104] sm:$0xff]  }
 0x2eb   : > { %v3829_v18 = vpop.permute.xlu1 %3828  ;;  %v4530_v52 = vsel %vm4454_vm7, %v4433_v46, %v9442_v41  ;;  %v4482_v41 = vsel %vm4454_vm7, %v4385_v55, %v9446_v38  ;;  %v6644_v55 = vld [vmem:[%s6839_s30 + $0xf0] sm:$0xff]   ;;  %v3497_v14 = vshll.u32 %v9622_v0, 16  ;;  %v10609_v62 = vld [vmem:[#allocation99_spill] sm:$0xff] }
 0x2ec   : > { %v3781_v11 = vpop.permute.xlu0 %3780  ;;  %v4627_v61 = vsel %vm4551_vm8, %v4530_v52, %v9467_v28  ;;  %v4579_v28 = vsel %vm4551_vm8, %v4482_v41, %v9474_v63  ;;  %v2705_v8 = vrot.slane %v6644_v55, 1  ;;  %v6649_v52 = vld [vmem:[%s6839_s30 + $0x8c] sm:$0xff]  }
 0x2ed   : > { %3194 = vrot.lane.b32.xlu1 %v9462_v30, %s6754_s11  ;;  %v4724_v24 = vsel %vm4648_vm9, %v4627_v61, %v3829_v18  ;;  %v4676_v3 = vsel %vm4648_vm9, %v4579_v28, %v3781_v11  ;;  %v3962_v30 = vsel %vm1449_vm1, %v3960_v54, %v3961_v6  ;;  %v2768_v11 = vrot.slane %v6646_v48, 1  ;;  %v10605_v61 = vld [vmem:[#allocation43_spill] sm:$0xff]  ;;  %v10606_v41 = vld [vmem:[#allocation44_spill] sm:$0xff]  ;;  %v10615_v55 = vld [vmem:[#allocation165_spill] sm:$0xff] }
 0x2ee   : > { %3146 = vrot.lane.b32.xlu0 %v9470_v22, %s6754_s11  ;;  %v3903_v22 = vrot.slane %v9530_v34, 1  ;;  %v2706_v34 = vrot.slane %v6645_v49, 1  ;;  %v10608_v28 = vld [vmem:[#allocation68_spill] sm:$0xff]  ;;  %v3735_v54 = vshrl.u32 %v9616_v47, 16 }
 0x2ef   : > { %v4043_v9 = vpop.permute.xlu1 %4042  ;;  %v9680_v49 = vld [vmem:[%s6839_s30 + $0x114] ss:$0 sps:$4 sm:$0x11]  }
 0x2f0   : > { %v4819_v44 = vsel %vm4745_vm10, %v4722_v32, %v4043_v9  ;;  %v3995_v4 = vpop.permute.xlu0 %3994  ;;  %v3904_v27 = vsel %vm1449_vm1, %v3901_v12, %v3903_v22  ;;  %v2707_v46 = vsel %vm1449_vm1, %v2705_v8, %v2706_v34  ;;  %v9631_v32 = vld [vmem:[%s6839_s30 + $0x1fc] sm:$0xff]   ;;  %v3737_v9 = vshll.u32 %v9616_v47, 16 }
 0x2f1   : > { %3196 = vrot.lane.b32.xlu1 %v9478_v13, %s6754_s11  ;;  %6227 = vmatprep.mubr.msk.bf16.mxu1 %vm4869_vm11, %v4819_v44  ;;  %v4771_v26 = vsel %vm4745_vm10, %v4674_v45, %v3995_v4  ;;  %v3963_v13 = vrot.slane %v9514_v7, 1  ;;  %v6643_v7 = vld [vmem:[%s6839_s30 + $0x1e8] sm:$0xff]   ;;  %v6648_v44 = vld [vmem:[%s6839_s30 + $0x94] sm:$0xff]   ;;  %v2709_v35 = vsel %vm1449_vm1, %v2706_v34, %v2708_v40  ;;  %v3502_v22 = vshll.u32 %v9636_v59, 16 }
 0x2f2   : > { %3148 = vrot.lane.b32.xlu0 %v9487_v42, %s6754_s11  ;;  %6179 = vmatprep.mubr.msk.bf16.mxu0 %vm4869_vm11, %v4771_v26  ;;  %v2766_v25 = vrot.slane %v6643_v7, 1  ;;  %v4098_v50 = vsel %vm4066_vm3, %v6648_v44, %v10603_v60  ;;  %v10604_v45 = vld [vmem:[#allocation38_spill] sm:$0xff]  ;;  %v10617_v40 = vld [vmem:[#allocation164_spill] sm:$0xff] }
 0x2f3   : > { %v4045_v56 = vpop.permute.xlu1 %4044  ;;  %v3964_v42 = vsel %vm1449_vm1, %v3961_v6, %v3963_v13  ;;  %v4096_v4 = vsel %vm4066_vm3, %v6649_v52, %v10604_v45  ;;  %v3739_v6 = vrot.slane %v3737_v9, 1  ;;  %v3495_v13 = vshrl.u32 %v9622_v0, 16  ;;  %v10616_v34 = vld [vmem:[#allocation146_spill] sm:$0xff] }
 0x2f4   : > { %v4821_v43 = vsel %vm4745_vm10, %v4724_v24, %v4045_v56  ;;  %v3997_v38 = vpop.permute.xlu0 %3996  ;;  %v2767_v58 = vsel %vm1449_vm1, %v2765_v31, %v2766_v25  ;;  %v2769_v53 = vsel %vm1449_vm1, %v2766_v25, %v2768_v11  ;;  %v4144_v24 = vsel %vm4066_vm3, %v6651_v33, %v10606_v41  ;;  %v10607_v56 = vld [vmem:[#allocation67_spill] sm:$0xff]  ;;  %v10613_v31 = vld [vmem:[#allocation118_spill] sm:$0xff]  ;;  %v10618_v33 = vld [vmem:[#allocation145_spill] sm:$0xff] }
 0x2f5   : > { %3842 = vrot.lane.b32.xlu1 %v3725_v19, %s6755_s26  ;;  %6228 = vmatmul.mubr.msk.bf16.gmra.mrb[24].mxu1 %vm4869_vm11, %v4821_v43  ;;  %v4773_v23 = vsel %vm4745_vm10, %v4676_v3, %v3997_v38  ;;  %v6650_v19 = vld [vmem:[%s6839_s30 + $0x184] sm:$0xff]   ;;  %v4193_v43 = vsel %vm4163_vm4, %v4096_v4, %v10608_v28  ;;  %v10614_v25 = vld [vmem:[#allocation90_spill] sm:$0xff]  ;;  %v3504_v45 = vrot.slane %v3502_v22, 1  ;;  %v3965_v22 = vrot.slane %v9616_v47, 1 }
 0x2f6   : > { %3794 = vrot.lane.b32.xlu0 %v3485_v36, %s6755_s26  ;;  %6180 = vmatmul.mubr.msk.bf16.gmra.mrb[24].mxu0 %vm4869_vm11, %v4773_v23  ;;  %v4146_v26 = vsel %vm4066_vm3, %v6650_v19, %v10605_v61  ;;  %v4195_v36 = vsel %vm4163_vm4, %v4098_v50, %v10607_v56  ;;  %v9660_v38 = vld [vmem:[%s6839_s30 + $0x204] ss:$0 sps:$4 sm:$0x11]   ;;  %v10610_v23 = vld [vmem:[#allocation100_spill] sm:$0xff]  ;;  %v4290_v7 = vsel %vm4260_vm5, %v4193_v43, %v10613_v31 }
 0x2f7   : > { %v9583_v63 = vpop.permute.xlu1 %2846  ;;  %v4243_v15 = vsel %vm4163_vm4, %v4146_v26, %v10609_v62  ;;  %v3750_v57 = vshll.u32 %v9660_v38, 16 }
 0x2f8   : > { %v9588_v18 = vpop.permute.xlu0 %2798 }
 0x2f9   : > { %3844 = vrot.lane.b32.xlu1 %v3733_v1, %s6755_s26  ;;  %v4241_v1 = vsel %vm4163_vm4, %v4144_v24, %v10610_v23 }
 0x2fa   : > { %3796 = vrot.lane.b32.xlu0 %v3493_v21, %s6755_s26  ;;  %v3742_v21 = vshll.u32 %v9631_v32, 16  ;;  %v4338_v12 = vsel %vm4260_vm5, %v4241_v1, %v10611_v16 }
 0x2fb   : > { %v9594_v51 = vpop.permute.xlu1 %2848  ;;  %v4435_v8 = vsel %vm4357_vm6, %v4338_v12, %v10615_v55 }
 0x2fc   : > { %v9598_v2 = vpop.permute.xlu0 %2800  ;;  %v4532_v48 = vsel %vm4454_vm7, %v4435_v8, %v9583_v63  ;;  %v3744_v44 = vrot.slane %v3742_v21, 1  ;;  %v3905_v8 = vrot.slane %v9622_v0, 1 }
 0x2fd   : > { %4058 = vrot.lane.b32.xlu1 %v3962_v30, %s6756_s27 }
 0x2fe   : > { %4010 = vrot.lane.b32.xlu0 %v3902_v39, %s6756_s27  ;;  %v3499_v39 = vrot.slane %v3497_v14, 1  ;;  %v3740_v14 = vor.u32 %v3739_v6, %v3735_v54 }
 0x2ff   : > { %v9605_v29 = vpop.permute.xlu1 %3182 }
 0x300   : > { %v9610_v17 = vpop.permute.xlu0 %3134  ;;  %v4629_v9 = vsel %vm4551_vm8, %v4532_v48, %v9605_v29  ;;  %v3500_v52 = vor.u32 %v3499_v39, %v3495_v13  ;;  %v3506_v29 = vshrl.u32 %v9636_v59, 16 }
 0x301   : > { %4060 = vrot.lane.b32.xlu1 %v3964_v42, %s6756_s27  ;;  %v10612_v42 = vld [vmem:[#allocation117_spill] sm:$0xff] }
 0x302   : > { %4012 = vrot.lane.b32.xlu0 %v3904_v27, %s6756_s27  ;;  %v4292_v5 = vsel %vm4260_vm5, %v4195_v36, %v10612_v42  ;;  %v4340_v27 = vsel %vm4260_vm5, %v4243_v15, %v10614_v25  ;;  %v3745_v36 = vsel %vm872_vm0, %v3740_v14, %v3744_v44  ;;  %v3505_v62 = vsel %vm872_vm0, %v3500_v52, %v3504_v45 }
 0x303   : > { %v9619_v10 = vpop.permute.xlu1 %3184  ;;  %v4389_v41 = vsel %vm4357_vm6, %v4292_v5, %v10618_v33  ;;  %v3508_v1 = vor.u32 %v3506_v29, %v3504_v45  ;;  %v3966_v42 = vrot.slane %v9631_v32, 1  ;;  %v6652_v45 = vld [vmem:[%s6839_s30 + $0x190] sm:$0xff]  }
 0x304   : > { %v9626_v37 = vpop.permute.xlu0 %3136  ;;  %v4486_v28 = vsel %vm4454_vm7, %v4389_v41, %v9598_v2 }
 0x305   : > { %2862 = vrot.lane.b32.xlu1 %v2767_v58, %s6753_s8  ;;  %v4387_v58 = vsel %vm4357_vm6, %v4290_v7, %v10616_v34  ;;  %v4583_v15 = vsel %vm4551_vm8, %v4486_v28, %v9626_v37  ;;  %v3906_v34 = vrot.slane %v9636_v59, 1 }
 0x306   : > { %2814 = vrot.lane.b32.xlu0 %v2707_v46, %s6753_s8  ;;  %v3746_v46 = vshrl.u32 %v9631_v32, 16  ;;  %v4484_v63 = vsel %vm4454_vm7, %v4387_v58, %v9588_v18  ;;  %v3510_v18 = vshll.u32 %v9680_v49, 16 }
 0x307   : > { %v3831_v20 = vpop.permute.xlu1 %3830  ;;  %v4581_v4 = vsel %vm4551_vm8, %v4484_v63, %v9610_v17 }
 0x308   : > { %v3783_v3 = vpop.permute.xlu0 %3782  ;;  %v4726_v60 = vsel %vm4648_vm9, %v4629_v9, %v3831_v20  ;;  %v3748_v17 = vor.u32 %v3746_v46, %v3744_v44  ;;  %v3512_v54 = vrot.slane %v3510_v18, 1  ;;  %v3908_v9 = vrot.slane %v9680_v49, 1  ;;  %v10620_v18 = vld [vmem:[#allocation102_spill] sm:$0xff] }
 0x309   : > { %2864 = vrot.lane.b32.xlu1 %v2769_v53, %s6753_s8  ;;  %v4437_v53 = vsel %vm4357_vm6, %v4340_v27, %v10617_v40  ;;  %v4678_v61 = vsel %vm4648_vm9, %v4581_v4, %v3783_v3  ;;  %v3967_v40 = vsel %vm1449_vm1, %v3965_v22, %v3966_v42  ;;  %v10619_v4 = vld [vmem:[#allocation46_spill] sm:$0xff] }
 0x30a   : > { %2816 = vrot.lane.b32.xlu0 %v2709_v35, %s6753_s8  ;;  %v4534_v20 = vsel %vm4454_vm7, %v4437_v53, %v9594_v51  ;;  %v3752_v35 = vrot.slane %v3750_v57, 1  ;;  %v9723_v51 = vld [vmem:[%s10253_s2] ss:$0 sm:$0xff]  ;;  %v3513_v55 = vsel %vm872_vm0, %v3508_v1, %v3512_v54  ;;  %v3907_v53 = vsel %vm1449_vm1, %v3905_v8, %v3906_v34  ;;  %v10627_v54 = vld [vmem:[#allocation101_spill] sm:$0xff] }
 0x30b   : > { %v3833_v30 = vpop.permute.xlu1 %3832  ;;  %v4631_v24 = vsel %vm4551_vm8, %v4534_v20, %v9619_v10  ;;  %v3909_v63 = vsel %vm1449_vm1, %v3906_v34, %v3908_v9  ;;  %v10633_v8 = vld [vmem:[#allocation119_spill] sm:$0xff] }
 0x30c   : > { %v3785_v11 = vpop.permute.xlu0 %3784  ;;  %v4728_v43 = vsel %vm4648_vm9, %v4631_v24, %v3833_v30  ;;  %v3753_v12 = vsel %vm872_vm0, %v3748_v17, %v3752_v35  ;;  %v10622_v35 = vld [vmem:[#allocation131_spill] sm:$0xff]  ;;  %v10623_v24 = vld [vmem:[#allocation70_spill] sm:$0xff] }
 0x30d   : > { %3198 = vrot.lane.b32.xlu1 %v9616_v47, %s6754_s11  ;;  %v4680_v2 = vsel %vm4648_vm9, %v4583_v15, %v3785_v11  ;;  %v10626_v15 = vld [vmem:[#allocation120_spill] sm:$0xff] }
 0x30e   : > { %3150 = vrot.lane.b32.xlu0 %v9622_v0, %s6754_s11  ;;  %v3968_v0 = vrot.slane %v9660_v38, 1 }
 0x30f   : > { %v4047_v50 = vpop.permute.xlu1 %4046 }
 0x310   : > { %v4823_v19 = vsel %vm4745_vm10, %v4726_v60, %v4047_v50  ;;  %v3999_v26 = vpop.permute.xlu0 %3998  ;;  %v3969_v44 = vsel %vm1449_vm1, %v3966_v42, %v3968_v0 }
 0x311   : > { %3200 = vrot.lane.b32.xlu1 %v9631_v32, %s6754_s11  ;;  %6231 = vmatprep.mubr.msk.bf16.mxu1 %vm4869_vm11, %v4823_v19  ;;  %v4775_v56 = vsel %vm4745_vm10, %v4678_v61, %v3999_v26  ;;  %v4148_v19 = vsel %vm4066_vm3, %v6652_v45, %v10619_v4  ;;  %v6653_v61 = vld [vmem:[%s6839_s30 + $0xa0] sm:$0xff]   ;;  %v10621_v26 = vld [vmem:[#allocation40_spill] sm:$0xff] }
 0x312   : > { %3152 = vrot.lane.b32.xlu0 %v9636_v59, %s6754_s11  ;;  %6183 = vmatprep.mubr.msk.bf16.mxu0 %vm4869_vm11, %v4775_v56  ;;  %v4245_v20 = vsel %vm4163_vm4, %v4148_v19, %v10620_v18  ;;  %v4100_v17 = vsel %vm4066_vm3, %v6653_v61, %v10621_v26 }
 0x313   : > { %v4049_v10 = vpop.permute.xlu1 %4048  ;;  %v4342_v33 = vsel %vm4260_vm5, %v4245_v20, %v10622_v35  ;;  %v4197_v56 = vsel %vm4163_vm4, %v4100_v17, %v10623_v24 }
 0x314   : > { %v4825_v3 = vsel %vm4745_vm10, %v4728_v43, %v4049_v10  ;;  %v6205_v23 = vpop.f32.mrb[0].mxu1  ;;  %v4001_v6 = vpop.permute.xlu0 %4000  ;;  %v6654_v43 = vld [vmem:[%s6839_s30 + $0x198] sm:$0xff]   ;;  %v10625_v10 = vld [vmem:[#allocation45_spill] sm:$0xff] }
 0x315   : > { %v5205_v21 = vadd.f32 %v6205_v23, %v9723_v51  ;;  %3846 = vrot.lane.b32.xlu1 %v3745_v36, %s6755_s26  ;;  %v5196_v16 = vpop.f32.mrb[1].mxu1  ;;  %6232 = vmatmul.mubr.msk.bf16.gmra.mrb[28].mxu1 %vm4869_vm11, %v4825_v3  ;;  %v4777_v37 = vsel %vm4745_vm10, %v4680_v2, %v4001_v6  ;;  %v6157_v30 = vpop.f32.mrb[0].mxu0  ;;  %v10624_v36 = vld [vmem:[#allocation167_spill] sm:$0xff]  ;;  %v4294_v3 = vsel %vm4260_vm5, %v4197_v56, %v10626_v15  ;;  %v10628_v6 = vld [vmem:[#allocation148_spill] sm:$0xff] }
 0x316   : > { %v5197_v13 = vadd.f32 %v9723_v51, %v5196_v16  ;;  %v6206_v39 = vpop.f32.mrb[2].mxu1  ;;  %v5013_v5 = vadd.f32 %v6157_v30, %v9723_v51  ;;  %v5004_v31 = vpop.f32.mrb[1].mxu0  ;;  %3798 = vrot.lane.b32.xlu0 %v3505_v62, %s6755_s26  ;;  %6184 = vmatmul.mubr.msk.bf16.gmra.mrb[28].mxu0 %vm4869_vm11, %v4777_v37  ;;  %v4439_v28 = vsel %vm4357_vm6, %v4342_v33, %v10624_v36  ;;  %v10629_v37 = vld [vmem:[#allocation39_spill] sm:$0xff] }
 0x317   : > { %5437 = vst [vmem:[%s9747_s7 + $0x190] sm:$0xff] %v5205_v21  ;;  %v5208_v7 = vadd.f32 %v6206_v39, %v9723_v51  ;;  %v2851_v47 = vpop.permute.xlu1 %2850  ;;  %v5005_v32 = vadd.f32 %v9723_v51, %v5004_v31  ;;  %v6158_v25 = vpop.f32.mrb[2].mxu0  ;;  %v4150_v62 = vsel %vm4066_vm3, %v6654_v43, %v10625_v10  ;;  %v4391_v21 = vsel %vm4357_vm6, %v4294_v3, %v10628_v6  ;;  %v10631_v31 = vld [vmem:[#allocation69_spill] sm:$0xff]  ;;  %v10636_v6 = vld [vmem:[#allocation104_spill] sm:$0xff] }
 0x318   : > { %5435 = vst [vmem:[%s9747_s7 + $0x180] sm:$0xff] %v5197_v13  ;;  %v5199_v27 = vpop.f32.mrb[3].mxu1  ;;  %5389 = vst [vmem:[%s9747_s7 + $0x10] sm:$0xff] %v5013_v5  ;;  %v5016_v58 = vadd.f32 %v6158_v25, %v9723_v51  ;;  %v5007_v48 = vpop.f32.mrb[3].mxu0  ;;  %v4536_v23 = vsel %vm4454_vm7, %v4439_v28, %v2851_v47  ;;  %v4247_v2 = vsel %vm4163_vm4, %v4150_v62, %v10627_v54  ;;  %v10630_v13 = vld [vmem:[#allocation94_spill] sm:$0xff] }
 0x319   : > { %5438 = vst [vmem:[%s9747_s7 + $0x198] sm:$0xff] %v5208_v7  ;;  %v5200_v11 = vadd.f32 %v9723_v51, %v5199_v27  ;;  %v2803_v46 = vpop.permute.xlu0 %2802  ;;  %3848 = vrot.lane.b32.xlu1 %v3753_v12, %s6755_s26  ;;  %5387 = vst [vmem:[%s9747_s7] sm:$0xff] %v5005_v32  ;;  %v5008_v57 = vadd.f32 %v9723_v51, %v5007_v48  ;;  %v6655_v12 = vld [vmem:[%s6839_s30 + $0xa8] sm:$0xff]   ;;  %v4344_v39 = vsel %vm4260_vm5, %v4247_v2, %v10630_v13  ;;  %v10632_v47 = vld [vmem:[#allocation166_spill] sm:$0xff] }
 0x31a   : > { %5390 = vst [vmem:[%s9747_s7 + $0x18] sm:$0xff] %v5016_v58  ;;  %3800 = vrot.lane.b32.xlu0 %v3513_v55, %s6755_s26  ;;  %v4102_v30 = vsel %vm4066_vm3, %v6655_v12, %v10629_v37  ;;  %v4488_v22 = vsel %vm4454_vm7, %v4391_v21, %v2803_v46  ;;  %v4441_v32 = vsel %vm4357_vm6, %v4344_v39, %v10632_v47  ;;  %v10637_v12 = vld [vmem:[#allocation41_spill] sm:$0xff]  ;;  %v10638_v13 = vld [vmem:[#allocation42_spill] sm:$0xff]  ;;  %s6673_s26 = sshll.u32 %s6757_s23, 4  ;;  %s6674_s26 = int_to_ptr.vmem [resolvable:$false] %s6673_s26 }
 0x31b   : > { %5436 = vst [vmem:[%s9747_s7 + $0x188] sm:$0xff] %v5200_v11  ;;  %v2853_v59 = vpop.permute.xlu1 %2852  ;;  %5388 = vst [vmem:[%s9747_s7 + $0x8] sm:$0xff] %v5008_v57  ;;  %v4199_v7 = vsel %vm4163_vm4, %v4102_v30, %v10631_v31  ;;  %v6658_v30 = vld [vmem:[%s6839_s30 + $0xb4] sm:$0xff]   ;;  %v10640_v31 = vld [vmem:[#allocation132_spill] sm:$0xff]  ;;  %p6676_p1 = scmp.lt.s32.totalorder %s10198_s10, %s6674_s26 }
 0x31c   : > { %v4296_v34 = vsel %vm4260_vm5, %v4199_v7, %v10633_v8  ;;  %v4538_v58 = vsel %vm4454_vm7, %v4441_v32, %v2853_v59  ;;  %v4104_v39 = vsel %vm4066_vm3, %v6658_v30, %v10638_v13  ;;  %v10641_v32 = vld [vmem:[#allocation71_spill] sm:$0xff] }
 0x31d   : > { %v2805_v14 = vpop.permute.xlu0 %2804  ;;  %4062 = vrot.lane.b32.xlu1 %v3967_v40, %s6756_s27  ;;  %v10634_v40 = vld [vmem:[#allocation147_spill] sm:$0xff] }
 0x31e   : > { %4014 = vrot.lane.b32.xlu0 %v3907_v53, %s6756_s27  ;;  %v4393_v0 = vsel %vm4357_vm6, %v4296_v34, %v10634_v40  ;;  %v10643_v8 = vld [vmem:[#allocation103_spill] sm:$0xff]  ;;  %v10646_v40 = vld [vmem:[#allocation122_spill] sm:$0xff] }
 0x31f   : > { %v3187_v38 = vpop.permute.xlu1 %3186 }
 0x320   : > { %v4633_v16 = vsel %vm4551_vm8, %v4536_v23, %v3187_v38  ;;  %v6656_v23 = vld [vmem:[%s6839_s30 + $0x1a4] sm:$0xff]  }
 0x321   : > { %v3139_v60 = vpop.permute.xlu0 %3138  ;;  %4064 = vrot.lane.b32.xlu1 %v3969_v44, %s6756_s27 }
 0x322   : > { %4016 = vrot.lane.b32.xlu0 %v3909_v63, %s6756_s27  ;;  %v4585_v25 = vsel %vm4551_vm8, %v4488_v22, %v3139_v60  ;;  %v4490_v63 = vsel %vm4454_vm7, %v4393_v0, %v2805_v14  ;;  %v6659_v22 = vld [vmem:[%s6839_s30 + $0x1ac] sm:$0xff]   ;;  %s6675_s27 = scalar_lea.vmem %s6674_s26, 24576 }
 0x323   : > { %v3189_v50 = vpop.permute.xlu1 %3188  ;;  %p6677_p2 = scmp.lt.s32.totalorder %s6675_s27, %s6669_s21 }
 0x324   : > { %v4635_v53 = vsel %vm4551_vm8, %v4538_v58, %v3189_v50  ;;  %v10644_v58 = vld [vmem:[#allocation169_spill] sm:$0xff] }
 0x325   : > { %v3141_v52 = vpop.permute.xlu0 %3140  ;;  %p6678_p3 = por %p6677_p2, %p6676_p1 }
 0x326   : > { %v4587_v19 = vsel %vm4551_vm8, %v4490_v63, %v3141_v52 }
 0x327   : > { %v3835_v49 = vpop.permute.xlu1 %3834  ;;  %p6679_p5 = pnand %p6678_p3, %p6672_p0 }
 0x328   : > { %v4730_v42 = vsel %vm4648_vm9, %v4633_v16, %v3835_v49  ;;  %v6657_v16 = vld [vmem:[%s6839_s30 + $0xbc] sm:$0xff]  }
 0x329   : > { %v3787_v29 = vpop.permute.xlu0 %3786  ;;  %v4106_v37 = vsel %vm4066_vm3, %v6657_v16, %v10637_v12 }
 0x32a   : > { %v4682_v48 = vsel %vm4648_vm9, %v4585_v25, %v3787_v29  ;;  %v4203_v25 = vsel %vm4163_vm4, %v4106_v37, %v10641_v32 }
 0x32b   : > { %v3837_v41 = vpop.permute.xlu1 %3836 }
 0x32c   : > { %v4732_v60 = vsel %vm4648_vm9, %v4635_v53, %v3837_v41 }
 0x32d   : > { %v3789_v1 = vpop.permute.xlu0 %3788 }
 0x32e   : > { %v4684_v61 = vsel %vm4648_vm9, %v4587_v19, %v3789_v1  ;;  %v10635_v1 = vld [vmem:[#allocation48_spill] sm:$0xff] }
 0x32f   : > { %v4051_v5 = vpop.permute.xlu1 %4050  ;;  %v4152_v54 = vsel %vm4066_vm3, %v6656_v23, %v10635_v1 }
 0x330   : > { %v4827_v27 = vsel %vm4745_vm10, %v4730_v42, %v4051_v5  ;;  %v6209_v55 = vpop.f32.mrb[4].mxu1  ;;  %v4249_v21 = vsel %vm4163_vm4, %v4152_v54, %v10636_v6  ;;  %v10639_v42 = vld [vmem:[#allocation47_spill] sm:$0xff]  ;;  %v10650_v6 = vld [vmem:[#allocation149_spill] sm:$0xff] }
 0x331   : > { %v4003_v11 = vpop.permute.xlu0 %4002  ;;  %v5221_v46 = vadd.f32 %v6209_v55, %v9723_v51  ;;  %v5212_v57 = vpop.f32.mrb[5].mxu1  ;;  %6235 = vmatprep.mubr.msk.bf16.mxu1 %vm4869_vm11, %v4827_v27  ;;  %v4154_v5 = vsel %vm4066_vm3, %v6659_v22, %v10639_v42  ;;  %v4346_v7 = vsel %vm4260_vm5, %v4249_v21, %v10640_v31  ;;  %v10642_v27 = vld [vmem:[#allocation72_spill] sm:$0xff] }
 0x332   : > { %v4779_v9 = vsel %vm4745_vm10, %v4682_v48, %v4003_v11  ;;  %v6161_v44 = vpop.f32.mrb[4].mxu0  ;;  %v5213_v38 = vadd.f32 %v9723_v51, %v5212_v57  ;;  %v6210_v59 = vpop.f32.mrb[6].mxu1  ;;  %v4201_v55 = vsel %vm4163_vm4, %v4104_v39, %v10642_v27  ;;  %v4251_v34 = vsel %vm4163_vm4, %v4154_v5, %v10643_v8  ;;  %v6660_v8 = vld [vmem:[%s6839_s30 + $0x1b8] sm:$0xff]  }
 0x333   : > { %v5029_v49 = vadd.f32 %v6161_v44, %v9723_v51  ;;  %5441 = vst [vmem:[%s9747_s7 + $0x1b0] sm:$0xff] %v5221_v46  ;;  %v5020_v45 = vpop.f32.mrb[5].mxu0  ;;  %6187 = vmatprep.mubr.msk.bf16.mxu0 %vm4869_vm11, %v4779_v9  ;;  %v5224_v50 = vadd.f32 %v6210_v59, %v9723_v51  ;;  %v4053_v4 = vpop.permute.xlu1 %4052  ;;  %v4443_v48 = vsel %vm4357_vm6, %v4346_v7, %v10644_v58  ;;  %v10645_v46 = vld [vmem:[#allocation121_spill] sm:$0xff]  ;;  %v10647_v59 = vld [vmem:[#allocation98_spill] sm:$0xff] }
 0x334   : > { %v5021_v29 = vadd.f32 %v9723_v51, %v5020_v45  ;;  %5439 = vst [vmem:[%s9747_s7 + $0x1a0] sm:$0xff] %v5213_v38  ;;  %v6162_v14 = vpop.f32.mrb[6].mxu0  ;;  %v4829_v18 = vsel %vm4745_vm10, %v4732_v60, %v4053_v4  ;;  %v5215_v20 = vpop.f32.mrb[7].mxu1  ;;  %v4300_v57 = vsel %vm4260_vm5, %v4203_v25, %v10645_v46  ;;  %v4298_v0 = vsel %vm4260_vm5, %v4201_v55, %v10646_v40  ;;  %v10648_v60 = vld [vmem:[#allocation150_spill] sm:$0xff] }
 0x335   : > { %5393 = vst [vmem:[%s9747_s7 + $0x30] sm:$0xff] %v5029_v49  ;;  %v5032_v26 = vadd.f32 %v6162_v14, %v9723_v51  ;;  %5442 = vst [vmem:[%s9747_s7 + $0x1b8] sm:$0xff] %v5224_v50  ;;  %v5023_v17 = vpop.f32.mrb[7].mxu0  ;;  %v5216_v35 = vadd.f32 %v9723_v51, %v5215_v20  ;;  %v4005_v52 = vpop.permute.xlu0 %4004  ;;  %6236 = vmatmul.mubr.msk.bf16.gmra.mrb[32].mxu1 %vm4869_vm11, %v4829_v18  ;;  %v4348_v63 = vsel %vm4260_vm5, %v4251_v34, %v10647_v59  ;;  %v10651_v34 = vld [vmem:[#allocation50_spill] sm:$0xff] }
 0x336   : > { %5391 = vst [vmem:[%s9747_s7 + $0x20] sm:$0xff] %v5021_v29  ;;  %v5024_v33 = vadd.f32 %v9723_v51, %v5023_v17  ;;  %v4781_v41 = vsel %vm4745_vm10, %v4684_v61, %v4005_v52  ;;  %v4395_v49 = vsel %vm4357_vm6, %v4298_v0, %v10648_v60  ;;  %v10649_v17 = vld [vmem:[#allocation168_spill] sm:$0xff]  ;;  %v4397_v21 = vsel %vm4357_vm6, %v4300_v57, %v10650_v6  ;;  %v10652_v57 = vld [vmem:[#allocation106_spill] sm:$0xff] }
 0x337   : > { %5394 = vst [vmem:[%s9747_s7 + $0x38] sm:$0xff] %v5032_v26  ;;  %5440 = vst [vmem:[%s9747_s7 + $0x1a8] sm:$0xff] %v5216_v35  ;;  %6188 = vmatmul.mubr.msk.bf16.gmra.mrb[32].mxu0 %vm4869_vm11, %v4781_v41  ;;  %v2855_v24 = vpop.permute.xlu1 %2854  ;;  %v4445_v35 = vsel %vm4357_vm6, %v4348_v63, %v10649_v17  ;;  %v4156_v58 = vsel %vm4066_vm3, %v6660_v8, %v10651_v34  ;;  %v10654_v63 = vld [vmem:[#allocation134_spill] sm:$0xff]  ;;  %v10665_v34 = vld [vmem:[#allocation123_spill] sm:$0xff] }
 0x338   : > { %5392 = vst [vmem:[%s9747_s7 + $0x28] sm:$0xff] %v5024_v33  ;;  %v4540_v53 = vsel %vm4454_vm7, %v4443_v48, %v2855_v24  ;;  %v4253_v40 = vsel %vm4163_vm4, %v4156_v58, %v10652_v57 }
 0x339   : > { %v2807_v56 = vpop.permute.xlu0 %2806  ;;  %v4350_v60 = vsel %vm4260_vm5, %v4253_v40, %v10654_v63 }
 0x33a   : > { %v4492_v29 = vsel %vm4454_vm7, %v4395_v49, %v2807_v56 }
 0x33b   : > { %v2857_v36 = vpop.permute.xlu1 %2856 }
 0x33d   : > { %v9851_v28 = vpop.permute.xlu0 %2808 }
 0x33e   : > { %v4494_v12 = vsel %vm4454_vm7, %v4397_v21, %v9851_v28 }
 0x33f   : > { %v3191_v43 = vpop.permute.xlu1 %3190 }
 0x340   : > { %v4637_v45 = vsel %vm4551_vm8, %v4540_v53, %v3191_v43  ;;  %v4542_v43 = vsel %vm4454_vm7, %v4445_v35, %v2857_v36 }
 0x341   : > { %v3143_v10 = vpop.permute.xlu0 %3142 }
 0x342   : > { %v4589_v52 = vsel %vm4551_vm8, %v4492_v29, %v3143_v10  ;;  %v10655_v29 = vld [vmem:[#allocation49_spill] sm:$0xff] }
 0x343   : > { %v3193_v62 = vpop.permute.xlu1 %3192 }
 0x344   : > { %v4639_v36 = vsel %vm4551_vm8, %v4542_v43, %v3193_v62 }
 0x345   : > { %v9853_v15 = vpop.permute.xlu0 %3144 }
 0x346   : > { %v4591_v13 = vsel %vm4551_vm8, %v4494_v12, %v9853_v15 }
 0x347   : > { %v3839_v3 = vpop.permute.xlu1 %3838 }
 0x348   : > { %v4734_v14 = vsel %vm4648_vm9, %v4637_v45, %v3839_v3 }
 0x349   : > { %v3791_v2 = vpop.permute.xlu0 %3790 }
 0x34a   : > { %v4686_v3 = vsel %vm4648_vm9, %v4589_v52, %v3791_v2 }
 0x34b   : > { %v3841_v47 = vpop.permute.xlu1 %3840 }
 0x34c   : > { %v6213_v11 = vpop.f32.mrb[8].mxu1  ;;  %v4736_v37 = vsel %vm4648_vm9, %v4639_v36, %v3841_v47 }
 0x34d   : > { %v3793_v9 = vpop.permute.xlu0 %3792  ;;  %v5237_v44 = vadd.f32 %v6213_v11, %v9723_v51  ;;  %v5228_v38 = vpop.f32.mrb[9].mxu1 }
 0x34e   : > { %v6165_v50 = vpop.f32.mrb[8].mxu0  ;;  %v5229_v4 = vadd.f32 %v9723_v51, %v5228_v38  ;;  %v6214_v19 = vpop.f32.mrb[10].mxu1  ;;  %v4688_v39 = vsel %vm4648_vm9, %v4591_v13, %v3793_v9  ;;  %v10653_v38 = vld [vmem:[#allocation6_spill] sm:$0xff] }
 0x34f   : > { %v5045_v18 = vadd.f32 %v6165_v50, %v9723_v51  ;;  %5445 = vst [vmem:[%s9747_s7 + $0x1d0] sm:$0xff] %v5237_v44  ;;  %v5036_v20 = vpop.f32.mrb[9].mxu0  ;;  %v5240_v61 = vadd.f32 %v6214_v19, %v9723_v51  ;;  %v4055_v26 = vpop.permute.xlu1 %4054  ;;  %v6661_v44 = vld [vmem:[%s6839_s30 + $0xc8] sm:$0xff]   ;;  %v6662_v19 = vld [vmem:[%s6839_s30 + $0x1c0] sm:$0xff]  }
 0x350   : > { %v5037_v33 = vadd.f32 %v9723_v51, %v5036_v20  ;;  %5443 = vst [vmem:[%s9747_s7 + $0x1c0] sm:$0xff] %v5229_v4  ;;  %v6166_v41 = vpop.f32.mrb[10].mxu0  ;;  %v4831_v24 = vsel %vm4745_vm10, %v4734_v14, %v4055_v26  ;;  %v5231_v56 = vpop.f32.mrb[11].mxu1  ;;  %v4108_v59 = vsel %vm4066_vm3, %v6661_v44, %v10653_v38  ;;  %v4158_v14 = vsel %vm4066_vm3, %v6662_v19, %v10655_v29  ;;  %v6664_v29 = vld [vmem:[%s6839_s30 + $0x1cc] sm:$0xff]  }
 0x351   : > { %5397 = vst [vmem:[%s9747_s7 + $0x50] sm:$0xff] %v5045_v18  ;;  %v5048_v23 = vadd.f32 %v6166_v41, %v9723_v51  ;;  %5446 = vst [vmem:[%s9747_s7 + $0x1d8] sm:$0xff] %v5240_v61  ;;  %v5039_v1 = vpop.f32.mrb[11].mxu0  ;;  %v5232_v10 = vadd.f32 %v9723_v51, %v5231_v56  ;;  %v4007_v54 = vpop.permute.xlu0 %4006  ;;  %6239 = vmatprep.mubr.msk.bf16.mxu1 %vm4869_vm11, %v4831_v24  ;;  %v10656_v18 = vld [vmem:[#allocation74_spill] sm:$0xff]  ;;  %v10657_v61 = vld [vmem:[#allocation171_spill] sm:$0xff] }
 0x352   : > { %5395 = vst [vmem:[%s9747_s7 + $0x40] sm:$0xff] %v5037_v33  ;;  %v5040_v2 = vadd.f32 %v9723_v51, %v5039_v1  ;;  %v4783_v16 = vsel %vm4745_vm10, %v4686_v3, %v4007_v54  ;;  %v4205_v20 = vsel %vm4163_vm4, %v4108_v59, %v10656_v18  ;;  %v4447_v26 = vsel %vm4357_vm6, %v4350_v60, %v10657_v61  ;;  %v10658_v33 = vld [vmem:[#allocation124_spill] sm:$0xff]  ;;  %v10659_v1 = vld [vmem:[#allocation105_spill] sm:$0xff] }
 0x353   : > { %5398 = vst [vmem:[%s9747_s7 + $0x58] sm:$0xff] %v5048_v23  ;;  %5444 = vst [vmem:[%s9747_s7 + $0x1c8] sm:$0xff] %v5232_v10  ;;  %6191 = vmatprep.mubr.msk.bf16.mxu0 %vm4869_vm11, %v4783_v16  ;;  %v4057_v30 = vpop.permute.xlu1 %4056  ;;  %v4302_v41 = vsel %vm4260_vm5, %v4205_v20, %v10658_v33  ;;  %v4255_v10 = vsel %vm4163_vm4, %v4158_v14, %v10659_v1  ;;  %v10660_v54 = vld [vmem:[#allocation152_spill] sm:$0xff]  ;;  %v10661_v16 = vld [vmem:[#allocation5_spill] sm:$0xff] }
 0x354   : > { %5396 = vst [vmem:[%s9747_s7 + $0x48] sm:$0xff] %v5040_v2  ;;  %v4833_v62 = vsel %vm4745_vm10, %v4736_v37, %v4057_v30  ;;  %v4399_v6 = vsel %vm4357_vm6, %v4302_v41, %v10660_v54  ;;  %v6663_v2 = vld [vmem:[%s6839_s30 + $0xd0] sm:$0xff]   ;;  %v10667_v14 = vld [vmem:[#allocation52_spill] sm:$0xff] }
 0x355   : > { %v4009_v22 = vpop.permute.xlu0 %4008  ;;  %6240 = vmatmul.mubr.msk.bf16.gmra.mrb[36].mxu1 %vm4869_vm11, %v4833_v62  ;;  %v4110_v12 = vsel %vm4066_vm3, %v6663_v2, %v10661_v16  ;;  %v10662_v37 = vld [vmem:[#allocation133_spill] sm:$0xff]  ;;  %v4160_v18 = vsel %vm4066_vm3, %v6664_v29, %v10667_v14  ;;  %v10672_v16 = vld [vmem:[#allocation76_spill] sm:$0xff] }
 0x356   : > { %v4785_v28 = vsel %vm4745_vm10, %v4688_v39, %v4009_v22  ;;  %v4352_v30 = vsel %vm4260_vm5, %v4255_v10, %v10662_v37  ;;  %v10663_v22 = vld [vmem:[#allocation73_spill] sm:$0xff] }
 0x357   : > { %6192 = vmatmul.mubr.msk.bf16.gmra.mrb[36].mxu0 %vm4869_vm11, %v4785_v28  ;;  %v2859_v42 = vpop.permute.xlu1 %2858  ;;  %v4207_v28 = vsel %vm4163_vm4, %v4110_v12, %v10663_v22  ;;  %v10673_v37 = vld [vmem:[#allocation173_spill] sm:$0xff]  ;;  %v10674_v22 = vld [vmem:[#allocation126_spill] sm:$0xff] }
 0x358   : > { %v4544_v24 = vsel %vm4454_vm7, %v4447_v26, %v2859_v42  ;;  %v10664_v42 = vld [vmem:[#allocation170_spill] sm:$0xff]  ;;  %v4304_v58 = vsel %vm4260_vm5, %v4207_v28, %v10665_v34  ;;  %v10681_v14 = vld [vmem:[#allocation125_spill] sm:$0xff] }
 0x359   : > { %v2811_v5 = vpop.permute.xlu0 %2810 }
 0x35a   : > { %v4496_v13 = vsel %vm4454_vm7, %v4399_v6, %v2811_v5 }
 0x35b   : > { %v2861_v31 = vpop.permute.xlu1 %2860 }
 0x35d   : > { %v9929_v7 = vpop.permute.xlu0 %2812 }
 0x35f   : > { %v3195_v15 = vpop.permute.xlu1 %3194 }
 0x360   : > { %v4641_v21 = vsel %vm4551_vm8, %v4544_v24, %v3195_v15  ;;  %v4449_v15 = vsel %vm4357_vm6, %v4352_v30, %v10664_v42  ;;  %v6665_v24 = vld [vmem:[%s6839_s30 + $0xdc] sm:$0xff]  }
 0x361   : > { %v3147_v47 = vpop.permute.xlu0 %3146  ;;  %v4546_v5 = vsel %vm4454_vm7, %v4449_v15, %v2861_v31 }
 0x363   : > { %v3197_v32 = vpop.permute.xlu1 %3196 }
 0x364   : > { %v4643_v40 = vsel %vm4551_vm8, %v4546_v5, %v3197_v32 }
 0x365   : > { %v9931_v25 = vpop.permute.xlu0 %3148 }
 0x367   : > { %v3843_v27 = vpop.permute.xlu1 %3842 }
 0x368   : > { %v6217_v55 = vpop.f32.mrb[12].mxu1  ;;  %v4738_v62 = vsel %vm4648_vm9, %v4641_v21, %v3843_v27  ;;  %v6666_v21 = vld [vmem:[%s6839_s30 + $0x1d4] sm:$0xff]  }
 0x369   : > { %v3795_v48 = vpop.permute.xlu0 %3794  ;;  %v5253_v11 = vadd.f32 %v6217_v55, %v9723_v51  ;;  %v5244_v46 = vpop.f32.mrb[13].mxu1  ;;  %v4593_v55 = vsel %vm4551_vm8, %v4496_v13, %v3147_v47 }
 0x36a   : > { %v6169_v0 = vpop.f32.mrb[12].mxu0  ;;  %v5245_v53 = vadd.f32 %v9723_v51, %v5244_v46  ;;  %v6218_v9 = vpop.f32.mrb[14].mxu1  ;;  %v4690_v27 = vsel %vm4648_vm9, %v4593_v55, %v3795_v48  ;;  %v10666_v46 = vld [vmem:[#allocation151_spill] sm:$0xff] }
 0x36b   : > { %v5061_v49 = vadd.f32 %v6169_v0, %v9723_v51  ;;  %5449 = vst [vmem:[%s9747_s7 + $0x1f0] sm:$0xff] %v5253_v11  ;;  %v5052_v45 = vpop.f32.mrb[13].mxu0  ;;  %v5256_v50 = vadd.f32 %v6218_v9, %v9723_v51  ;;  %v3845_v4 = vpop.permute.xlu1 %3844  ;;  %v4401_v57 = vsel %vm4357_vm6, %v4304_v58, %v10666_v46  ;;  %v10675_v58 = vld [vmem:[#allocation107_spill] sm:$0xff] }
 0x36c   : > { %v5053_v17 = vadd.f32 %v9723_v51, %v5052_v45  ;;  %5447 = vst [vmem:[%s9747_s7 + $0x1e0] sm:$0xff] %v5245_v53  ;;  %v6170_v35 = vpop.f32.mrb[14].mxu0  ;;  %v5247_v52 = vpop.f32.mrb[15].mxu1  ;;  %v4498_v0 = vsel %vm4454_vm7, %v4401_v57, %v9929_v7  ;;  %v4740_v53 = vsel %vm4648_vm9, %v4643_v40, %v3845_v4  ;;  %v6667_v40 = vld [vmem:[%s6839_s30 + $0xe4] sm:$0xff]   ;;  %s6261_s30 = smul.u32 12288, %s6739_s15 }
 0x36d   : > { %5401 = vst [vmem:[%s9747_s7 + $0x70] sm:$0xff] %v5061_v49  ;;  %v5064_v56 = vadd.f32 %v6170_v35, %v9723_v51  ;;  %5450 = vst [vmem:[%s9747_s7 + $0x1f8] sm:$0xff] %v5256_v50  ;;  %v5055_v43 = vpop.f32.mrb[15].mxu0  ;;  %v5248_v3 = vadd.f32 %v9723_v51, %v5247_v52  ;;  %v3797_v23 = vpop.permute.xlu0 %3796  ;;  %v4595_v48 = vsel %vm4551_vm8, %v4498_v0, %v9931_v25 }
 0x36e   : > { %5399 = vst [vmem:[%s9747_s7 + $0x60] sm:$0xff] %v5053_v17  ;;  %v5056_v36 = vadd.f32 %v9723_v51, %v5055_v43  ;;  %v4692_v44 = vsel %vm4648_vm9, %v4595_v48, %v3797_v23  ;;  %v10668_v17 = vld [vmem:[#allocation108_spill] sm:$0xff]  ;;  %s10194_s18 = scalar_lea.hbm %s10254_s3, %s6261_s30 }
 0x36f   : > { %5402 = vst [vmem:[%s9747_s7 + $0x78] sm:$0xff] %v5064_v56  ;;  %5448 = vst [vmem:[%s9747_s7 + $0x1e8] sm:$0xff] %v5248_v3  ;;  %v4059_v39 = vpop.permute.xlu1 %4058  ;;  %v4257_v35 = vsel %vm4163_vm4, %v4160_v18, %v10668_v17  ;;  %v10669_v56 = vld [vmem:[#allocation8_spill] sm:$0xff] }
 0x370   : > { %5400 = vst [vmem:[%s9747_s7 + $0x68] sm:$0xff] %v5056_v36  ;;  %v4835_v8 = vsel %vm4745_vm10, %v4738_v62, %v4059_v39  ;;  %v4112_v43 = vsel %vm4066_vm3, %v6665_v24, %v10669_v56  ;;  %v10670_v3 = vld [vmem:[#allocation136_spill] sm:$0xff]  ;;  %v10671_v36 = vld [vmem:[#allocation51_spill] sm:$0xff] }
 0x371   : > { %v4011_v11 = vpop.permute.xlu0 %4010  ;;  %6243 = vmatprep.mubr.msk.bf16.mxu1 %vm4869_vm11, %v4835_v8  ;;  %v4354_v23 = vsel %vm4260_vm5, %v4257_v35, %v10670_v3  ;;  %v4162_v2 = vsel %vm4066_vm3, %v6666_v21, %v10671_v36  ;;  %v4209_v12 = vsel %vm4163_vm4, %v4112_v43, %v10672_v16 }
 0x372   : > { %v4787_v47 = vsel %vm4745_vm10, %v4690_v27, %v4011_v11  ;;  %v4451_v30 = vsel %vm4357_vm6, %v4354_v23, %v10673_v37  ;;  %v4306_v28 = vsel %vm4260_vm5, %v4209_v12, %v10674_v22  ;;  %v4259_v5 = vsel %vm4163_vm4, %v4162_v2, %v10675_v58  ;;  %v10676_v27 = vld [vmem:[#allocation154_spill] sm:$0xff] }
 0x373   : > { %6195 = vmatprep.mubr.msk.bf16.mxu0 %vm4869_vm11, %v4787_v47  ;;  %v4061_v31 = vpop.permute.xlu1 %4060  ;;  %v4403_v11 = vsel %vm4357_vm6, %v4306_v28, %v10676_v27  ;;  %v10677_v47 = vld [vmem:[#allocation7_spill] sm:$0xff] }
 0x374   : > { %v4837_v9 = vsel %vm4745_vm10, %v4740_v53, %v4061_v31  ;;  %v4114_v0 = vsel %vm4066_vm3, %v6667_v40, %v10677_v47  ;;  %v10678_v53 = vld [vmem:[#allocation135_spill] sm:$0xff] }
 0x375   : > { %v4013_v38 = vpop.permute.xlu0 %4012  ;;  %6244 = vmatmul.mubr.msk.bf16.gmra.mrb[40].mxu1 %vm4869_vm11, %v4837_v9  ;;  %v4356_v31 = vsel %vm4260_vm5, %v4259_v5, %v10678_v53 }
 0x376   : > { %v4789_v32 = vsel %vm4745_vm10, %v4692_v44, %v4013_v38  ;;  %v10679_v38 = vld [vmem:[#allocation75_spill] sm:$0xff] }
 0x377   : > { %6196 = vmatmul.mubr.msk.bf16.gmra.mrb[40].mxu0 %vm4869_vm11, %v4789_v32  ;;  %v2863_v7 = vpop.permute.xlu1 %2862  ;;  %v4211_v32 = vsel %vm4163_vm4, %v4114_v0, %v10679_v38 }
 0x378   : > { %v4548_v42 = vsel %vm4454_vm7, %v4451_v30, %v2863_v7  ;;  %v10680_v7 = vld [vmem:[#allocation172_spill] sm:$0xff]  ;;  %v4308_v18 = vsel %vm4260_vm5, %v4211_v32, %v10681_v14 }
 0x379   : > { %v2815_v59 = vpop.permute.xlu0 %2814 }
 0x37a   : > { %v4500_v48 = vsel %vm4454_vm7, %v4403_v11, %v2815_v59 }
 0x37b   : > { %v2865_v63 = vpop.permute.xlu1 %2864 }
 0x37d   : > { %v10007_v60 = vpop.permute.xlu0 %2816 }
 0x37f   : > { %v3199_v49 = vpop.permute.xlu1 %3198 }
 0x380   : > { %v4645_v46 = vsel %vm4551_vm8, %v4548_v42, %v3199_v49  ;;  %v4453_v49 = vsel %vm4357_vm6, %v4356_v31, %v10680_v7 }
 0x381   : > { %v3151_v25 = vpop.permute.xlu0 %3150  ;;  %v4550_v59 = vsel %vm4454_vm7, %v4453_v49, %v2865_v63 }
 0x383   : > { %v3201_v45 = vpop.permute.xlu1 %3200 }
 0x384   : > { %v4647_v35 = vsel %vm4551_vm8, %v4550_v59, %v3201_v45 }
 0x385   : > { %v10009_v50 = vpop.permute.xlu0 %3152 }
 0x387   : > { %v3847_v4 = vpop.permute.xlu1 %3846 }
 0x388   : > { %v6221_v19 = vpop.f32.mrb[16].mxu1  ;;  %v4742_v9 = vsel %vm4648_vm9, %v4645_v46, %v3847_v4 }
 0x389   : > { %v3799_v20 = vpop.permute.xlu0 %3798  ;;  %v5269_v61 = vadd.f32 %v6221_v19, %v9723_v51  ;;  %v5260_v26 = vpop.f32.mrb[17].mxu1  ;;  %v4597_v19 = vsel %vm4551_vm8, %v4500_v48, %v3151_v25 }
 0x38a   : > { %v6173_v52 = vpop.f32.mrb[16].mxu0  ;;  %v5261_v33 = vadd.f32 %v9723_v51, %v5260_v26  ;;  %v6222_v41 = vpop.f32.mrb[18].mxu1  ;;  %v4694_v4 = vsel %vm4648_vm9, %v4597_v19, %v3799_v20  ;;  %v10682_v26 = vld [vmem:[#allocation153_spill] sm:$0xff] }
 0x38b   : > { %v5077_v1 = vadd.f32 %v6173_v52, %v9723_v51  ;;  %5453 = vst [vmem:[%s9747_s7 + $0x210] sm:$0xff] %v5269_v61  ;;  %v5068_v10 = vpop.f32.mrb[17].mxu0  ;;  %v5272_v54 = vadd.f32 %v6222_v41, %v9723_v51  ;;  %v3849_v6 = vpop.permute.xlu1 %3848  ;;  %v4405_v17 = vsel %vm4357_vm6, %v4308_v18, %v10682_v26 }
 0x38c   : > { %v5069_v13 = vadd.f32 %v9723_v51, %v5068_v10  ;;  %5451 = vst [vmem:[%s9747_s7 + $0x200] sm:$0xff] %v5261_v33  ;;  %v6174_v62 = vpop.f32.mrb[18].mxu0  ;;  %v5263_v39 = vpop.f32.mrb[19].mxu1  ;;  %v4502_v52 = vsel %vm4454_vm7, %v4405_v17, %v10007_v60  ;;  %v4744_v33 = vsel %vm4648_vm9, %v4647_v35, %v3849_v6 }
 0x38d   : > { %5405 = vst [vmem:[%s9747_s7 + $0x90] sm:$0xff] %v5077_v1  ;;  %v5080_v15 = vadd.f32 %v6174_v62, %v9723_v51  ;;  %5454 = vst [vmem:[%s9747_s7 + $0x218] sm:$0xff] %v5272_v54  ;;  %v5071_v55 = vpop.f32.mrb[19].mxu0  ;;  %v5264_v8 = vadd.f32 %v9723_v51, %v5263_v39  ;;  %v3801_v34 = vpop.permute.xlu0 %3800  ;;  %v4599_v20 = vsel %vm4551_vm8, %v4502_v52, %v10009_v50 }
 0x38e   : > { %5403 = vst [vmem:[%s9747_s7 + $0x80] sm:$0xff] %v5069_v13  ;;  %v5072_v57 = vadd.f32 %v9723_v51, %v5071_v55  ;;  %v4696_v24 = vsel %vm4648_vm9, %v4599_v20, %v3801_v34 }
 0x38f   : > { %5406 = vst [vmem:[%s9747_s7 + $0x98] sm:$0xff] %v5080_v15  ;;  %5452 = vst [vmem:[%s9747_s7 + $0x208] sm:$0xff] %v5264_v8  ;;  %v4063_v44 = vpop.permute.xlu1 %4062 }
 0x390   : > { %5404 = vst [vmem:[%s9747_s7 + $0x88] sm:$0xff] %v5072_v57  ;;  %v4839_v29 = vsel %vm4745_vm10, %v4742_v9, %v4063_v44 }
 0x391   : > { %v4015_v61 = vpop.permute.xlu0 %4014  ;;  %6247 = vmatprep.mubr.msk.bf16.mxu1 %vm4869_vm11, %v4839_v29 }
 0x392   : > { %v4791_v25 = vsel %vm4745_vm10, %v4694_v4, %v4015_v61 }
 0x393   : > { %6199 = vmatprep.mubr.msk.bf16.mxu0 %vm4869_vm11, %v4791_v25  ;;  %v4065_v63 = vpop.permute.xlu1 %4064 }
 0x394   : > { %v4841_v41 = vsel %vm4745_vm10, %v4744_v33, %v4065_v63 }
 0x395   : > { %v4017_v56 = vpop.permute.xlu0 %4016  ;;  %6248 = vmatmul.mubr.msk.bf16.gmra.mrb[44].mxu1 %vm4869_vm11, %v4841_v41 }
 0x396   : > { %v4793_v45 = vsel %vm4745_vm10, %v4696_v24, %v4017_v56 }
 0x397   : > { %6200 = vmatmul.mubr.msk.bf16.gmra.mrb[44].mxu0 %vm4869_vm11, %v4793_v45 }
 0x3a8   : > { %v6225_v60 = vpop.f32.mrb[20].mxu1 }
 0x3a9   : > { %v5285_v43 = vadd.f32 %v6225_v60, %v9723_v51  ;;  %v5276_v3 = vpop.f32.mrb[21].mxu1  ;;  %v6177_v23 = vpop.f32.mrb[20].mxu0 }
 0x3aa   : > { %v5277_v50 = vadd.f32 %v9723_v51, %v5276_v3  ;;  %v6226_v1 = vpop.f32.mrb[22].mxu1  ;;  %v5093_v10 = vadd.f32 %v6177_v23, %v9723_v51  ;;  %v5084_v54 = vpop.f32.mrb[21].mxu0 }
 0x3ab   : > { %5457 = vst [vmem:[%s9747_s7 + $0x230] sm:$0xff] %v5285_v43  ;;  %v5288_v6 = vadd.f32 %v6226_v1, %v9723_v51  ;;  %v5279_v21 = vpop.f32.mrb[23].mxu1  ;;  %v5085_v36 = vadd.f32 %v9723_v51, %v5084_v54  ;;  %v6178_v2 = vpop.f32.mrb[22].mxu0 }
 0x3ac   : > { %5455 = vst [vmem:[%s9747_s7 + $0x220] sm:$0xff] %v5277_v50  ;;  %v5280_v16 = vadd.f32 %v9723_v51, %v5279_v21  ;;  %5409 = vst [vmem:[%s9747_s7 + $0xb0] sm:$0xff] %v5093_v10  ;;  %v5096_v12 = vadd.f32 %v6178_v2, %v9723_v51  ;;  %v5087_v37 = vpop.f32.mrb[23].mxu0 }
 0x3ad   : > { %5458 = vst [vmem:[%s9747_s7 + $0x238] sm:$0xff] %v5288_v6  ;;  %5407 = vst [vmem:[%s9747_s7 + $0xa0] sm:$0xff] %v5085_v36  ;;  %v5088_v30 = vadd.f32 %v9723_v51, %v5087_v37 }
 0x3ae   : > { %5456 = vst [vmem:[%s9747_s7 + $0x228] sm:$0xff] %v5280_v16  ;;  %5410 = vst [vmem:[%s9747_s7 + $0xb8] sm:$0xff] %v5096_v12 }
 0x3af   : > { %5408 = vst [vmem:[%s9747_s7 + $0xa8] sm:$0xff] %v5088_v30 }
 0x3c8   : > { %v6229_v13 = vpop.f32.mrb[24].mxu1 }
 0x3c9   : > { %v5301_v62 = vadd.f32 %v6229_v13, %v9723_v51  ;;  %v5292_v39 = vpop.f32.mrb[25].mxu1  ;;  %v6181_v22 = vpop.f32.mrb[24].mxu0 }
 0x3ca   : > { %v5293_v28 = vadd.f32 %v9723_v51, %v5292_v39  ;;  %v6230_v42 = vpop.f32.mrb[26].mxu1  ;;  %v5109_v15 = vadd.f32 %v6181_v22, %v9723_v51  ;;  %v5100_v55 = vpop.f32.mrb[25].mxu0 }
 0x3cb   : > { %5461 = vst [vmem:[%s9747_s7 + $0x250] sm:$0xff] %v5301_v62  ;;  %v5304_v8 = vadd.f32 %v6230_v42, %v9723_v51  ;;  %v5295_v34 = vpop.f32.mrb[27].mxu1  ;;  %v5101_v58 = vadd.f32 %v9723_v51, %v5100_v55  ;;  %v6182_v5 = vpop.f32.mrb[26].mxu0 }
 0x3cc   : > { %5459 = vst [vmem:[%s9747_s7 + $0x240] sm:$0xff] %v5293_v28  ;;  %v5296_v27 = vadd.f32 %v9723_v51, %v5295_v34  ;;  %5413 = vst [vmem:[%s9747_s7 + $0xd0] sm:$0xff] %v5109_v15  ;;  %v5112_v11 = vadd.f32 %v6182_v5, %v9723_v51  ;;  %v5103_v46 = vpop.f32.mrb[27].mxu0 }
 0x3cd   : > { %5462 = vst [vmem:[%s9747_s7 + $0x258] sm:$0xff] %v5304_v8  ;;  %5411 = vst [vmem:[%s9747_s7 + $0xc0] sm:$0xff] %v5101_v58  ;;  %v5104_v57 = vadd.f32 %v9723_v51, %v5103_v46 }
 0x3ce   : > { %5460 = vst [vmem:[%s9747_s7 + $0x248] sm:$0xff] %v5296_v27  ;;  %5414 = vst [vmem:[%s9747_s7 + $0xd8] sm:$0xff] %v5112_v11 }
 0x3cf   : > { %5412 = vst [vmem:[%s9747_s7 + $0xc8] sm:$0xff] %v5104_v57 }
 0x3e8   : > { %v6233_v40 = vpop.f32.mrb[28].mxu1 }
 0x3e9   : > { %v5317_v47 = vadd.f32 %v6233_v40, %v9723_v51  ;;  %v5308_v0 = vpop.f32.mrb[29].mxu1  ;;  %v6185_v53 = vpop.f32.mrb[28].mxu0 }
 0x3ea   : > { %v5309_v31 = vadd.f32 %v9723_v51, %v5308_v0  ;;  %v6234_v48 = vpop.f32.mrb[30].mxu1  ;;  %v5125_v9 = vadd.f32 %v6185_v53, %v9723_v51  ;;  %v5116_v44 = vpop.f32.mrb[29].mxu0 }
 0x3eb   : > { %5465 = vst [vmem:[%s9747_s7 + $0x270] sm:$0xff] %v5317_v47  ;;  %v5320_v38 = vadd.f32 %v6234_v48, %v9723_v51  ;;  %v5311_v32 = vpop.f32.mrb[31].mxu1  ;;  %v5117_v7 = vadd.f32 %v9723_v51, %v5116_v44  ;;  %v6186_v49 = vpop.f32.mrb[30].mxu0  ;;  %v6668_v48 = vld [vmem:[%s10253_s2] ss:$0 sm:$0xff] }
 0x3ec   : > { %5463 = vst [vmem:[%s9747_s7 + $0x260] sm:$0xff] %v5309_v31  ;;  %v5312_v19 = vadd.f32 %v9723_v51, %v5311_v32  ;;  %5417 = vst [vmem:[%s9747_s7 + $0xf0] sm:$0xff] %v5125_v9  ;;  %v5128_v29 = vadd.f32 %v6186_v49, %v9723_v51  ;;  %v5119_v14 = vpop.f32.mrb[31].mxu0 }
 0x3ed   : > { %5466 = vst [vmem:[%s9747_s7 + $0x278] sm:$0xff] %v5320_v38  ;;  %5415 = vst [vmem:[%s9747_s7 + $0xe0] sm:$0xff] %v5117_v7  ;;  %v5120_v18 = vadd.f32 %v9723_v51, %v5119_v14 }
 0x3ee   : > { %5464 = vst [vmem:[%s9747_s7 + $0x268] sm:$0xff] %v5312_v19  ;;  %5418 = vst [vmem:[%s9747_s7 + $0xf8] sm:$0xff] %v5128_v29 }
 0x3ef   : > { %5416 = vst [vmem:[%s9747_s7 + $0xe8] sm:$0xff] %v5120_v18 }
 0x408   : > { %v6237_v59 = vpop.f32.mrb[32].mxu1 }
 0x409   : > { %v5333_v4 = vadd.f32 %v6237_v59, %v9723_v51  ;;  %v5324_v61 = vpop.f32.mrb[33].mxu1 }
 0x40a   : > { %v6189_v26 = vpop.f32.mrb[32].mxu0  ;;  %v5325_v17 = vadd.f32 %v9723_v51, %v5324_v61  ;;  %v6238_v35 = vpop.f32.mrb[34].mxu1 }
 0x40b   : > { %v5141_v25 = vadd.f32 %v6189_v26, %v9723_v51  ;;  %5469 = vst [vmem:[%s9747_s7 + $0x290] sm:$0xff] %v5333_v4  ;;  %v5132_v52 = vpop.f32.mrb[33].mxu0  ;;  %v5336_v33 = vadd.f32 %v6238_v35, %v9723_v51  ;;  %v5327_v63 = vpop.f32.mrb[35].mxu1 }
 0x40c   : > { %v5133_v20 = vadd.f32 %v9723_v51, %v5132_v52  ;;  %5467 = vst [vmem:[%s9747_s7 + $0x280] sm:$0xff] %v5325_v17  ;;  %v6190_v41 = vpop.f32.mrb[34].mxu0  ;;  %v5328_v24 = vadd.f32 %v9723_v51, %v5327_v63 }
 0x40d   : > { %5421 = vst [vmem:[%s9747_s7 + $0x110] sm:$0xff] %v5141_v25  ;;  %v5144_v56 = vadd.f32 %v6190_v41, %v9723_v51  ;;  %5470 = vst [vmem:[%s9747_s7 + $0x298] sm:$0xff] %v5336_v33  ;;  %v5135_v45 = vpop.f32.mrb[35].mxu0 }
 0x40e   : > { %5419 = vst [vmem:[%s9747_s7 + $0x100] sm:$0xff] %v5133_v20  ;;  %v5136_v60 = vadd.f32 %v9723_v51, %v5135_v45  ;;  %5468 = vst [vmem:[%s9747_s7 + $0x288] sm:$0xff] %v5328_v24 }
 0x40f   : > { %5422 = vst [vmem:[%s9747_s7 + $0x118] sm:$0xff] %v5144_v56 }
 0x410   : > { %5420 = vst [vmem:[%s9747_s7 + $0x108] sm:$0xff] %v5136_v60 }
 0x428   : > { %v6241_v43 = vpop.f32.mrb[36].mxu1 }
 0x429   : > { %v5349_v3 = vadd.f32 %v6241_v43, %v9723_v51  ;;  %v5340_v23 = vpop.f32.mrb[37].mxu1 }
 0x42a   : > { %v6193_v50 = vpop.f32.mrb[36].mxu0  ;;  %v5341_v1 = vadd.f32 %v9723_v51, %v5340_v23  ;;  %v6242_v10 = vpop.f32.mrb[38].mxu1 }
 0x42b   : > { %v5157_v54 = vadd.f32 %v6193_v50, %v9723_v51  ;;  %5473 = vst [vmem:[%s9747_s7 + $0x2b0] sm:$0xff] %v5349_v3  ;;  %v5148_v6 = vpop.f32.mrb[37].mxu0  ;;  %v5352_v21 = vadd.f32 %v6242_v10, %v9723_v51  ;;  %v5343_v36 = vpop.f32.mrb[39].mxu1 }
 0x42c   : > { %v5149_v2 = vadd.f32 %v9723_v51, %v5148_v6  ;;  %5471 = vst [vmem:[%s9747_s7 + $0x2a0] sm:$0xff] %v5341_v1  ;;  %v6194_v16 = vpop.f32.mrb[38].mxu0  ;;  %v5344_v12 = vadd.f32 %v9723_v51, %v5343_v36 }
 0x42d   : > { %5425 = vst [vmem:[%s9747_s7 + $0x130] sm:$0xff] %v5157_v54  ;;  %v5160_v37 = vadd.f32 %v6194_v16, %v9723_v51  ;;  %5474 = vst [vmem:[%s9747_s7 + $0x2b8] sm:$0xff] %v5352_v21  ;;  %v5151_v30 = vpop.f32.mrb[39].mxu0 }
 0x42e   : > { %5423 = vst [vmem:[%s9747_s7 + $0x120] sm:$0xff] %v5149_v2  ;;  %v5152_v13 = vadd.f32 %v9723_v51, %v5151_v30  ;;  %5472 = vst [vmem:[%s9747_s7 + $0x2a8] sm:$0xff] %v5344_v12 }
 0x42f   : > { %5426 = vst [vmem:[%s9747_s7 + $0x138] sm:$0xff] %v5160_v37 }
 0x430   : > { %5424 = vst [vmem:[%s9747_s7 + $0x128] sm:$0xff] %v5152_v13 }
 0x448   : > { %v6245_v62 = vpop.f32.mrb[40].mxu1 }
 0x449   : > { %v5365_v39 = vadd.f32 %v6245_v62, %v9723_v51  ;;  %v5356_v22 = vpop.f32.mrb[41].mxu1 }
 0x44a   : > { %v6197_v28 = vpop.f32.mrb[40].mxu0  ;;  %v5357_v42 = vadd.f32 %v9723_v51, %v5356_v22  ;;  %v6246_v15 = vpop.f32.mrb[42].mxu1 }
 0x44b   : > { %v5173_v55 = vadd.f32 %v6197_v28, %v9723_v51  ;;  %5477 = vst [vmem:[%s9747_s7 + $0x2d0] sm:$0xff] %v5365_v39  ;;  %v5164_v8 = vpop.f32.mrb[41].mxu0  ;;  %v5368_v34 = vadd.f32 %v6246_v15, %v9723_v51  ;;  %v5359_v58 = vpop.f32.mrb[43].mxu1 }
 0x44c   : > { %v5165_v5 = vadd.f32 %v9723_v51, %v5164_v8  ;;  %5475 = vst [vmem:[%s9747_s7 + $0x2c0] sm:$0xff] %v5357_v42  ;;  %v6198_v27 = vpop.f32.mrb[42].mxu0  ;;  %v5360_v11 = vadd.f32 %v9723_v51, %v5359_v58 }
 0x44d   : > { %5429 = vst [vmem:[%s9747_s7 + $0x150] sm:$0xff] %v5173_v55  ;;  %v5176_v46 = vadd.f32 %v6198_v27, %v9723_v51  ;;  %5478 = vst [vmem:[%s9747_s7 + $0x2d8] sm:$0xff] %v5368_v34  ;;  %v5167_v57 = vpop.f32.mrb[43].mxu0 }
 0x44e   : > { %5427 = vst [vmem:[%s9747_s7 + $0x140] sm:$0xff] %v5165_v5  ;;  %v5168_v40 = vadd.f32 %v9723_v51, %v5167_v57  ;;  %5476 = vst [vmem:[%s9747_s7 + $0x2c8] sm:$0xff] %v5360_v11 }
 0x44f   : > { %5430 = vst [vmem:[%s9747_s7 + $0x158] sm:$0xff] %v5176_v46 }
 0x450   : > { %5428 = vst [vmem:[%s9747_s7 + $0x148] sm:$0xff] %v5168_v40 }
 0x468   : > { %v6249_v47 = vpop.f32.mrb[44].mxu1 }
 0x469   : > { %v5381_v0 = vadd.f32 %v6249_v47, %v9723_v51  ;;  %v5372_v53 = vpop.f32.mrb[45].mxu1 }
 0x46a   : > { %v6201_v31 = vpop.f32.mrb[44].mxu0  ;;  %v5373_v9 = vadd.f32 %v6668_v48, %v5372_v53  ;;  %v6250_v44 = vpop.f32.mrb[46].mxu1 }
 0x46b   : > { %v5189_v38 = vadd.f32 %v6668_v48, %v6201_v31  ;;  %5481 = vst [vmem:[%s9747_s7 + $0x2f0] sm:$0xff] %v5381_v0  ;;  %v5180_v32 = vpop.f32.mrb[45].mxu0  ;;  %v5384_v7 = vadd.f32 %v6668_v48, %v6250_v44  ;;  %v5375_v49 = vpop.f32.mrb[47].mxu1 }
 0x46c   : > { %v5181_v51 = vadd.f32 %v6668_v48, %v5180_v32  ;;  %5479 = vst [vmem:[%s9747_s7 + $0x2e0] sm:$0xff] %v5373_v9  ;;  %v6202_v19 = vpop.f32.mrb[46].mxu0  ;;  %v5376_v29 = vadd.f32 %v6668_v48, %v5375_v49 }
 0x46d   : > { %5433 = vst [vmem:[%s9747_s7 + $0x170] sm:$0xff] %v5189_v38  ;;  %v5192_v14 = vadd.f32 %v6668_v48, %v6202_v19  ;;  %5482 = vst [vmem:[%s9747_s7 + $0x2f8] sm:$0xff] %v5384_v7  ;;  %v5183_v18 = vpop.f32.mrb[47].mxu0 }
 0x46e   : > { %5431 = vst [vmem:[%s9747_s7 + $0x160] sm:$0xff] %v5181_v51  ;;  %v5184_v59 = vadd.f32 %v6668_v48, %v5183_v18  ;;  %5480 = vst [vmem:[%s9747_s7 + $0x2e8] sm:$0xff] %v5376_v29 }
 0x46f   : > { %5434 = vst [vmem:[%s9747_s7 + $0x178] sm:$0xff] %v5192_v14 }
 0x470   : > { %5432 = vst [vmem:[%s9747_s7 + $0x168] sm:$0xff] %v5184_v59 }
 0x471   : > { %6682 = shalt.err (!%p6679_p5)
}
 0x472   : > { %s6683_s28 = scalar_lea.hbm %s10194_s18, 12288  ;;  %s6687_s6 = scalar_lea.hbm %s10254_s3, 24576 }
 0x473   : > { %p6684_p6 = scmp.ne.s32.totalorder %s10194_s18, %s6683_s28  ;;  %p6688_p10 = scmp.lt.u32.totalorder %s10194_s18, %s10254_s3 }
 0x474   : > { %p6689_p11 = scmp.lt.u32.totalorder %s6687_s6, %s6683_s28  ;;  %p6691_p13 = scmp.lt.u32.totalorder %s6683_s28, %s10194_s18 }
 0x475   : > { %p6685_p7 = pnand %p6684_p6, %p6819_p4 }
 0x476   : > { %p6690_p12 = por %p6689_p11, %p6688_p10 }
 0x477   : > { %p6686_p9 = pneg %p6685_p7 }
 0x478   : > { %p6692_p0 = por %p6691_p13, %p6690_p12 }
 0x47a   : > { %p6693_p1 = pnand %p6692_p0, %p6686_p9 }
 0x47c   : > { %6696 = shalt.err (!%p6693_p1)
}
 0x47d   : > { %s6758_s8 = smov 128  }
 0x47e   : > { %6262 = dma.vmem_to_hbm [thread:$0]  (%p6819_p4), %s10198_s10, 12288, %s10194_s18, %s10204_s19, %s6758_s8, %s6758_s8, %s6750_s5  }
 0x47f PF: > { %p6268_p2 = scmp.ge.s32.totalorder %s6747_s17, 2  ;;  %s5514_s9 = sand.u32 1, %s6727_s12  }
 0x480   : > { %s5515_s15 = scalar_lea.sflag [#allocation3], %s5514_s9 }
 0x481   : > { %p6265_p3 = pnand %p6268_p2, %p6826_p8 }
 0x483   : > { %6722 = dma.done.wait (!%p6265_p3), %s5515_s15, 12288  }
 0x484   : > { %6724 = vsyncadd (!%p6265_p3), %s5515_s15, 4294955008  ;;  %s16_s17 = sadd.s32 1, %s6747_s17   ;;  %s10683_s12 = smov %s6731_s13 }
 0x485   : > { %p13_p5 = scmp.ge.s32.totalorder %s16_s17, 4   ;;  %s10684_s13 = smov %s6735_s14 }
 0x486   : > { %s10685_s14 = smov %s6832_s25  ;;  %s10686_s15 = smov %s6743_s16 }
 0x487   : > { %s10687_s16 = smov %s10689_s20  ;;  %15 = sbr.rel (!%p13_p5) target bundleno = 4 (0x4), region = 69 }
 0x48e   :  { %5520 = vsyncpa [#allocation3], 1 }
 0x48f   :  { %5522 = vsyncpa [#allocation3 + $0x1], 1 }

</bundles_post_ra>
